<compile_context>
chip_gen: v7x
topology: tpu7x:2x2x1
jax: 0.10.0
libtpu: 0.0.40
codegen_flags: <defaults>
</compile_context>

<pallas_src>
import functools

import jax
import jax.numpy as jnp
from jax import lax
from jax.experimental import pallas as pl
from jax.experimental.pallas import tpu as pltpu


def _cbam_kernel(x_ref, w1_ref, w2t_ref, wsa_ref, o_ref, *, H, W, KS):
    Bblk, C, HW = x_ref.shape
    P = KS // 2

    x = x_ref[...]                                            # (Bblk, C, HW)

    # ---------------- Channel attention ----------------
    avg_c = jnp.mean(x, axis=2).astype(jnp.float32)           # (Bblk, C)
    max_c = jnp.max(x, axis=2).astype(jnp.float32)            # (Bblk, C)
    pooled = jnp.concatenate([avg_c, max_c], axis=0)          # (2*Bblk, C)

    w1 = w1_ref[...]                                          # (Cr, C) f32
    w2t = w2t_ref[...]                                        # (Cr, C) f32
    Cr = w1.shape[0]

    # Shared bottleneck MLP, kept on the VPU/XLU (broadcast-FMA + lane
    # reduction per hidden unit). At N=2*Bblk output columns an MXU matmul
    # would pay full push/drain latency for <2% array utilization.
    fc = jnp.zeros((2 * Bblk, C), jnp.float32)
    for r in range(Cr):
        h_r = jnp.sum(pooled * w1[r:r + 1, :], axis=1, keepdims=True)  # (2B,1)
        h_r = jnp.maximum(h_r, 0.0)                                    # ReLU
        fc = fc + h_r * w2t[r:r + 1, :]                                # (2B,C)

    ca = jax.nn.sigmoid(fc[:Bblk] + fc[Bblk:])                # (Bblk, C)
    out1 = x * ca[:, :, None].astype(x.dtype)                 # (Bblk, C, HW)

    # ---------------- Spatial attention ----------------
    avg_s = jnp.mean(out1, axis=1).astype(jnp.float32)        # (Bblk, HW)
    max_s = jnp.max(out1, axis=1).astype(jnp.float32)         # (Bblk, HW)

    # Edge-validity masks on the flat index (computed once, one AND per tap).
    idx = lax.broadcasted_iota(jnp.int32, (1, HW), 1)         # (1, HW)
    if W & (W - 1) == 0:
        col = jnp.bitwise_and(idx, W - 1)                     # i mod W (pow2)
    else:
        col = idx % W                                         # general fallback

    row_ok, col_ok = [], []
    for d in range(KS):
        s = d - P
        lo_r, hi_r = max(0, -s) * W, min(H, H - s) * W        # valid rows -> idx range
        row_ok.append(jnp.logical_and(idx >= lo_r, idx < hi_r))
        lo_c, hi_c = max(0, -s), min(W, W - s)
        col_ok.append(jnp.logical_and(col >= lo_c, col < hi_c))

    # 7x7 conv over the 2-channel [avg, max] map, fully unrolled over taps.
    # Each tap is one XLU lane-rotation of the flat maps + masked FMA (VPU).
    acc = jnp.zeros((Bblk, HW), jnp.float32)
    for dh in range(KS):
        for dw in range(KS):
            delta = (dh - P) * W + (dw - P)
            shift = (-delta) % HW
            if shift == 0:
                r_avg, r_max = avg_s, max_s
            else:
                r_avg = pltpu.roll(avg_s, shift, 1)
                r_max = pltpu.roll(max_s, shift, 1)
            w_a = wsa_ref[0 * KS * KS + dh * KS + dw]         # scalar (SMEM)
            w_m = wsa_ref[1 * KS * KS + dh * KS + dw]
            tap = w_a * r_avg + w_m * r_max
            mask = jnp.logical_and(row_ok[dh], col_ok[dw])
            acc = acc + jnp.where(mask, tap, 0.0)

    sa = jax.nn.sigmoid(acc)                                  # (Bblk, HW)
    o_ref[...] = (out1 * sa[:, None, :].astype(out1.dtype)).astype(o_ref.dtype)


def cbam_pallas(x, w1, w2, w_spatial, *, kernel_size=7, batch_block=None):
    """x: (B, C, H, W); w1: (C//r, C); w2: (C, C//r); w_spatial: (2, k, k)."""
    B, C, H, W = x.shape
    Cr = w1.shape[0]
    HW = H * W
    Bblk = B if batch_block is None else batch_block
    assert B % Bblk == 0, "batch_block must divide the batch size"
    grid = (B // Bblk,)

    x_flat = x.reshape(B, C, HW)                              # lane-dense layout
    w1f = w1.astype(jnp.float32)                              # (Cr, C)
    w2t = w2.T.astype(jnp.float32)                            # (Cr, C)
    wsa = w_spatial.reshape(-1).astype(jnp.float32)           # (2*k*k,) in SMEM

    kernel = functools.partial(_cbam_kernel, H=H, W=W, KS=kernel_size)

    itemsize = jnp.dtype(x.dtype).itemsize
    cost = pl.CostEstimate(
        flops=(2 * B * C * HW                                  # two elementwise scalings
               + 4 * kernel_size * kernel_size * B * HW        # 7x7 conv MACs (2 ch)
               + 8 * B * Cr * C),                              # channel MLP
        transcendentals=B * C + B * HW,                        # sigmoids
        bytes_accessed=(2 * B * C * HW * itemsize
                        + (2 * Cr * C + 2 * kernel_size * kernel_size) * 4),
    )

    # in + out blocks, double-buffered, plus small-weight/scratch headroom.
    vmem_needed = 4 * Bblk * C * HW * itemsize + (2 << 20)
    vmem_limit = int(max(vmem_needed, 16 << 20))

    out_flat = pl.pallas_call(
        kernel,
        out_shape=jax.ShapeDtypeStruct((B, C, HW), x.dtype),
        grid=grid,
        in_specs=[
            pl.BlockSpec((Bblk, C, HW), lambda b: (b, 0, 0)),  # batch slab
            pl.BlockSpec((Cr, C), lambda b: (0, 0)),           # fc weight 1
            pl.BlockSpec((Cr, C), lambda b: (0, 0)),           # fc weight 2 (transposed)
            pl.BlockSpec(memory_space=pltpu.MemorySpace.SMEM), # 7x7 conv taps
        ],
        out_specs=pl.BlockSpec((Bblk, C, HW), lambda b: (b, 0, 0)),
        compiler_params=pltpu.CompilerParams(
            dimension_semantics=("parallel",),
            vmem_limit_bytes=vmem_limit),
        cost_estimate=cost,
    )(x_flat, w1f, w2t, wsa)

    return out_flat.reshape(B, C, H, W)


def cbam_reference(x, w1, w2, w_spatial):
    """Pure-JAX reference matching the PyTorch CBAM forward (NCHW)."""
    def fc(v):                                                # v: (B, C)
        h = jnp.maximum(v @ w1.T, 0.0)                        # (B, Cr)
        return h @ w2.T                                       # (B, C)

    avg = jnp.mean(x, axis=(2, 3))
    mx = jnp.max(x, axis=(2, 3))
    ca = jax.nn.sigmoid(fc(avg) + fc(mx))                     # (B, C)
    out1 = x * ca[:, :, None, None]

    avg_s = jnp.mean(out1, axis=1, keepdims=True)
    max_s = jnp.max(out1, axis=1, keepdims=True)
    cat = jnp.concatenate([avg_s, max_s], axis=1)             # (B, 2, H, W)
    conv = lax.conv_general_dilated(
        cat, w_spatial[None, :, :, :], window_strides=(1, 1), padding="SAME",
        dimension_numbers=("NCHW", "OIHW", "NCHW"))
    sa = jax.nn.sigmoid(conv)                                 # (B, 1, H, W)
    return out1 * sa


if __name__ == "__main__":
    B, C, H, W = 2, 32, 16, 16
    ratio, ksize = 16, 7
    Cr = C // ratio

    key = jax.random.PRNGKey(0)
    kx, k1, k2, k3 = jax.random.split(key, 4)
    x = jax.random.normal(kx, (B, C, H, W), dtype=jnp.float32)
    # Deterministic synthetic parameters (shapes from the module's __init__):
    w1 = 0.10 * jax.random.normal(k1, (Cr, C), dtype=jnp.float32)    # Conv2d(C, C//r, 1)
    w2 = 0.10 * jax.random.normal(k2, (C, Cr), dtype=jnp.float32)    # Conv2d(C//r, C, 1)
    w_spatial = 0.05 * jax.random.normal(k3, (2, ksize, ksize),      # Conv2d(2, 1, 7)
                                         dtype=jnp.float32)

    out = cbam_pallas(x, w1, w2, w_spatial, kernel_size=ksize)
    out = jax.block_until_ready(out)

    ref = cbam_reference(x, w1, w2, w_spatial)
    if not jnp.allclose(out, ref, rtol=1e-4, atol=1e-4):
        raise AssertionError("Pallas CBAM output mismatch vs JAX reference")

    print("KERNEL_OK")
</pallas_src>

<mosaic_0001>
module attributes {stable_mosaic.version = 11 : i64} {
  func.func @_cbam_kernel(%arg0: i32, %arg1: memref<2x32x256xf32, #tpu.memory_space<vmem>>, %arg2: memref<2x32xf32, #tpu.memory_space<vmem>>, %arg3: memref<2x32xf32, #tpu.memory_space<vmem>>, %arg4: memref<98xf32, #tpu.memory_space<smem>>, %arg5: memref<2x32x256xf32, #tpu.memory_space<vmem>>) attributes {dimension_semantics = [#tpu.dimension_semantics<parallel>], iteration_bounds = array<i64: 1>, scalar_prefetch = 0 : i64, scratch_operands = 0 : i64, tpu.core_type = #tpu.core_type<tc>, window_params = [{transform_indices = @transform_0, window_bounds = array<i64: 2, 32, 256>}, {pipeline_mode = #tpu.pipeline_mode<synchronous>, transform_indices = @transform_1, window_bounds = array<i64: 2, 32>}, {pipeline_mode = #tpu.pipeline_mode<synchronous>, transform_indices = @transform_2, window_bounds = array<i64: 2, 32>}, {transform_indices = @transform_3, window_bounds = array<i64: 98>}, {transform_indices = @transform_4, window_bounds = array<i64: 2, 32, 256>}]} {
    %c0 = arith.constant 0 : index
    %c0_0 = arith.constant 0 : index
    %c0_1 = arith.constant 0 : index
    %0 = vector.load %arg1[%c0, %c0_0, %c0_1] : memref<2x32x256xf32, #tpu.memory_space<vmem>>, vector<2x32x256xf32>
    %cst = arith.constant dense<0.000000e+00> : vector<2x32xf32>
    %1 = vector.multi_reduction <add>, %0, %cst [2] : vector<2x32x256xf32> to vector<2x32xf32>
    %cst_2 = arith.constant 2.560000e+02 : f32
    %2 = vector.broadcast %cst_2 : f32 to vector<2x32xf32>
    %3 = arith.divf %1, %2 : vector<2x32xf32>
    %cst_3 = arith.constant dense<0xFF800000> : vector<2x32xf32>
    %4 = vector.multi_reduction <maximumf>, %0, %cst_3 [2] : vector<2x32x256xf32> to vector<2x32xf32>
    %5 = tpu.concatenate %3, %4 in 0 : vector<2x32xf32>, vector<2x32xf32> -> vector<4x32xf32>
    %c0_4 = arith.constant 0 : index
    %c0_5 = arith.constant 0 : index
    %6 = vector.load %arg2[%c0_4, %c0_5] : memref<2x32xf32, #tpu.memory_space<vmem>>, vector<2x32xf32>
    %c0_6 = arith.constant 0 : index
    %c0_7 = arith.constant 0 : index
    %7 = vector.load %arg3[%c0_6, %c0_7] : memref<2x32xf32, #tpu.memory_space<vmem>>, vector<2x32xf32>
    %cst_8 = arith.constant 0.000000e+00 : f32
    %8 = vector.broadcast %cst_8 : f32 to vector<4x32xf32>
    %9 = vector.extract_strided_slice %6 {offsets = [0, 0], sizes = [1, 32], strides = [1, 1]} : vector<2x32xf32> to vector<1x32xf32>
    %10 = vector.broadcast %9 : vector<1x32xf32> to vector<4x32xf32>
    %11 = arith.mulf %5, %10 : vector<4x32xf32>
    %cst_9 = arith.constant dense<0.000000e+00> : vector<4xf32>
    %12 = vector.multi_reduction <add>, %11, %cst_9 [1] : vector<4x32xf32> to vector<4xf32>
    %13 = vector.shape_cast %12 : vector<4xf32> to vector<4x1xf32>
    %cst_10 = arith.constant 0.000000e+00 : f32
    %14 = vector.broadcast %cst_10 : f32 to vector<4x1xf32>
    %15 = arith.maximumf %13, %14 : vector<4x1xf32>
    %16 = vector.extract_strided_slice %7 {offsets = [0, 0], sizes = [1, 32], strides = [1, 1]} : vector<2x32xf32> to vector<1x32xf32>
    %17 = vector.broadcast %15 : vector<4x1xf32> to vector<4x32xf32>
    %18 = vector.broadcast %16 : vector<1x32xf32> to vector<4x32xf32>
    %19 = arith.mulf %17, %18 : vector<4x32xf32>
    %20 = arith.addf %8, %19 : vector<4x32xf32>
    %21 = vector.extract_strided_slice %6 {offsets = [1, 0], sizes = [1, 32], strides = [1, 1]} : vector<2x32xf32> to vector<1x32xf32>
    %22 = vector.broadcast %21 : vector<1x32xf32> to vector<4x32xf32>
    %23 = arith.mulf %5, %22 : vector<4x32xf32>
    %cst_11 = arith.constant dense<0.000000e+00> : vector<4xf32>
    %24 = vector.multi_reduction <add>, %23, %cst_11 [1] : vector<4x32xf32> to vector<4xf32>
    %25 = vector.shape_cast %24 : vector<4xf32> to vector<4x1xf32>
    %cst_12 = arith.constant 0.000000e+00 : f32
    %26 = vector.broadcast %cst_12 : f32 to vector<4x1xf32>
    %27 = arith.maximumf %25, %26 : vector<4x1xf32>
    %28 = vector.extract_strided_slice %7 {offsets = [1, 0], sizes = [1, 32], strides = [1, 1]} : vector<2x32xf32> to vector<1x32xf32>
    %29 = vector.broadcast %27 : vector<4x1xf32> to vector<4x32xf32>
    %30 = vector.broadcast %28 : vector<1x32xf32> to vector<4x32xf32>
    %31 = arith.mulf %29, %30 : vector<4x32xf32>
    %32 = arith.addf %20, %31 : vector<4x32xf32>
    %33 = vector.extract_strided_slice %32 {offsets = [0, 0], sizes = [2, 32], strides = [1, 1]} : vector<4x32xf32> to vector<2x32xf32>
    %34 = vector.extract_strided_slice %32 {offsets = [2, 0], sizes = [2, 32], strides = [1, 1]} : vector<4x32xf32> to vector<2x32xf32>
    %35 = arith.addf %33, %34 : vector<2x32xf32>
    %36 = arith.negf %35 : vector<2x32xf32>
    %37 = math.exp %36 : vector<2x32xf32>
    %cst_13 = arith.constant 1.000000e+00 : f32
    %38 = vector.broadcast %cst_13 : f32 to vector<2x32xf32>
    %39 = arith.addf %38, %37 : vector<2x32xf32>
    %40 = arith.divf %38, %39 : vector<2x32xf32>
    %41 = vector.shape_cast %40 : vector<2x32xf32> to vector<2x32x1xf32>
    %42 = vector.broadcast %41 : vector<2x32x1xf32> to vector<2x32x256xf32>
    %43 = arith.mulf %0, %42 : vector<2x32x256xf32>
    %cst_14 = arith.constant dense<0.000000e+00> : vector<2x256xf32>
    %44 = vector.multi_reduction <add>, %43, %cst_14 [1] : vector<2x32x256xf32> to vector<2x256xf32>
    %cst_15 = arith.constant 3.200000e+01 : f32
    %45 = vector.broadcast %cst_15 : f32 to vector<2x256xf32>
    %46 = arith.divf %44, %45 : vector<2x256xf32>
    %cst_16 = arith.constant dense<0xFF800000> : vector<2x256xf32>
    %47 = vector.multi_reduction <maximumf>, %43, %cst_16 [1] : vector<2x32x256xf32> to vector<2x256xf32>
    %48 = tpu.iota {dimensions = array<i32: 1>} : vector<1x256xi32>
    %c15_i32 = arith.constant 15 : i32
    %49 = vector.broadcast %c15_i32 : i32 to vector<1x256xi32>
    %50 = arith.andi %48, %49 : vector<1x256xi32>
    %c48_i32 = arith.constant 48 : i32
    %51 = vector.broadcast %c48_i32 : i32 to vector<1x256xi32>
    %52 = arith.cmpi sge, %48, %51 : vector<1x256xi32>
    %c256_i32 = arith.constant 256 : i32
    %53 = vector.broadcast %c256_i32 : i32 to vector<1x256xi32>
    %54 = arith.cmpi slt, %48, %53 : vector<1x256xi32>
    %55 = arith.andi %52, %54 : vector<1x256xi1>
    %c3_i32 = arith.constant 3 : i32
    %56 = vector.broadcast %c3_i32 : i32 to vector<1x256xi32>
    %57 = arith.cmpi sge, %50, %56 : vector<1x256xi32>
    %c16_i32 = arith.constant 16 : i32
    %58 = vector.broadcast %c16_i32 : i32 to vector<1x256xi32>
    %59 = arith.cmpi slt, %50, %58 : vector<1x256xi32>
    %60 = arith.andi %57, %59 : vector<1x256xi1>
    %c32_i32 = arith.constant 32 : i32
    %61 = vector.broadcast %c32_i32 : i32 to vector<1x256xi32>
    %62 = arith.cmpi sge, %48, %61 : vector<1x256xi32>
    %c256_i32_17 = arith.constant 256 : i32
    %63 = vector.broadcast %c256_i32_17 : i32 to vector<1x256xi32>
    %64 = arith.cmpi slt, %48, %63 : vector<1x256xi32>
    %65 = arith.andi %62, %64 : vector<1x256xi1>
    %c2_i32 = arith.constant 2 : i32
    %66 = vector.broadcast %c2_i32 : i32 to vector<1x256xi32>
    %67 = arith.cmpi sge, %50, %66 : vector<1x256xi32>
    %c16_i32_18 = arith.constant 16 : i32
    %68 = vector.broadcast %c16_i32_18 : i32 to vector<1x256xi32>
    %69 = arith.cmpi slt, %50, %68 : vector<1x256xi32>
    %70 = arith.andi %67, %69 : vector<1x256xi1>
    %c16_i32_19 = arith.constant 16 : i32
    %71 = vector.broadcast %c16_i32_19 : i32 to vector<1x256xi32>
    %72 = arith.cmpi sge, %48, %71 : vector<1x256xi32>
    %c256_i32_20 = arith.constant 256 : i32
    %73 = vector.broadcast %c256_i32_20 : i32 to vector<1x256xi32>
    %74 = arith.cmpi slt, %48, %73 : vector<1x256xi32>
    %75 = arith.andi %72, %74 : vector<1x256xi1>
    %c1_i32 = arith.constant 1 : i32
    %76 = vector.broadcast %c1_i32 : i32 to vector<1x256xi32>
    %77 = arith.cmpi sge, %50, %76 : vector<1x256xi32>
    %c16_i32_21 = arith.constant 16 : i32
    %78 = vector.broadcast %c16_i32_21 : i32 to vector<1x256xi32>
    %79 = arith.cmpi slt, %50, %78 : vector<1x256xi32>
    %80 = arith.andi %77, %79 : vector<1x256xi1>
    %c0_i32 = arith.constant 0 : i32
    %81 = vector.broadcast %c0_i32 : i32 to vector<1x256xi32>
    %82 = arith.cmpi sge, %48, %81 : vector<1x256xi32>
    %c256_i32_22 = arith.constant 256 : i32
    %83 = vector.broadcast %c256_i32_22 : i32 to vector<1x256xi32>
    %84 = arith.cmpi slt, %48, %83 : vector<1x256xi32>
    %85 = arith.andi %82, %84 : vector<1x256xi1>
    %c0_i32_23 = arith.constant 0 : i32
    %86 = vector.broadcast %c0_i32_23 : i32 to vector<1x256xi32>
    %87 = arith.cmpi sge, %50, %86 : vector<1x256xi32>
    %c16_i32_24 = arith.constant 16 : i32
    %88 = vector.broadcast %c16_i32_24 : i32 to vector<1x256xi32>
    %89 = arith.cmpi slt, %50, %88 : vector<1x256xi32>
    %90 = arith.andi %87, %89 : vector<1x256xi1>
    %c0_i32_25 = arith.constant 0 : i32
    %91 = vector.broadcast %c0_i32_25 : i32 to vector<1x256xi32>
    %92 = arith.cmpi sge, %48, %91 : vector<1x256xi32>
    %c240_i32 = arith.constant 240 : i32
    %93 = vector.broadcast %c240_i32 : i32 to vector<1x256xi32>
    %94 = arith.cmpi slt, %48, %93 : vector<1x256xi32>
    %95 = arith.andi %92, %94 : vector<1x256xi1>
    %c0_i32_26 = arith.constant 0 : i32
    %96 = vector.broadcast %c0_i32_26 : i32 to vector<1x256xi32>
    %97 = arith.cmpi sge, %50, %96 : vector<1x256xi32>
    %c15_i32_27 = arith.constant 15 : i32
    %98 = vector.broadcast %c15_i32_27 : i32 to vector<1x256xi32>
    %99 = arith.cmpi slt, %50, %98 : vector<1x256xi32>
    %100 = arith.andi %97, %99 : vector<1x256xi1>
    %c0_i32_28 = arith.constant 0 : i32
    %101 = vector.broadcast %c0_i32_28 : i32 to vector<1x256xi32>
    %102 = arith.cmpi sge, %48, %101 : vector<1x256xi32>
    %c224_i32 = arith.constant 224 : i32
    %103 = vector.broadcast %c224_i32 : i32 to vector<1x256xi32>
    %104 = arith.cmpi slt, %48, %103 : vector<1x256xi32>
    %105 = arith.andi %102, %104 : vector<1x256xi1>
    %c0_i32_29 = arith.constant 0 : i32
    %106 = vector.broadcast %c0_i32_29 : i32 to vector<1x256xi32>
    %107 = arith.cmpi sge, %50, %106 : vector<1x256xi32>
    %c14_i32 = arith.constant 14 : i32
    %108 = vector.broadcast %c14_i32 : i32 to vector<1x256xi32>
    %109 = arith.cmpi slt, %50, %108 : vector<1x256xi32>
    %110 = arith.andi %107, %109 : vector<1x256xi1>
    %c0_i32_30 = arith.constant 0 : i32
    %111 = vector.broadcast %c0_i32_30 : i32 to vector<1x256xi32>
    %112 = arith.cmpi sge, %48, %111 : vector<1x256xi32>
    %c208_i32 = arith.constant 208 : i32
    %113 = vector.broadcast %c208_i32 : i32 to vector<1x256xi32>
    %114 = arith.cmpi slt, %48, %113 : vector<1x256xi32>
    %115 = arith.andi %112, %114 : vector<1x256xi1>
    %c0_i32_31 = arith.constant 0 : i32
    %116 = vector.broadcast %c0_i32_31 : i32 to vector<1x256xi32>
    %117 = arith.cmpi sge, %50, %116 : vector<1x256xi32>
    %c13_i32 = arith.constant 13 : i32
    %118 = vector.broadcast %c13_i32 : i32 to vector<1x256xi32>
    %119 = arith.cmpi slt, %50, %118 : vector<1x256xi32>
    %120 = arith.andi %117, %119 : vector<1x256xi1>
    %cst_32 = arith.constant 0.000000e+00 : f32
    %121 = vector.broadcast %cst_32 : f32 to vector<2x256xf32>
    %c51_i32 = arith.constant 51 : i32
    %122 = tpu.dynamic_rotate %46 by %c51_i32 dim 1 : vector<2x256xf32>, i32 -> vector<2x256xf32>
    %c51_i32_33 = arith.constant 51 : i32
    %123 = tpu.dynamic_rotate %47 by %c51_i32_33 dim 1 : vector<2x256xf32>, i32 -> vector<2x256xf32>
    %c0_34 = arith.constant 0 : index
    %124 = memref.load %arg4[%c0_34] : memref<98xf32, #tpu.memory_space<smem>>
    %c49 = arith.constant 49 : index
    %125 = memref.load %arg4[%c49] : memref<98xf32, #tpu.memory_space<smem>>
    %126 = vector.broadcast %124 : f32 to vector<2x256xf32>
    %127 = arith.mulf %126, %122 : vector<2x256xf32>
    %128 = vector.broadcast %125 : f32 to vector<2x256xf32>
    %129 = arith.mulf %128, %123 : vector<2x256xf32>
    %130 = arith.addf %127, %129 : vector<2x256xf32>
    %131 = arith.andi %55, %60 : vector<1x256xi1>
    %cst_35 = arith.constant 0.000000e+00 : f32
    %132 = vector.shape_cast %131 : vector<1x256xi1> to vector<1x256xi1>
    %133 = vector.broadcast %132 : vector<1x256xi1> to vector<2x256xi1>
    %134 = vector.broadcast %cst_35 : f32 to vector<2x256xf32>
    %135 = arith.select %133, %130, %134 : vector<2x256xi1>, vector<2x256xf32>
    %136 = arith.addf %121, %135 : vector<2x256xf32>
    %c50_i32 = arith.constant 50 : i32
    %137 = tpu.dynamic_rotate %46 by %c50_i32 dim 1 : vector<2x256xf32>, i32 -> vector<2x256xf32>
    %c50_i32_36 = arith.constant 50 : i32
    %138 = tpu.dynamic_rotate %47 by %c50_i32_36 dim 1 : vector<2x256xf32>, i32 -> vector<2x256xf32>
    %c1 = arith.constant 1 : index
    %139 = memref.load %arg4[%c1] : memref<98xf32, #tpu.memory_space<smem>>
    %c50 = arith.constant 50 : index
    %140 = memref.load %arg4[%c50] : memref<98xf32, #tpu.memory_space<smem>>
    %141 = vector.broadcast %139 : f32 to vector<2x256xf32>
    %142 = arith.mulf %141, %137 : vector<2x256xf32>
    %143 = vector.broadcast %140 : f32 to vector<2x256xf32>
    %144 = arith.mulf %143, %138 : vector<2x256xf32>
    %145 = arith.addf %142, %144 : vector<2x256xf32>
    %146 = arith.andi %55, %70 : vector<1x256xi1>
    %cst_37 = arith.constant 0.000000e+00 : f32
    %147 = vector.shape_cast %146 : vector<1x256xi1> to vector<1x256xi1>
    %148 = vector.broadcast %147 : vector<1x256xi1> to vector<2x256xi1>
    %149 = vector.broadcast %cst_37 : f32 to vector<2x256xf32>
    %150 = arith.select %148, %145, %149 : vector<2x256xi1>, vector<2x256xf32>
    %151 = arith.addf %136, %150 : vector<2x256xf32>
    %c49_i32 = arith.constant 49 : i32
    %152 = tpu.dynamic_rotate %46 by %c49_i32 dim 1 : vector<2x256xf32>, i32 -> vector<2x256xf32>
    %c49_i32_38 = arith.constant 49 : i32
    %153 = tpu.dynamic_rotate %47 by %c49_i32_38 dim 1 : vector<2x256xf32>, i32 -> vector<2x256xf32>
    %c2 = arith.constant 2 : index
    %154 = memref.load %arg4[%c2] : memref<98xf32, #tpu.memory_space<smem>>
    %c51 = arith.constant 51 : index
    %155 = memref.load %arg4[%c51] : memref<98xf32, #tpu.memory_space<smem>>
    %156 = vector.broadcast %154 : f32 to vector<2x256xf32>
    %157 = arith.mulf %156, %152 : vector<2x256xf32>
    %158 = vector.broadcast %155 : f32 to vector<2x256xf32>
    %159 = arith.mulf %158, %153 : vector<2x256xf32>
    %160 = arith.addf %157, %159 : vector<2x256xf32>
    %161 = arith.andi %55, %80 : vector<1x256xi1>
    %cst_39 = arith.constant 0.000000e+00 : f32
    %162 = vector.shape_cast %161 : vector<1x256xi1> to vector<1x256xi1>
    %163 = vector.broadcast %162 : vector<1x256xi1> to vector<2x256xi1>
    %164 = vector.broadcast %cst_39 : f32 to vector<2x256xf32>
    %165 = arith.select %163, %160, %164 : vector<2x256xi1>, vector<2x256xf32>
    %166 = arith.addf %151, %165 : vector<2x256xf32>
    %c48_i32_40 = arith.constant 48 : i32
    %167 = tpu.dynamic_rotate %46 by %c48_i32_40 dim 1 : vector<2x256xf32>, i32 -> vector<2x256xf32>
    %c48_i32_41 = arith.constant 48 : i32
    %168 = tpu.dynamic_rotate %47 by %c48_i32_41 dim 1 : vector<2x256xf32>, i32 -> vector<2x256xf32>
    %c3 = arith.constant 3 : index
    %169 = memref.load %arg4[%c3] : memref<98xf32, #tpu.memory_space<smem>>
    %c52 = arith.constant 52 : index
    %170 = memref.load %arg4[%c52] : memref<98xf32, #tpu.memory_space<smem>>
    %171 = vector.broadcast %169 : f32 to vector<2x256xf32>
    %172 = arith.mulf %171, %167 : vector<2x256xf32>
    %173 = vector.broadcast %170 : f32 to vector<2x256xf32>
    %174 = arith.mulf %173, %168 : vector<2x256xf32>
    %175 = arith.addf %172, %174 : vector<2x256xf32>
    %176 = arith.andi %55, %90 : vector<1x256xi1>
    %cst_42 = arith.constant 0.000000e+00 : f32
    %177 = vector.shape_cast %176 : vector<1x256xi1> to vector<1x256xi1>
    %178 = vector.broadcast %177 : vector<1x256xi1> to vector<2x256xi1>
    %179 = vector.broadcast %cst_42 : f32 to vector<2x256xf32>
    %180 = arith.select %178, %175, %179 : vector<2x256xi1>, vector<2x256xf32>
    %181 = arith.addf %166, %180 : vector<2x256xf32>
    %c47_i32 = arith.constant 47 : i32
    %182 = tpu.dynamic_rotate %46 by %c47_i32 dim 1 : vector<2x256xf32>, i32 -> vector<2x256xf32>
    %c47_i32_43 = arith.constant 47 : i32
    %183 = tpu.dynamic_rotate %47 by %c47_i32_43 dim 1 : vector<2x256xf32>, i32 -> vector<2x256xf32>
    %c4 = arith.constant 4 : index
    %184 = memref.load %arg4[%c4] : memref<98xf32, #tpu.memory_space<smem>>
    %c53 = arith.constant 53 : index
    %185 = memref.load %arg4[%c53] : memref<98xf32, #tpu.memory_space<smem>>
    %186 = vector.broadcast %184 : f32 to vector<2x256xf32>
    %187 = arith.mulf %186, %182 : vector<2x256xf32>
    %188 = vector.broadcast %185 : f32 to vector<2x256xf32>
    %189 = arith.mulf %188, %183 : vector<2x256xf32>
    %190 = arith.addf %187, %189 : vector<2x256xf32>
    %191 = arith.andi %55, %100 : vector<1x256xi1>
    %cst_44 = arith.constant 0.000000e+00 : f32
    %192 = vector.shape_cast %191 : vector<1x256xi1> to vector<1x256xi1>
    %193 = vector.broadcast %192 : vector<1x256xi1> to vector<2x256xi1>
    %194 = vector.broadcast %cst_44 : f32 to vector<2x256xf32>
    %195 = arith.select %193, %190, %194 : vector<2x256xi1>, vector<2x256xf32>
    %196 = arith.addf %181, %195 : vector<2x256xf32>
    %c46_i32 = arith.constant 46 : i32
    %197 = tpu.dynamic_rotate %46 by %c46_i32 dim 1 : vector<2x256xf32>, i32 -> vector<2x256xf32>
    %c46_i32_45 = arith.constant 46 : i32
    %198 = tpu.dynamic_rotate %47 by %c46_i32_45 dim 1 : vector<2x256xf32>, i32 -> vector<2x256xf32>
    %c5 = arith.constant 5 : index
    %199 = memref.load %arg4[%c5] : memref<98xf32, #tpu.memory_space<smem>>
    %c54 = arith.constant 54 : index
    %200 = memref.load %arg4[%c54] : memref<98xf32, #tpu.memory_space<smem>>
    %201 = vector.broadcast %199 : f32 to vector<2x256xf32>
    %202 = arith.mulf %201, %197 : vector<2x256xf32>
    %203 = vector.broadcast %200 : f32 to vector<2x256xf32>
    %204 = arith.mulf %203, %198 : vector<2x256xf32>
    %205 = arith.addf %202, %204 : vector<2x256xf32>
    %206 = arith.andi %55, %110 : vector<1x256xi1>
    %cst_46 = arith.constant 0.000000e+00 : f32
    %207 = vector.shape_cast %206 : vector<1x256xi1> to vector<1x256xi1>
    %208 = vector.broadcast %207 : vector<1x256xi1> to vector<2x256xi1>
    %209 = vector.broadcast %cst_46 : f32 to vector<2x256xf32>
    %210 = arith.select %208, %205, %209 : vector<2x256xi1>, vector<2x256xf32>
    %211 = arith.addf %196, %210 : vector<2x256xf32>
    %c45_i32 = arith.constant 45 : i32
    %212 = tpu.dynamic_rotate %46 by %c45_i32 dim 1 : vector<2x256xf32>, i32 -> vector<2x256xf32>
    %c45_i32_47 = arith.constant 45 : i32
    %213 = tpu.dynamic_rotate %47 by %c45_i32_47 dim 1 : vector<2x256xf32>, i32 -> vector<2x256xf32>
    %c6 = arith.constant 6 : index
    %214 = memref.load %arg4[%c6] : memref<98xf32, #tpu.memory_space<smem>>
    %c55 = arith.constant 55 : index
    %215 = memref.load %arg4[%c55] : memref<98xf32, #tpu.memory_space<smem>>
    %216 = vector.broadcast %214 : f32 to vector<2x256xf32>
    %217 = arith.mulf %216, %212 : vector<2x256xf32>
    %218 = vector.broadcast %215 : f32 to vector<2x256xf32>
    %219 = arith.mulf %218, %213 : vector<2x256xf32>
    %220 = arith.addf %217, %219 : vector<2x256xf32>
    %221 = arith.andi %55, %120 : vector<1x256xi1>
    %cst_48 = arith.constant 0.000000e+00 : f32
    %222 = vector.shape_cast %221 : vector<1x256xi1> to vector<1x256xi1>
    %223 = vector.broadcast %222 : vector<1x256xi1> to vector<2x256xi1>
    %224 = vector.broadcast %cst_48 : f32 to vector<2x256xf32>
    %225 = arith.select %223, %220, %224 : vector<2x256xi1>, vector<2x256xf32>
    %226 = arith.addf %211, %225 : vector<2x256xf32>
    %c35_i32 = arith.constant 35 : i32
    %227 = tpu.dynamic_rotate %46 by %c35_i32 dim 1 : vector<2x256xf32>, i32 -> vector<2x256xf32>
    %c35_i32_49 = arith.constant 35 : i32
    %228 = tpu.dynamic_rotate %47 by %c35_i32_49 dim 1 : vector<2x256xf32>, i32 -> vector<2x256xf32>
    %c7 = arith.constant 7 : index
    %229 = memref.load %arg4[%c7] : memref<98xf32, #tpu.memory_space<smem>>
    %c56 = arith.constant 56 : index
    %230 = memref.load %arg4[%c56] : memref<98xf32, #tpu.memory_space<smem>>
    %231 = vector.broadcast %229 : f32 to vector<2x256xf32>
    %232 = arith.mulf %231, %227 : vector<2x256xf32>
    %233 = vector.broadcast %230 : f32 to vector<2x256xf32>
    %234 = arith.mulf %233, %228 : vector<2x256xf32>
    %235 = arith.addf %232, %234 : vector<2x256xf32>
    %236 = arith.andi %65, %60 : vector<1x256xi1>
    %cst_50 = arith.constant 0.000000e+00 : f32
    %237 = vector.shape_cast %236 : vector<1x256xi1> to vector<1x256xi1>
    %238 = vector.broadcast %237 : vector<1x256xi1> to vector<2x256xi1>
    %239 = vector.broadcast %cst_50 : f32 to vector<2x256xf32>
    %240 = arith.select %238, %235, %239 : vector<2x256xi1>, vector<2x256xf32>
    %241 = arith.addf %226, %240 : vector<2x256xf32>
    %c34_i32 = arith.constant 34 : i32
    %242 = tpu.dynamic_rotate %46 by %c34_i32 dim 1 : vector<2x256xf32>, i32 -> vector<2x256xf32>
    %c34_i32_51 = arith.constant 34 : i32
    %243 = tpu.dynamic_rotate %47 by %c34_i32_51 dim 1 : vector<2x256xf32>, i32 -> vector<2x256xf32>
    %c8 = arith.constant 8 : index
    %244 = memref.load %arg4[%c8] : memref<98xf32, #tpu.memory_space<smem>>
    %c57 = arith.constant 57 : index
    %245 = memref.load %arg4[%c57] : memref<98xf32, #tpu.memory_space<smem>>
    %246 = vector.broadcast %244 : f32 to vector<2x256xf32>
    %247 = arith.mulf %246, %242 : vector<2x256xf32>
    %248 = vector.broadcast %245 : f32 to vector<2x256xf32>
    %249 = arith.mulf %248, %243 : vector<2x256xf32>
    %250 = arith.addf %247, %249 : vector<2x256xf32>
    %251 = arith.andi %65, %70 : vector<1x256xi1>
    %cst_52 = arith.constant 0.000000e+00 : f32
    %252 = vector.shape_cast %251 : vector<1x256xi1> to vector<1x256xi1>
    %253 = vector.broadcast %252 : vector<1x256xi1> to vector<2x256xi1>
    %254 = vector.broadcast %cst_52 : f32 to vector<2x256xf32>
    %255 = arith.select %253, %250, %254 : vector<2x256xi1>, vector<2x256xf32>
    %256 = arith.addf %241, %255 : vector<2x256xf32>
    %c33_i32 = arith.constant 33 : i32
    %257 = tpu.dynamic_rotate %46 by %c33_i32 dim 1 : vector<2x256xf32>, i32 -> vector<2x256xf32>
    %c33_i32_53 = arith.constant 33 : i32
    %258 = tpu.dynamic_rotate %47 by %c33_i32_53 dim 1 : vector<2x256xf32>, i32 -> vector<2x256xf32>
    %c9 = arith.constant 9 : index
    %259 = memref.load %arg4[%c9] : memref<98xf32, #tpu.memory_space<smem>>
    %c58 = arith.constant 58 : index
    %260 = memref.load %arg4[%c58] : memref<98xf32, #tpu.memory_space<smem>>
    %261 = vector.broadcast %259 : f32 to vector<2x256xf32>
    %262 = arith.mulf %261, %257 : vector<2x256xf32>
    %263 = vector.broadcast %260 : f32 to vector<2x256xf32>
    %264 = arith.mulf %263, %258 : vector<2x256xf32>
    %265 = arith.addf %262, %264 : vector<2x256xf32>
    %266 = arith.andi %65, %80 : vector<1x256xi1>
    %cst_54 = arith.constant 0.000000e+00 : f32
    %267 = vector.shape_cast %266 : vector<1x256xi1> to vector<1x256xi1>
    %268 = vector.broadcast %267 : vector<1x256xi1> to vector<2x256xi1>
    %269 = vector.broadcast %cst_54 : f32 to vector<2x256xf32>
    %270 = arith.select %268, %265, %269 : vector<2x256xi1>, vector<2x256xf32>
    %271 = arith.addf %256, %270 : vector<2x256xf32>
    %c32_i32_55 = arith.constant 32 : i32
    %272 = tpu.dynamic_rotate %46 by %c32_i32_55 dim 1 : vector<2x256xf32>, i32 -> vector<2x256xf32>
    %c32_i32_56 = arith.constant 32 : i32
    %273 = tpu.dynamic_rotate %47 by %c32_i32_56 dim 1 : vector<2x256xf32>, i32 -> vector<2x256xf32>
    %c10 = arith.constant 10 : index
    %274 = memref.load %arg4[%c10] : memref<98xf32, #tpu.memory_space<smem>>
    %c59 = arith.constant 59 : index
    %275 = memref.load %arg4[%c59] : memref<98xf32, #tpu.memory_space<smem>>
    %276 = vector.broadcast %274 : f32 to vector<2x256xf32>
    %277 = arith.mulf %276, %272 : vector<2x256xf32>
    %278 = vector.broadcast %275 : f32 to vector<2x256xf32>
    %279 = arith.mulf %278, %273 : vector<2x256xf32>
    %280 = arith.addf %277, %279 : vector<2x256xf32>
    %281 = arith.andi %65, %90 : vector<1x256xi1>
    %cst_57 = arith.constant 0.000000e+00 : f32
    %282 = vector.shape_cast %281 : vector<1x256xi1> to vector<1x256xi1>
    %283 = vector.broadcast %282 : vector<1x256xi1> to vector<2x256xi1>
    %284 = vector.broadcast %cst_57 : f32 to vector<2x256xf32>
    %285 = arith.select %283, %280, %284 : vector<2x256xi1>, vector<2x256xf32>
    %286 = arith.addf %271, %285 : vector<2x256xf32>
    %c31_i32 = arith.constant 31 : i32
    %287 = tpu.dynamic_rotate %46 by %c31_i32 dim 1 : vector<2x256xf32>, i32 -> vector<2x256xf32>
    %c31_i32_58 = arith.constant 31 : i32
    %288 = tpu.dynamic_rotate %47 by %c31_i32_58 dim 1 : vector<2x256xf32>, i32 -> vector<2x256xf32>
    %c11 = arith.constant 11 : index
    %289 = memref.load %arg4[%c11] : memref<98xf32, #tpu.memory_space<smem>>
    %c60 = arith.constant 60 : index
    %290 = memref.load %arg4[%c60] : memref<98xf32, #tpu.memory_space<smem>>
    %291 = vector.broadcast %289 : f32 to vector<2x256xf32>
    %292 = arith.mulf %291, %287 : vector<2x256xf32>
    %293 = vector.broadcast %290 : f32 to vector<2x256xf32>
    %294 = arith.mulf %293, %288 : vector<2x256xf32>
    %295 = arith.addf %292, %294 : vector<2x256xf32>
    %296 = arith.andi %65, %100 : vector<1x256xi1>
    %cst_59 = arith.constant 0.000000e+00 : f32
    %297 = vector.shape_cast %296 : vector<1x256xi1> to vector<1x256xi1>
    %298 = vector.broadcast %297 : vector<1x256xi1> to vector<2x256xi1>
    %299 = vector.broadcast %cst_59 : f32 to vector<2x256xf32>
    %300 = arith.select %298, %295, %299 : vector<2x256xi1>, vector<2x256xf32>
    %301 = arith.addf %286, %300 : vector<2x256xf32>
    %c30_i32 = arith.constant 30 : i32
    %302 = tpu.dynamic_rotate %46 by %c30_i32 dim 1 : vector<2x256xf32>, i32 -> vector<2x256xf32>
    %c30_i32_60 = arith.constant 30 : i32
    %303 = tpu.dynamic_rotate %47 by %c30_i32_60 dim 1 : vector<2x256xf32>, i32 -> vector<2x256xf32>
    %c12 = arith.constant 12 : index
    %304 = memref.load %arg4[%c12] : memref<98xf32, #tpu.memory_space<smem>>
    %c61 = arith.constant 61 : index
    %305 = memref.load %arg4[%c61] : memref<98xf32, #tpu.memory_space<smem>>
    %306 = vector.broadcast %304 : f32 to vector<2x256xf32>
    %307 = arith.mulf %306, %302 : vector<2x256xf32>
    %308 = vector.broadcast %305 : f32 to vector<2x256xf32>
    %309 = arith.mulf %308, %303 : vector<2x256xf32>
    %310 = arith.addf %307, %309 : vector<2x256xf32>
    %311 = arith.andi %65, %110 : vector<1x256xi1>
    %cst_61 = arith.constant 0.000000e+00 : f32
    %312 = vector.shape_cast %311 : vector<1x256xi1> to vector<1x256xi1>
    %313 = vector.broadcast %312 : vector<1x256xi1> to vector<2x256xi1>
    %314 = vector.broadcast %cst_61 : f32 to vector<2x256xf32>
    %315 = arith.select %313, %310, %314 : vector<2x256xi1>, vector<2x256xf32>
    %316 = arith.addf %301, %315 : vector<2x256xf32>
    %c29_i32 = arith.constant 29 : i32
    %317 = tpu.dynamic_rotate %46 by %c29_i32 dim 1 : vector<2x256xf32>, i32 -> vector<2x256xf32>
    %c29_i32_62 = arith.constant 29 : i32
    %318 = tpu.dynamic_rotate %47 by %c29_i32_62 dim 1 : vector<2x256xf32>, i32 -> vector<2x256xf32>
    %c13 = arith.constant 13 : index
    %319 = memref.load %arg4[%c13] : memref<98xf32, #tpu.memory_space<smem>>
    %c62 = arith.constant 62 : index
    %320 = memref.load %arg4[%c62] : memref<98xf32, #tpu.memory_space<smem>>
    %321 = vector.broadcast %319 : f32 to vector<2x256xf32>
    %322 = arith.mulf %321, %317 : vector<2x256xf32>
    %323 = vector.broadcast %320 : f32 to vector<2x256xf32>
    %324 = arith.mulf %323, %318 : vector<2x256xf32>
    %325 = arith.addf %322, %324 : vector<2x256xf32>
    %326 = arith.andi %65, %120 : vector<1x256xi1>
    %cst_63 = arith.constant 0.000000e+00 : f32
    %327 = vector.shape_cast %326 : vector<1x256xi1> to vector<1x256xi1>
    %328 = vector.broadcast %327 : vector<1x256xi1> to vector<2x256xi1>
    %329 = vector.broadcast %cst_63 : f32 to vector<2x256xf32>
    %330 = arith.select %328, %325, %329 : vector<2x256xi1>, vector<2x256xf32>
    %331 = arith.addf %316, %330 : vector<2x256xf32>
    %c19_i32 = arith.constant 19 : i32
    %332 = tpu.dynamic_rotate %46 by %c19_i32 dim 1 : vector<2x256xf32>, i32 -> vector<2x256xf32>
    %c19_i32_64 = arith.constant 19 : i32
    %333 = tpu.dynamic_rotate %47 by %c19_i32_64 dim 1 : vector<2x256xf32>, i32 -> vector<2x256xf32>
    %c14 = arith.constant 14 : index
    %334 = memref.load %arg4[%c14] : memref<98xf32, #tpu.memory_space<smem>>
    %c63 = arith.constant 63 : index
    %335 = memref.load %arg4[%c63] : memref<98xf32, #tpu.memory_space<smem>>
    %336 = vector.broadcast %334 : f32 to vector<2x256xf32>
    %337 = arith.mulf %336, %332 : vector<2x256xf32>
    %338 = vector.broadcast %335 : f32 to vector<2x256xf32>
    %339 = arith.mulf %338, %333 : vector<2x256xf32>
    %340 = arith.addf %337, %339 : vector<2x256xf32>
    %341 = arith.andi %75, %60 : vector<1x256xi1>
    %cst_65 = arith.constant 0.000000e+00 : f32
    %342 = vector.shape_cast %341 : vector<1x256xi1> to vector<1x256xi1>
    %343 = vector.broadcast %342 : vector<1x256xi1> to vector<2x256xi1>
    %344 = vector.broadcast %cst_65 : f32 to vector<2x256xf32>
    %345 = arith.select %343, %340, %344 : vector<2x256xi1>, vector<2x256xf32>
    %346 = arith.addf %331, %345 : vector<2x256xf32>
    %c18_i32 = arith.constant 18 : i32
    %347 = tpu.dynamic_rotate %46 by %c18_i32 dim 1 : vector<2x256xf32>, i32 -> vector<2x256xf32>
    %c18_i32_66 = arith.constant 18 : i32
    %348 = tpu.dynamic_rotate %47 by %c18_i32_66 dim 1 : vector<2x256xf32>, i32 -> vector<2x256xf32>
    %c15 = arith.constant 15 : index
    %349 = memref.load %arg4[%c15] : memref<98xf32, #tpu.memory_space<smem>>
    %c64 = arith.constant 64 : index
    %350 = memref.load %arg4[%c64] : memref<98xf32, #tpu.memory_space<smem>>
    %351 = vector.broadcast %349 : f32 to vector<2x256xf32>
    %352 = arith.mulf %351, %347 : vector<2x256xf32>
    %353 = vector.broadcast %350 : f32 to vector<2x256xf32>
    %354 = arith.mulf %353, %348 : vector<2x256xf32>
    %355 = arith.addf %352, %354 : vector<2x256xf32>
    %356 = arith.andi %75, %70 : vector<1x256xi1>
    %cst_67 = arith.constant 0.000000e+00 : f32
    %357 = vector.shape_cast %356 : vector<1x256xi1> to vector<1x256xi1>
    %358 = vector.broadcast %357 : vector<1x256xi1> to vector<2x256xi1>
    %359 = vector.broadcast %cst_67 : f32 to vector<2x256xf32>
    %360 = arith.select %358, %355, %359 : vector<2x256xi1>, vector<2x256xf32>
    %361 = arith.addf %346, %360 : vector<2x256xf32>
    %c17_i32 = arith.constant 17 : i32
    %362 = tpu.dynamic_rotate %46 by %c17_i32 dim 1 : vector<2x256xf32>, i32 -> vector<2x256xf32>
    %c17_i32_68 = arith.constant 17 : i32
    %363 = tpu.dynamic_rotate %47 by %c17_i32_68 dim 1 : vector<2x256xf32>, i32 -> vector<2x256xf32>
    %c16 = arith.constant 16 : index
    %364 = memref.load %arg4[%c16] : memref<98xf32, #tpu.memory_space<smem>>
    %c65 = arith.constant 65 : index
    %365 = memref.load %arg4[%c65] : memref<98xf32, #tpu.memory_space<smem>>
    %366 = vector.broadcast %364 : f32 to vector<2x256xf32>
    %367 = arith.mulf %366, %362 : vector<2x256xf32>
    %368 = vector.broadcast %365 : f32 to vector<2x256xf32>
    %369 = arith.mulf %368, %363 : vector<2x256xf32>
    %370 = arith.addf %367, %369 : vector<2x256xf32>
    %371 = arith.andi %75, %80 : vector<1x256xi1>
    %cst_69 = arith.constant 0.000000e+00 : f32
    %372 = vector.shape_cast %371 : vector<1x256xi1> to vector<1x256xi1>
    %373 = vector.broadcast %372 : vector<1x256xi1> to vector<2x256xi1>
    %374 = vector.broadcast %cst_69 : f32 to vector<2x256xf32>
    %375 = arith.select %373, %370, %374 : vector<2x256xi1>, vector<2x256xf32>
    %376 = arith.addf %361, %375 : vector<2x256xf32>
    %c16_i32_70 = arith.constant 16 : i32
    %377 = tpu.dynamic_rotate %46 by %c16_i32_70 dim 1 : vector<2x256xf32>, i32 -> vector<2x256xf32>
    %c16_i32_71 = arith.constant 16 : i32
    %378 = tpu.dynamic_rotate %47 by %c16_i32_71 dim 1 : vector<2x256xf32>, i32 -> vector<2x256xf32>
    %c17 = arith.constant 17 : index
    %379 = memref.load %arg4[%c17] : memref<98xf32, #tpu.memory_space<smem>>
    %c66 = arith.constant 66 : index
    %380 = memref.load %arg4[%c66] : memref<98xf32, #tpu.memory_space<smem>>
    %381 = vector.broadcast %379 : f32 to vector<2x256xf32>
    %382 = arith.mulf %381, %377 : vector<2x256xf32>
    %383 = vector.broadcast %380 : f32 to vector<2x256xf32>
    %384 = arith.mulf %383, %378 : vector<2x256xf32>
    %385 = arith.addf %382, %384 : vector<2x256xf32>
    %386 = arith.andi %75, %90 : vector<1x256xi1>
    %cst_72 = arith.constant 0.000000e+00 : f32
    %387 = vector.shape_cast %386 : vector<1x256xi1> to vector<1x256xi1>
    %388 = vector.broadcast %387 : vector<1x256xi1> to vector<2x256xi1>
    %389 = vector.broadcast %cst_72 : f32 to vector<2x256xf32>
    %390 = arith.select %388, %385, %389 : vector<2x256xi1>, vector<2x256xf32>
    %391 = arith.addf %376, %390 : vector<2x256xf32>
    %c15_i32_73 = arith.constant 15 : i32
    %392 = tpu.dynamic_rotate %46 by %c15_i32_73 dim 1 : vector<2x256xf32>, i32 -> vector<2x256xf32>
    %c15_i32_74 = arith.constant 15 : i32
    %393 = tpu.dynamic_rotate %47 by %c15_i32_74 dim 1 : vector<2x256xf32>, i32 -> vector<2x256xf32>
    %c18 = arith.constant 18 : index
    %394 = memref.load %arg4[%c18] : memref<98xf32, #tpu.memory_space<smem>>
    %c67 = arith.constant 67 : index
    %395 = memref.load %arg4[%c67] : memref<98xf32, #tpu.memory_space<smem>>
    %396 = vector.broadcast %394 : f32 to vector<2x256xf32>
    %397 = arith.mulf %396, %392 : vector<2x256xf32>
    %398 = vector.broadcast %395 : f32 to vector<2x256xf32>
    %399 = arith.mulf %398, %393 : vector<2x256xf32>
    %400 = arith.addf %397, %399 : vector<2x256xf32>
    %401 = arith.andi %75, %100 : vector<1x256xi1>
    %cst_75 = arith.constant 0.000000e+00 : f32
    %402 = vector.shape_cast %401 : vector<1x256xi1> to vector<1x256xi1>
    %403 = vector.broadcast %402 : vector<1x256xi1> to vector<2x256xi1>
    %404 = vector.broadcast %cst_75 : f32 to vector<2x256xf32>
    %405 = arith.select %403, %400, %404 : vector<2x256xi1>, vector<2x256xf32>
    %406 = arith.addf %391, %405 : vector<2x256xf32>
    %c14_i32_76 = arith.constant 14 : i32
    %407 = tpu.dynamic_rotate %46 by %c14_i32_76 dim 1 : vector<2x256xf32>, i32 -> vector<2x256xf32>
    %c14_i32_77 = arith.constant 14 : i32
    %408 = tpu.dynamic_rotate %47 by %c14_i32_77 dim 1 : vector<2x256xf32>, i32 -> vector<2x256xf32>
    %c19 = arith.constant 19 : index
    %409 = memref.load %arg4[%c19] : memref<98xf32, #tpu.memory_space<smem>>
    %c68 = arith.constant 68 : index
    %410 = memref.load %arg4[%c68] : memref<98xf32, #tpu.memory_space<smem>>
    %411 = vector.broadcast %409 : f32 to vector<2x256xf32>
    %412 = arith.mulf %411, %407 : vector<2x256xf32>
    %413 = vector.broadcast %410 : f32 to vector<2x256xf32>
    %414 = arith.mulf %413, %408 : vector<2x256xf32>
    %415 = arith.addf %412, %414 : vector<2x256xf32>
    %416 = arith.andi %75, %110 : vector<1x256xi1>
    %cst_78 = arith.constant 0.000000e+00 : f32
    %417 = vector.shape_cast %416 : vector<1x256xi1> to vector<1x256xi1>
    %418 = vector.broadcast %417 : vector<1x256xi1> to vector<2x256xi1>
    %419 = vector.broadcast %cst_78 : f32 to vector<2x256xf32>
    %420 = arith.select %418, %415, %419 : vector<2x256xi1>, vector<2x256xf32>
    %421 = arith.addf %406, %420 : vector<2x256xf32>
    %c13_i32_79 = arith.constant 13 : i32
    %422 = tpu.dynamic_rotate %46 by %c13_i32_79 dim 1 : vector<2x256xf32>, i32 -> vector<2x256xf32>
    %c13_i32_80 = arith.constant 13 : i32
    %423 = tpu.dynamic_rotate %47 by %c13_i32_80 dim 1 : vector<2x256xf32>, i32 -> vector<2x256xf32>
    %c20 = arith.constant 20 : index
    %424 = memref.load %arg4[%c20] : memref<98xf32, #tpu.memory_space<smem>>
    %c69 = arith.constant 69 : index
    %425 = memref.load %arg4[%c69] : memref<98xf32, #tpu.memory_space<smem>>
    %426 = vector.broadcast %424 : f32 to vector<2x256xf32>
    %427 = arith.mulf %426, %422 : vector<2x256xf32>
    %428 = vector.broadcast %425 : f32 to vector<2x256xf32>
    %429 = arith.mulf %428, %423 : vector<2x256xf32>
    %430 = arith.addf %427, %429 : vector<2x256xf32>
    %431 = arith.andi %75, %120 : vector<1x256xi1>
    %cst_81 = arith.constant 0.000000e+00 : f32
    %432 = vector.shape_cast %431 : vector<1x256xi1> to vector<1x256xi1>
    %433 = vector.broadcast %432 : vector<1x256xi1> to vector<2x256xi1>
    %434 = vector.broadcast %cst_81 : f32 to vector<2x256xf32>
    %435 = arith.select %433, %430, %434 : vector<2x256xi1>, vector<2x256xf32>
    %436 = arith.addf %421, %435 : vector<2x256xf32>
    %c3_i32_82 = arith.constant 3 : i32
    %437 = tpu.dynamic_rotate %46 by %c3_i32_82 dim 1 : vector<2x256xf32>, i32 -> vector<2x256xf32>
    %c3_i32_83 = arith.constant 3 : i32
    %438 = tpu.dynamic_rotate %47 by %c3_i32_83 dim 1 : vector<2x256xf32>, i32 -> vector<2x256xf32>
    %c21 = arith.constant 21 : index
    %439 = memref.load %arg4[%c21] : memref<98xf32, #tpu.memory_space<smem>>
    %c70 = arith.constant 70 : index
    %440 = memref.load %arg4[%c70] : memref<98xf32, #tpu.memory_space<smem>>
    %441 = vector.broadcast %439 : f32 to vector<2x256xf32>
    %442 = arith.mulf %441, %437 : vector<2x256xf32>
    %443 = vector.broadcast %440 : f32 to vector<2x256xf32>
    %444 = arith.mulf %443, %438 : vector<2x256xf32>
    %445 = arith.addf %442, %444 : vector<2x256xf32>
    %446 = arith.andi %85, %60 : vector<1x256xi1>
    %cst_84 = arith.constant 0.000000e+00 : f32
    %447 = vector.shape_cast %446 : vector<1x256xi1> to vector<1x256xi1>
    %448 = vector.broadcast %447 : vector<1x256xi1> to vector<2x256xi1>
    %449 = vector.broadcast %cst_84 : f32 to vector<2x256xf32>
    %450 = arith.select %448, %445, %449 : vector<2x256xi1>, vector<2x256xf32>
    %451 = arith.addf %436, %450 : vector<2x256xf32>
    %c2_i32_85 = arith.constant 2 : i32
    %452 = tpu.dynamic_rotate %46 by %c2_i32_85 dim 1 : vector<2x256xf32>, i32 -> vector<2x256xf32>
    %c2_i32_86 = arith.constant 2 : i32
    %453 = tpu.dynamic_rotate %47 by %c2_i32_86 dim 1 : vector<2x256xf32>, i32 -> vector<2x256xf32>
    %c22 = arith.constant 22 : index
    %454 = memref.load %arg4[%c22] : memref<98xf32, #tpu.memory_space<smem>>
    %c71 = arith.constant 71 : index
    %455 = memref.load %arg4[%c71] : memref<98xf32, #tpu.memory_space<smem>>
    %456 = vector.broadcast %454 : f32 to vector<2x256xf32>
    %457 = arith.mulf %456, %452 : vector<2x256xf32>
    %458 = vector.broadcast %455 : f32 to vector<2x256xf32>
    %459 = arith.mulf %458, %453 : vector<2x256xf32>
    %460 = arith.addf %457, %459 : vector<2x256xf32>
    %461 = arith.andi %85, %70 : vector<1x256xi1>
    %cst_87 = arith.constant 0.000000e+00 : f32
    %462 = vector.shape_cast %461 : vector<1x256xi1> to vector<1x256xi1>
    %463 = vector.broadcast %462 : vector<1x256xi1> to vector<2x256xi1>
    %464 = vector.broadcast %cst_87 : f32 to vector<2x256xf32>
    %465 = arith.select %463, %460, %464 : vector<2x256xi1>, vector<2x256xf32>
    %466 = arith.addf %451, %465 : vector<2x256xf32>
    %c1_i32_88 = arith.constant 1 : i32
    %467 = tpu.dynamic_rotate %46 by %c1_i32_88 dim 1 : vector<2x256xf32>, i32 -> vector<2x256xf32>
    %c1_i32_89 = arith.constant 1 : i32
    %468 = tpu.dynamic_rotate %47 by %c1_i32_89 dim 1 : vector<2x256xf32>, i32 -> vector<2x256xf32>
    %c23 = arith.constant 23 : index
    %469 = memref.load %arg4[%c23] : memref<98xf32, #tpu.memory_space<smem>>
    %c72 = arith.constant 72 : index
    %470 = memref.load %arg4[%c72] : memref<98xf32, #tpu.memory_space<smem>>
    %471 = vector.broadcast %469 : f32 to vector<2x256xf32>
    %472 = arith.mulf %471, %467 : vector<2x256xf32>
    %473 = vector.broadcast %470 : f32 to vector<2x256xf32>
    %474 = arith.mulf %473, %468 : vector<2x256xf32>
    %475 = arith.addf %472, %474 : vector<2x256xf32>
    %476 = arith.andi %85, %80 : vector<1x256xi1>
    %cst_90 = arith.constant 0.000000e+00 : f32
    %477 = vector.shape_cast %476 : vector<1x256xi1> to vector<1x256xi1>
    %478 = vector.broadcast %477 : vector<1x256xi1> to vector<2x256xi1>
    %479 = vector.broadcast %cst_90 : f32 to vector<2x256xf32>
    %480 = arith.select %478, %475, %479 : vector<2x256xi1>, vector<2x256xf32>
    %481 = arith.addf %466, %480 : vector<2x256xf32>
    %c24 = arith.constant 24 : index
    %482 = memref.load %arg4[%c24] : memref<98xf32, #tpu.memory_space<smem>>
    %c73 = arith.constant 73 : index
    %483 = memref.load %arg4[%c73] : memref<98xf32, #tpu.memory_space<smem>>
    %484 = vector.broadcast %482 : f32 to vector<2x256xf32>
    %485 = arith.mulf %484, %46 : vector<2x256xf32>
    %486 = vector.broadcast %483 : f32 to vector<2x256xf32>
    %487 = arith.mulf %486, %47 : vector<2x256xf32>
    %488 = arith.addf %485, %487 : vector<2x256xf32>
    %489 = arith.andi %85, %90 : vector<1x256xi1>
    %cst_91 = arith.constant 0.000000e+00 : f32
    %490 = vector.shape_cast %489 : vector<1x256xi1> to vector<1x256xi1>
    %491 = vector.broadcast %490 : vector<1x256xi1> to vector<2x256xi1>
    %492 = vector.broadcast %cst_91 : f32 to vector<2x256xf32>
    %493 = arith.select %491, %488, %492 : vector<2x256xi1>, vector<2x256xf32>
    %494 = arith.addf %481, %493 : vector<2x256xf32>
    %c255_i32 = arith.constant 255 : i32
    %495 = tpu.dynamic_rotate %46 by %c255_i32 dim 1 : vector<2x256xf32>, i32 -> vector<2x256xf32>
    %c255_i32_92 = arith.constant 255 : i32
    %496 = tpu.dynamic_rotate %47 by %c255_i32_92 dim 1 : vector<2x256xf32>, i32 -> vector<2x256xf32>
    %c25 = arith.constant 25 : index
    %497 = memref.load %arg4[%c25] : memref<98xf32, #tpu.memory_space<smem>>
    %c74 = arith.constant 74 : index
    %498 = memref.load %arg4[%c74] : memref<98xf32, #tpu.memory_space<smem>>
    %499 = vector.broadcast %497 : f32 to vector<2x256xf32>
    %500 = arith.mulf %499, %495 : vector<2x256xf32>
    %501 = vector.broadcast %498 : f32 to vector<2x256xf32>
    %502 = arith.mulf %501, %496 : vector<2x256xf32>
    %503 = arith.addf %500, %502 : vector<2x256xf32>
    %504 = arith.andi %85, %100 : vector<1x256xi1>
    %cst_93 = arith.constant 0.000000e+00 : f32
    %505 = vector.shape_cast %504 : vector<1x256xi1> to vector<1x256xi1>
    %506 = vector.broadcast %505 : vector<1x256xi1> to vector<2x256xi1>
    %507 = vector.broadcast %cst_93 : f32 to vector<2x256xf32>
    %508 = arith.select %506, %503, %507 : vector<2x256xi1>, vector<2x256xf32>
    %509 = arith.addf %494, %508 : vector<2x256xf32>
    %c254_i32 = arith.constant 254 : i32
    %510 = tpu.dynamic_rotate %46 by %c254_i32 dim 1 : vector<2x256xf32>, i32 -> vector<2x256xf32>
    %c254_i32_94 = arith.constant 254 : i32
    %511 = tpu.dynamic_rotate %47 by %c254_i32_94 dim 1 : vector<2x256xf32>, i32 -> vector<2x256xf32>
    %c26 = arith.constant 26 : index
    %512 = memref.load %arg4[%c26] : memref<98xf32, #tpu.memory_space<smem>>
    %c75 = arith.constant 75 : index
    %513 = memref.load %arg4[%c75] : memref<98xf32, #tpu.memory_space<smem>>
    %514 = vector.broadcast %512 : f32 to vector<2x256xf32>
    %515 = arith.mulf %514, %510 : vector<2x256xf32>
    %516 = vector.broadcast %513 : f32 to vector<2x256xf32>
    %517 = arith.mulf %516, %511 : vector<2x256xf32>
    %518 = arith.addf %515, %517 : vector<2x256xf32>
    %519 = arith.andi %85, %110 : vector<1x256xi1>
    %cst_95 = arith.constant 0.000000e+00 : f32
    %520 = vector.shape_cast %519 : vector<1x256xi1> to vector<1x256xi1>
    %521 = vector.broadcast %520 : vector<1x256xi1> to vector<2x256xi1>
    %522 = vector.broadcast %cst_95 : f32 to vector<2x256xf32>
    %523 = arith.select %521, %518, %522 : vector<2x256xi1>, vector<2x256xf32>
    %524 = arith.addf %509, %523 : vector<2x256xf32>
    %c253_i32 = arith.constant 253 : i32
    %525 = tpu.dynamic_rotate %46 by %c253_i32 dim 1 : vector<2x256xf32>, i32 -> vector<2x256xf32>
    %c253_i32_96 = arith.constant 253 : i32
    %526 = tpu.dynamic_rotate %47 by %c253_i32_96 dim 1 : vector<2x256xf32>, i32 -> vector<2x256xf32>
    %c27 = arith.constant 27 : index
    %527 = memref.load %arg4[%c27] : memref<98xf32, #tpu.memory_space<smem>>
    %c76 = arith.constant 76 : index
    %528 = memref.load %arg4[%c76] : memref<98xf32, #tpu.memory_space<smem>>
    %529 = vector.broadcast %527 : f32 to vector<2x256xf32>
    %530 = arith.mulf %529, %525 : vector<2x256xf32>
    %531 = vector.broadcast %528 : f32 to vector<2x256xf32>
    %532 = arith.mulf %531, %526 : vector<2x256xf32>
    %533 = arith.addf %530, %532 : vector<2x256xf32>
    %534 = arith.andi %85, %120 : vector<1x256xi1>
    %cst_97 = arith.constant 0.000000e+00 : f32
    %535 = vector.shape_cast %534 : vector<1x256xi1> to vector<1x256xi1>
    %536 = vector.broadcast %535 : vector<1x256xi1> to vector<2x256xi1>
    %537 = vector.broadcast %cst_97 : f32 to vector<2x256xf32>
    %538 = arith.select %536, %533, %537 : vector<2x256xi1>, vector<2x256xf32>
    %539 = arith.addf %524, %538 : vector<2x256xf32>
    %c243_i32 = arith.constant 243 : i32
    %540 = tpu.dynamic_rotate %46 by %c243_i32 dim 1 : vector<2x256xf32>, i32 -> vector<2x256xf32>
    %c243_i32_98 = arith.constant 243 : i32
    %541 = tpu.dynamic_rotate %47 by %c243_i32_98 dim 1 : vector<2x256xf32>, i32 -> vector<2x256xf32>
    %c28 = arith.constant 28 : index
    %542 = memref.load %arg4[%c28] : memref<98xf32, #tpu.memory_space<smem>>
    %c77 = arith.constant 77 : index
    %543 = memref.load %arg4[%c77] : memref<98xf32, #tpu.memory_space<smem>>
    %544 = vector.broadcast %542 : f32 to vector<2x256xf32>
    %545 = arith.mulf %544, %540 : vector<2x256xf32>
    %546 = vector.broadcast %543 : f32 to vector<2x256xf32>
    %547 = arith.mulf %546, %541 : vector<2x256xf32>
    %548 = arith.addf %545, %547 : vector<2x256xf32>
    %549 = arith.andi %95, %60 : vector<1x256xi1>
    %cst_99 = arith.constant 0.000000e+00 : f32
    %550 = vector.shape_cast %549 : vector<1x256xi1> to vector<1x256xi1>
    %551 = vector.broadcast %550 : vector<1x256xi1> to vector<2x256xi1>
    %552 = vector.broadcast %cst_99 : f32 to vector<2x256xf32>
    %553 = arith.select %551, %548, %552 : vector<2x256xi1>, vector<2x256xf32>
    %554 = arith.addf %539, %553 : vector<2x256xf32>
    %c242_i32 = arith.constant 242 : i32
    %555 = tpu.dynamic_rotate %46 by %c242_i32 dim 1 : vector<2x256xf32>, i32 -> vector<2x256xf32>
    %c242_i32_100 = arith.constant 242 : i32
    %556 = tpu.dynamic_rotate %47 by %c242_i32_100 dim 1 : vector<2x256xf32>, i32 -> vector<2x256xf32>
    %c29 = arith.constant 29 : index
    %557 = memref.load %arg4[%c29] : memref<98xf32, #tpu.memory_space<smem>>
    %c78 = arith.constant 78 : index
    %558 = memref.load %arg4[%c78] : memref<98xf32, #tpu.memory_space<smem>>
    %559 = vector.broadcast %557 : f32 to vector<2x256xf32>
    %560 = arith.mulf %559, %555 : vector<2x256xf32>
    %561 = vector.broadcast %558 : f32 to vector<2x256xf32>
    %562 = arith.mulf %561, %556 : vector<2x256xf32>
    %563 = arith.addf %560, %562 : vector<2x256xf32>
    %564 = arith.andi %95, %70 : vector<1x256xi1>
    %cst_101 = arith.constant 0.000000e+00 : f32
    %565 = vector.shape_cast %564 : vector<1x256xi1> to vector<1x256xi1>
    %566 = vector.broadcast %565 : vector<1x256xi1> to vector<2x256xi1>
    %567 = vector.broadcast %cst_101 : f32 to vector<2x256xf32>
    %568 = arith.select %566, %563, %567 : vector<2x256xi1>, vector<2x256xf32>
    %569 = arith.addf %554, %568 : vector<2x256xf32>
    %c241_i32 = arith.constant 241 : i32
    %570 = tpu.dynamic_rotate %46 by %c241_i32 dim 1 : vector<2x256xf32>, i32 -> vector<2x256xf32>
    %c241_i32_102 = arith.constant 241 : i32
    %571 = tpu.dynamic_rotate %47 by %c241_i32_102 dim 1 : vector<2x256xf32>, i32 -> vector<2x256xf32>
    %c30 = arith.constant 30 : index
    %572 = memref.load %arg4[%c30] : memref<98xf32, #tpu.memory_space<smem>>
    %c79 = arith.constant 79 : index
    %573 = memref.load %arg4[%c79] : memref<98xf32, #tpu.memory_space<smem>>
    %574 = vector.broadcast %572 : f32 to vector<2x256xf32>
    %575 = arith.mulf %574, %570 : vector<2x256xf32>
    %576 = vector.broadcast %573 : f32 to vector<2x256xf32>
    %577 = arith.mulf %576, %571 : vector<2x256xf32>
    %578 = arith.addf %575, %577 : vector<2x256xf32>
    %579 = arith.andi %95, %80 : vector<1x256xi1>
    %cst_103 = arith.constant 0.000000e+00 : f32
    %580 = vector.shape_cast %579 : vector<1x256xi1> to vector<1x256xi1>
    %581 = vector.broadcast %580 : vector<1x256xi1> to vector<2x256xi1>
    %582 = vector.broadcast %cst_103 : f32 to vector<2x256xf32>
    %583 = arith.select %581, %578, %582 : vector<2x256xi1>, vector<2x256xf32>
    %584 = arith.addf %569, %583 : vector<2x256xf32>
    %c240_i32_104 = arith.constant 240 : i32
    %585 = tpu.dynamic_rotate %46 by %c240_i32_104 dim 1 : vector<2x256xf32>, i32 -> vector<2x256xf32>
    %c240_i32_105 = arith.constant 240 : i32
    %586 = tpu.dynamic_rotate %47 by %c240_i32_105 dim 1 : vector<2x256xf32>, i32 -> vector<2x256xf32>
    %c31 = arith.constant 31 : index
    %587 = memref.load %arg4[%c31] : memref<98xf32, #tpu.memory_space<smem>>
    %c80 = arith.constant 80 : index
    %588 = memref.load %arg4[%c80] : memref<98xf32, #tpu.memory_space<smem>>
    %589 = vector.broadcast %587 : f32 to vector<2x256xf32>
    %590 = arith.mulf %589, %585 : vector<2x256xf32>
    %591 = vector.broadcast %588 : f32 to vector<2x256xf32>
    %592 = arith.mulf %591, %586 : vector<2x256xf32>
    %593 = arith.addf %590, %592 : vector<2x256xf32>
    %594 = arith.andi %95, %90 : vector<1x256xi1>
    %cst_106 = arith.constant 0.000000e+00 : f32
    %595 = vector.shape_cast %594 : vector<1x256xi1> to vector<1x256xi1>
    %596 = vector.broadcast %595 : vector<1x256xi1> to vector<2x256xi1>
    %597 = vector.broadcast %cst_106 : f32 to vector<2x256xf32>
    %598 = arith.select %596, %593, %597 : vector<2x256xi1>, vector<2x256xf32>
    %599 = arith.addf %584, %598 : vector<2x256xf32>
    %c239_i32 = arith.constant 239 : i32
    %600 = tpu.dynamic_rotate %46 by %c239_i32 dim 1 : vector<2x256xf32>, i32 -> vector<2x256xf32>
    %c239_i32_107 = arith.constant 239 : i32
    %601 = tpu.dynamic_rotate %47 by %c239_i32_107 dim 1 : vector<2x256xf32>, i32 -> vector<2x256xf32>
    %c32 = arith.constant 32 : index
    %602 = memref.load %arg4[%c32] : memref<98xf32, #tpu.memory_space<smem>>
    %c81 = arith.constant 81 : index
    %603 = memref.load %arg4[%c81] : memref<98xf32, #tpu.memory_space<smem>>
    %604 = vector.broadcast %602 : f32 to vector<2x256xf32>
    %605 = arith.mulf %604, %600 : vector<2x256xf32>
    %606 = vector.broadcast %603 : f32 to vector<2x256xf32>
    %607 = arith.mulf %606, %601 : vector<2x256xf32>
    %608 = arith.addf %605, %607 : vector<2x256xf32>
    %609 = arith.andi %95, %100 : vector<1x256xi1>
    %cst_108 = arith.constant 0.000000e+00 : f32
    %610 = vector.shape_cast %609 : vector<1x256xi1> to vector<1x256xi1>
    %611 = vector.broadcast %610 : vector<1x256xi1> to vector<2x256xi1>
    %612 = vector.broadcast %cst_108 : f32 to vector<2x256xf32>
    %613 = arith.select %611, %608, %612 : vector<2x256xi1>, vector<2x256xf32>
    %614 = arith.addf %599, %613 : vector<2x256xf32>
    %c238_i32 = arith.constant 238 : i32
    %615 = tpu.dynamic_rotate %46 by %c238_i32 dim 1 : vector<2x256xf32>, i32 -> vector<2x256xf32>
    %c238_i32_109 = arith.constant 238 : i32
    %616 = tpu.dynamic_rotate %47 by %c238_i32_109 dim 1 : vector<2x256xf32>, i32 -> vector<2x256xf32>
    %c33 = arith.constant 33 : index
    %617 = memref.load %arg4[%c33] : memref<98xf32, #tpu.memory_space<smem>>
    %c82 = arith.constant 82 : index
    %618 = memref.load %arg4[%c82] : memref<98xf32, #tpu.memory_space<smem>>
    %619 = vector.broadcast %617 : f32 to vector<2x256xf32>
    %620 = arith.mulf %619, %615 : vector<2x256xf32>
    %621 = vector.broadcast %618 : f32 to vector<2x256xf32>
    %622 = arith.mulf %621, %616 : vector<2x256xf32>
    %623 = arith.addf %620, %622 : vector<2x256xf32>
    %624 = arith.andi %95, %110 : vector<1x256xi1>
    %cst_110 = arith.constant 0.000000e+00 : f32
    %625 = vector.shape_cast %624 : vector<1x256xi1> to vector<1x256xi1>
    %626 = vector.broadcast %625 : vector<1x256xi1> to vector<2x256xi1>
    %627 = vector.broadcast %cst_110 : f32 to vector<2x256xf32>
    %628 = arith.select %626, %623, %627 : vector<2x256xi1>, vector<2x256xf32>
    %629 = arith.addf %614, %628 : vector<2x256xf32>
    %c237_i32 = arith.constant 237 : i32
    %630 = tpu.dynamic_rotate %46 by %c237_i32 dim 1 : vector<2x256xf32>, i32 -> vector<2x256xf32>
    %c237_i32_111 = arith.constant 237 : i32
    %631 = tpu.dynamic_rotate %47 by %c237_i32_111 dim 1 : vector<2x256xf32>, i32 -> vector<2x256xf32>
    %c34 = arith.constant 34 : index
    %632 = memref.load %arg4[%c34] : memref<98xf32, #tpu.memory_space<smem>>
    %c83 = arith.constant 83 : index
    %633 = memref.load %arg4[%c83] : memref<98xf32, #tpu.memory_space<smem>>
    %634 = vector.broadcast %632 : f32 to vector<2x256xf32>
    %635 = arith.mulf %634, %630 : vector<2x256xf32>
    %636 = vector.broadcast %633 : f32 to vector<2x256xf32>
    %637 = arith.mulf %636, %631 : vector<2x256xf32>
    %638 = arith.addf %635, %637 : vector<2x256xf32>
    %639 = arith.andi %95, %120 : vector<1x256xi1>
    %cst_112 = arith.constant 0.000000e+00 : f32
    %640 = vector.shape_cast %639 : vector<1x256xi1> to vector<1x256xi1>
    %641 = vector.broadcast %640 : vector<1x256xi1> to vector<2x256xi1>
    %642 = vector.broadcast %cst_112 : f32 to vector<2x256xf32>
    %643 = arith.select %641, %638, %642 : vector<2x256xi1>, vector<2x256xf32>
    %644 = arith.addf %629, %643 : vector<2x256xf32>
    %c227_i32 = arith.constant 227 : i32
    %645 = tpu.dynamic_rotate %46 by %c227_i32 dim 1 : vector<2x256xf32>, i32 -> vector<2x256xf32>
    %c227_i32_113 = arith.constant 227 : i32
    %646 = tpu.dynamic_rotate %47 by %c227_i32_113 dim 1 : vector<2x256xf32>, i32 -> vector<2x256xf32>
    %c35 = arith.constant 35 : index
    %647 = memref.load %arg4[%c35] : memref<98xf32, #tpu.memory_space<smem>>
    %c84 = arith.constant 84 : index
    %648 = memref.load %arg4[%c84] : memref<98xf32, #tpu.memory_space<smem>>
    %649 = vector.broadcast %647 : f32 to vector<2x256xf32>
    %650 = arith.mulf %649, %645 : vector<2x256xf32>
    %651 = vector.broadcast %648 : f32 to vector<2x256xf32>
    %652 = arith.mulf %651, %646 : vector<2x256xf32>
    %653 = arith.addf %650, %652 : vector<2x256xf32>
    %654 = arith.andi %105, %60 : vector<1x256xi1>
    %cst_114 = arith.constant 0.000000e+00 : f32
    %655 = vector.shape_cast %654 : vector<1x256xi1> to vector<1x256xi1>
    %656 = vector.broadcast %655 : vector<1x256xi1> to vector<2x256xi1>
    %657 = vector.broadcast %cst_114 : f32 to vector<2x256xf32>
    %658 = arith.select %656, %653, %657 : vector<2x256xi1>, vector<2x256xf32>
    %659 = arith.addf %644, %658 : vector<2x256xf32>
    %c226_i32 = arith.constant 226 : i32
    %660 = tpu.dynamic_rotate %46 by %c226_i32 dim 1 : vector<2x256xf32>, i32 -> vector<2x256xf32>
    %c226_i32_115 = arith.constant 226 : i32
    %661 = tpu.dynamic_rotate %47 by %c226_i32_115 dim 1 : vector<2x256xf32>, i32 -> vector<2x256xf32>
    %c36 = arith.constant 36 : index
    %662 = memref.load %arg4[%c36] : memref<98xf32, #tpu.memory_space<smem>>
    %c85 = arith.constant 85 : index
    %663 = memref.load %arg4[%c85] : memref<98xf32, #tpu.memory_space<smem>>
    %664 = vector.broadcast %662 : f32 to vector<2x256xf32>
    %665 = arith.mulf %664, %660 : vector<2x256xf32>
    %666 = vector.broadcast %663 : f32 to vector<2x256xf32>
    %667 = arith.mulf %666, %661 : vector<2x256xf32>
    %668 = arith.addf %665, %667 : vector<2x256xf32>
    %669 = arith.andi %105, %70 : vector<1x256xi1>
    %cst_116 = arith.constant 0.000000e+00 : f32
    %670 = vector.shape_cast %669 : vector<1x256xi1> to vector<1x256xi1>
    %671 = vector.broadcast %670 : vector<1x256xi1> to vector<2x256xi1>
    %672 = vector.broadcast %cst_116 : f32 to vector<2x256xf32>
    %673 = arith.select %671, %668, %672 : vector<2x256xi1>, vector<2x256xf32>
    %674 = arith.addf %659, %673 : vector<2x256xf32>
    %c225_i32 = arith.constant 225 : i32
    %675 = tpu.dynamic_rotate %46 by %c225_i32 dim 1 : vector<2x256xf32>, i32 -> vector<2x256xf32>
    %c225_i32_117 = arith.constant 225 : i32
    %676 = tpu.dynamic_rotate %47 by %c225_i32_117 dim 1 : vector<2x256xf32>, i32 -> vector<2x256xf32>
    %c37 = arith.constant 37 : index
    %677 = memref.load %arg4[%c37] : memref<98xf32, #tpu.memory_space<smem>>
    %c86 = arith.constant 86 : index
    %678 = memref.load %arg4[%c86] : memref<98xf32, #tpu.memory_space<smem>>
    %679 = vector.broadcast %677 : f32 to vector<2x256xf32>
    %680 = arith.mulf %679, %675 : vector<2x256xf32>
    %681 = vector.broadcast %678 : f32 to vector<2x256xf32>
    %682 = arith.mulf %681, %676 : vector<2x256xf32>
    %683 = arith.addf %680, %682 : vector<2x256xf32>
    %684 = arith.andi %105, %80 : vector<1x256xi1>
    %cst_118 = arith.constant 0.000000e+00 : f32
    %685 = vector.shape_cast %684 : vector<1x256xi1> to vector<1x256xi1>
    %686 = vector.broadcast %685 : vector<1x256xi1> to vector<2x256xi1>
    %687 = vector.broadcast %cst_118 : f32 to vector<2x256xf32>
    %688 = arith.select %686, %683, %687 : vector<2x256xi1>, vector<2x256xf32>
    %689 = arith.addf %674, %688 : vector<2x256xf32>
    %c224_i32_119 = arith.constant 224 : i32
    %690 = tpu.dynamic_rotate %46 by %c224_i32_119 dim 1 : vector<2x256xf32>, i32 -> vector<2x256xf32>
    %c224_i32_120 = arith.constant 224 : i32
    %691 = tpu.dynamic_rotate %47 by %c224_i32_120 dim 1 : vector<2x256xf32>, i32 -> vector<2x256xf32>
    %c38 = arith.constant 38 : index
    %692 = memref.load %arg4[%c38] : memref<98xf32, #tpu.memory_space<smem>>
    %c87 = arith.constant 87 : index
    %693 = memref.load %arg4[%c87] : memref<98xf32, #tpu.memory_space<smem>>
    %694 = vector.broadcast %692 : f32 to vector<2x256xf32>
    %695 = arith.mulf %694, %690 : vector<2x256xf32>
    %696 = vector.broadcast %693 : f32 to vector<2x256xf32>
    %697 = arith.mulf %696, %691 : vector<2x256xf32>
    %698 = arith.addf %695, %697 : vector<2x256xf32>
    %699 = arith.andi %105, %90 : vector<1x256xi1>
    %cst_121 = arith.constant 0.000000e+00 : f32
    %700 = vector.shape_cast %699 : vector<1x256xi1> to vector<1x256xi1>
    %701 = vector.broadcast %700 : vector<1x256xi1> to vector<2x256xi1>
    %702 = vector.broadcast %cst_121 : f32 to vector<2x256xf32>
    %703 = arith.select %701, %698, %702 : vector<2x256xi1>, vector<2x256xf32>
    %704 = arith.addf %689, %703 : vector<2x256xf32>
    %c223_i32 = arith.constant 223 : i32
    %705 = tpu.dynamic_rotate %46 by %c223_i32 dim 1 : vector<2x256xf32>, i32 -> vector<2x256xf32>
    %c223_i32_122 = arith.constant 223 : i32
    %706 = tpu.dynamic_rotate %47 by %c223_i32_122 dim 1 : vector<2x256xf32>, i32 -> vector<2x256xf32>
    %c39 = arith.constant 39 : index
    %707 = memref.load %arg4[%c39] : memref<98xf32, #tpu.memory_space<smem>>
    %c88 = arith.constant 88 : index
    %708 = memref.load %arg4[%c88] : memref<98xf32, #tpu.memory_space<smem>>
    %709 = vector.broadcast %707 : f32 to vector<2x256xf32>
    %710 = arith.mulf %709, %705 : vector<2x256xf32>
    %711 = vector.broadcast %708 : f32 to vector<2x256xf32>
    %712 = arith.mulf %711, %706 : vector<2x256xf32>
    %713 = arith.addf %710, %712 : vector<2x256xf32>
    %714 = arith.andi %105, %100 : vector<1x256xi1>
    %cst_123 = arith.constant 0.000000e+00 : f32
    %715 = vector.shape_cast %714 : vector<1x256xi1> to vector<1x256xi1>
    %716 = vector.broadcast %715 : vector<1x256xi1> to vector<2x256xi1>
    %717 = vector.broadcast %cst_123 : f32 to vector<2x256xf32>
    %718 = arith.select %716, %713, %717 : vector<2x256xi1>, vector<2x256xf32>
    %719 = arith.addf %704, %718 : vector<2x256xf32>
    %c222_i32 = arith.constant 222 : i32
    %720 = tpu.dynamic_rotate %46 by %c222_i32 dim 1 : vector<2x256xf32>, i32 -> vector<2x256xf32>
    %c222_i32_124 = arith.constant 222 : i32
    %721 = tpu.dynamic_rotate %47 by %c222_i32_124 dim 1 : vector<2x256xf32>, i32 -> vector<2x256xf32>
    %c40 = arith.constant 40 : index
    %722 = memref.load %arg4[%c40] : memref<98xf32, #tpu.memory_space<smem>>
    %c89 = arith.constant 89 : index
    %723 = memref.load %arg4[%c89] : memref<98xf32, #tpu.memory_space<smem>>
    %724 = vector.broadcast %722 : f32 to vector<2x256xf32>
    %725 = arith.mulf %724, %720 : vector<2x256xf32>
    %726 = vector.broadcast %723 : f32 to vector<2x256xf32>
    %727 = arith.mulf %726, %721 : vector<2x256xf32>
    %728 = arith.addf %725, %727 : vector<2x256xf32>
    %729 = arith.andi %105, %110 : vector<1x256xi1>
    %cst_125 = arith.constant 0.000000e+00 : f32
    %730 = vector.shape_cast %729 : vector<1x256xi1> to vector<1x256xi1>
    %731 = vector.broadcast %730 : vector<1x256xi1> to vector<2x256xi1>
    %732 = vector.broadcast %cst_125 : f32 to vector<2x256xf32>
    %733 = arith.select %731, %728, %732 : vector<2x256xi1>, vector<2x256xf32>
    %734 = arith.addf %719, %733 : vector<2x256xf32>
    %c221_i32 = arith.constant 221 : i32
    %735 = tpu.dynamic_rotate %46 by %c221_i32 dim 1 : vector<2x256xf32>, i32 -> vector<2x256xf32>
    %c221_i32_126 = arith.constant 221 : i32
    %736 = tpu.dynamic_rotate %47 by %c221_i32_126 dim 1 : vector<2x256xf32>, i32 -> vector<2x256xf32>
    %c41 = arith.constant 41 : index
    %737 = memref.load %arg4[%c41] : memref<98xf32, #tpu.memory_space<smem>>
    %c90 = arith.constant 90 : index
    %738 = memref.load %arg4[%c90] : memref<98xf32, #tpu.memory_space<smem>>
    %739 = vector.broadcast %737 : f32 to vector<2x256xf32>
    %740 = arith.mulf %739, %735 : vector<2x256xf32>
    %741 = vector.broadcast %738 : f32 to vector<2x256xf32>
    %742 = arith.mulf %741, %736 : vector<2x256xf32>
    %743 = arith.addf %740, %742 : vector<2x256xf32>
    %744 = arith.andi %105, %120 : vector<1x256xi1>
    %cst_127 = arith.constant 0.000000e+00 : f32
    %745 = vector.shape_cast %744 : vector<1x256xi1> to vector<1x256xi1>
    %746 = vector.broadcast %745 : vector<1x256xi1> to vector<2x256xi1>
    %747 = vector.broadcast %cst_127 : f32 to vector<2x256xf32>
    %748 = arith.select %746, %743, %747 : vector<2x256xi1>, vector<2x256xf32>
    %749 = arith.addf %734, %748 : vector<2x256xf32>
    %c211_i32 = arith.constant 211 : i32
    %750 = tpu.dynamic_rotate %46 by %c211_i32 dim 1 : vector<2x256xf32>, i32 -> vector<2x256xf32>
    %c211_i32_128 = arith.constant 211 : i32
    %751 = tpu.dynamic_rotate %47 by %c211_i32_128 dim 1 : vector<2x256xf32>, i32 -> vector<2x256xf32>
    %c42 = arith.constant 42 : index
    %752 = memref.load %arg4[%c42] : memref<98xf32, #tpu.memory_space<smem>>
    %c91 = arith.constant 91 : index
    %753 = memref.load %arg4[%c91] : memref<98xf32, #tpu.memory_space<smem>>
    %754 = vector.broadcast %752 : f32 to vector<2x256xf32>
    %755 = arith.mulf %754, %750 : vector<2x256xf32>
    %756 = vector.broadcast %753 : f32 to vector<2x256xf32>
    %757 = arith.mulf %756, %751 : vector<2x256xf32>
    %758 = arith.addf %755, %757 : vector<2x256xf32>
    %759 = arith.andi %115, %60 : vector<1x256xi1>
    %cst_129 = arith.constant 0.000000e+00 : f32
    %760 = vector.shape_cast %759 : vector<1x256xi1> to vector<1x256xi1>
    %761 = vector.broadcast %760 : vector<1x256xi1> to vector<2x256xi1>
    %762 = vector.broadcast %cst_129 : f32 to vector<2x256xf32>
    %763 = arith.select %761, %758, %762 : vector<2x256xi1>, vector<2x256xf32>
    %764 = arith.addf %749, %763 : vector<2x256xf32>
    %c210_i32 = arith.constant 210 : i32
    %765 = tpu.dynamic_rotate %46 by %c210_i32 dim 1 : vector<2x256xf32>, i32 -> vector<2x256xf32>
    %c210_i32_130 = arith.constant 210 : i32
    %766 = tpu.dynamic_rotate %47 by %c210_i32_130 dim 1 : vector<2x256xf32>, i32 -> vector<2x256xf32>
    %c43 = arith.constant 43 : index
    %767 = memref.load %arg4[%c43] : memref<98xf32, #tpu.memory_space<smem>>
    %c92 = arith.constant 92 : index
    %768 = memref.load %arg4[%c92] : memref<98xf32, #tpu.memory_space<smem>>
    %769 = vector.broadcast %767 : f32 to vector<2x256xf32>
    %770 = arith.mulf %769, %765 : vector<2x256xf32>
    %771 = vector.broadcast %768 : f32 to vector<2x256xf32>
    %772 = arith.mulf %771, %766 : vector<2x256xf32>
    %773 = arith.addf %770, %772 : vector<2x256xf32>
    %774 = arith.andi %115, %70 : vector<1x256xi1>
    %cst_131 = arith.constant 0.000000e+00 : f32
    %775 = vector.shape_cast %774 : vector<1x256xi1> to vector<1x256xi1>
    %776 = vector.broadcast %775 : vector<1x256xi1> to vector<2x256xi1>
    %777 = vector.broadcast %cst_131 : f32 to vector<2x256xf32>
    %778 = arith.select %776, %773, %777 : vector<2x256xi1>, vector<2x256xf32>
    %779 = arith.addf %764, %778 : vector<2x256xf32>
    %c209_i32 = arith.constant 209 : i32
    %780 = tpu.dynamic_rotate %46 by %c209_i32 dim 1 : vector<2x256xf32>, i32 -> vector<2x256xf32>
    %c209_i32_132 = arith.constant 209 : i32
    %781 = tpu.dynamic_rotate %47 by %c209_i32_132 dim 1 : vector<2x256xf32>, i32 -> vector<2x256xf32>
    %c44 = arith.constant 44 : index
    %782 = memref.load %arg4[%c44] : memref<98xf32, #tpu.memory_space<smem>>
    %c93 = arith.constant 93 : index
    %783 = memref.load %arg4[%c93] : memref<98xf32, #tpu.memory_space<smem>>
    %784 = vector.broadcast %782 : f32 to vector<2x256xf32>
    %785 = arith.mulf %784, %780 : vector<2x256xf32>
    %786 = vector.broadcast %783 : f32 to vector<2x256xf32>
    %787 = arith.mulf %786, %781 : vector<2x256xf32>
    %788 = arith.addf %785, %787 : vector<2x256xf32>
    %789 = arith.andi %115, %80 : vector<1x256xi1>
    %cst_133 = arith.constant 0.000000e+00 : f32
    %790 = vector.shape_cast %789 : vector<1x256xi1> to vector<1x256xi1>
    %791 = vector.broadcast %790 : vector<1x256xi1> to vector<2x256xi1>
    %792 = vector.broadcast %cst_133 : f32 to vector<2x256xf32>
    %793 = arith.select %791, %788, %792 : vector<2x256xi1>, vector<2x256xf32>
    %794 = arith.addf %779, %793 : vector<2x256xf32>
    %c208_i32_134 = arith.constant 208 : i32
    %795 = tpu.dynamic_rotate %46 by %c208_i32_134 dim 1 : vector<2x256xf32>, i32 -> vector<2x256xf32>
    %c208_i32_135 = arith.constant 208 : i32
    %796 = tpu.dynamic_rotate %47 by %c208_i32_135 dim 1 : vector<2x256xf32>, i32 -> vector<2x256xf32>
    %c45 = arith.constant 45 : index
    %797 = memref.load %arg4[%c45] : memref<98xf32, #tpu.memory_space<smem>>
    %c94 = arith.constant 94 : index
    %798 = memref.load %arg4[%c94] : memref<98xf32, #tpu.memory_space<smem>>
    %799 = vector.broadcast %797 : f32 to vector<2x256xf32>
    %800 = arith.mulf %799, %795 : vector<2x256xf32>
    %801 = vector.broadcast %798 : f32 to vector<2x256xf32>
    %802 = arith.mulf %801, %796 : vector<2x256xf32>
    %803 = arith.addf %800, %802 : vector<2x256xf32>
    %804 = arith.andi %115, %90 : vector<1x256xi1>
    %cst_136 = arith.constant 0.000000e+00 : f32
    %805 = vector.shape_cast %804 : vector<1x256xi1> to vector<1x256xi1>
    %806 = vector.broadcast %805 : vector<1x256xi1> to vector<2x256xi1>
    %807 = vector.broadcast %cst_136 : f32 to vector<2x256xf32>
    %808 = arith.select %806, %803, %807 : vector<2x256xi1>, vector<2x256xf32>
    %809 = arith.addf %794, %808 : vector<2x256xf32>
    %c207_i32 = arith.constant 207 : i32
    %810 = tpu.dynamic_rotate %46 by %c207_i32 dim 1 : vector<2x256xf32>, i32 -> vector<2x256xf32>
    %c207_i32_137 = arith.constant 207 : i32
    %811 = tpu.dynamic_rotate %47 by %c207_i32_137 dim 1 : vector<2x256xf32>, i32 -> vector<2x256xf32>
    %c46 = arith.constant 46 : index
    %812 = memref.load %arg4[%c46] : memref<98xf32, #tpu.memory_space<smem>>
    %c95 = arith.constant 95 : index
    %813 = memref.load %arg4[%c95] : memref<98xf32, #tpu.memory_space<smem>>
    %814 = vector.broadcast %812 : f32 to vector<2x256xf32>
    %815 = arith.mulf %814, %810 : vector<2x256xf32>
    %816 = vector.broadcast %813 : f32 to vector<2x256xf32>
    %817 = arith.mulf %816, %811 : vector<2x256xf32>
    %818 = arith.addf %815, %817 : vector<2x256xf32>
    %819 = arith.andi %115, %100 : vector<1x256xi1>
    %cst_138 = arith.constant 0.000000e+00 : f32
    %820 = vector.shape_cast %819 : vector<1x256xi1> to vector<1x256xi1>
    %821 = vector.broadcast %820 : vector<1x256xi1> to vector<2x256xi1>
    %822 = vector.broadcast %cst_138 : f32 to vector<2x256xf32>
    %823 = arith.select %821, %818, %822 : vector<2x256xi1>, vector<2x256xf32>
    %824 = arith.addf %809, %823 : vector<2x256xf32>
    %c206_i32 = arith.constant 206 : i32
    %825 = tpu.dynamic_rotate %46 by %c206_i32 dim 1 : vector<2x256xf32>, i32 -> vector<2x256xf32>
    %c206_i32_139 = arith.constant 206 : i32
    %826 = tpu.dynamic_rotate %47 by %c206_i32_139 dim 1 : vector<2x256xf32>, i32 -> vector<2x256xf32>
    %c47 = arith.constant 47 : index
    %827 = memref.load %arg4[%c47] : memref<98xf32, #tpu.memory_space<smem>>
    %c96 = arith.constant 96 : index
    %828 = memref.load %arg4[%c96] : memref<98xf32, #tpu.memory_space<smem>>
    %829 = vector.broadcast %827 : f32 to vector<2x256xf32>
    %830 = arith.mulf %829, %825 : vector<2x256xf32>
    %831 = vector.broadcast %828 : f32 to vector<2x256xf32>
    %832 = arith.mulf %831, %826 : vector<2x256xf32>
    %833 = arith.addf %830, %832 : vector<2x256xf32>
    %834 = arith.andi %115, %110 : vector<1x256xi1>
    %cst_140 = arith.constant 0.000000e+00 : f32
    %835 = vector.shape_cast %834 : vector<1x256xi1> to vector<1x256xi1>
    %836 = vector.broadcast %835 : vector<1x256xi1> to vector<2x256xi1>
    %837 = vector.broadcast %cst_140 : f32 to vector<2x256xf32>
    %838 = arith.select %836, %833, %837 : vector<2x256xi1>, vector<2x256xf32>
    %839 = arith.addf %824, %838 : vector<2x256xf32>
    %c205_i32 = arith.constant 205 : i32
    %840 = tpu.dynamic_rotate %46 by %c205_i32 dim 1 : vector<2x256xf32>, i32 -> vector<2x256xf32>
    %c205_i32_141 = arith.constant 205 : i32
    %841 = tpu.dynamic_rotate %47 by %c205_i32_141 dim 1 : vector<2x256xf32>, i32 -> vector<2x256xf32>
    %c48 = arith.constant 48 : index
    %842 = memref.load %arg4[%c48] : memref<98xf32, #tpu.memory_space<smem>>
    %c97 = arith.constant 97 : index
    %843 = memref.load %arg4[%c97] : memref<98xf32, #tpu.memory_space<smem>>
    %844 = vector.broadcast %842 : f32 to vector<2x256xf32>
    %845 = arith.mulf %844, %840 : vector<2x256xf32>
    %846 = vector.broadcast %843 : f32 to vector<2x256xf32>
    %847 = arith.mulf %846, %841 : vector<2x256xf32>
    %848 = arith.addf %845, %847 : vector<2x256xf32>
    %849 = arith.andi %115, %120 : vector<1x256xi1>
    %cst_142 = arith.constant 0.000000e+00 : f32
    %850 = vector.shape_cast %849 : vector<1x256xi1> to vector<1x256xi1>
    %851 = vector.broadcast %850 : vector<1x256xi1> to vector<2x256xi1>
    %852 = vector.broadcast %cst_142 : f32 to vector<2x256xf32>
    %853 = arith.select %851, %848, %852 : vector<2x256xi1>, vector<2x256xf32>
    %854 = arith.addf %839, %853 : vector<2x256xf32>
    %855 = arith.negf %854 : vector<2x256xf32>
    %856 = math.exp %855 : vector<2x256xf32>
    %cst_143 = arith.constant 1.000000e+00 : f32
    %857 = vector.broadcast %cst_143 : f32 to vector<2x256xf32>
    %858 = arith.addf %857, %856 : vector<2x256xf32>
    %859 = arith.divf %857, %858 : vector<2x256xf32>
    %860 = vector.shape_cast %859 : vector<2x256xf32> to vector<2x1x256xf32>
    %861 = vector.broadcast %860 : vector<2x1x256xf32> to vector<2x32x256xf32>
    %862 = arith.mulf %43, %861 : vector<2x32x256xf32>
    %c0_144 = arith.constant 0 : index
    %c0_145 = arith.constant 0 : index
    %c0_146 = arith.constant 0 : index
    %863 = vector.load %arg5[%c0_144, %c0_145, %c0_146] : memref<2x32x256xf32, #tpu.memory_space<vmem>>, vector<2x32x256xf32>
    tpu.vector_store %arg5[%c0_144, %c0_145, %c0_146], %862 {strides = array<i32>} : memref<2x32x256xf32, #tpu.memory_space<vmem>>, vector<2x32x256xf32>,
    return
  }
  func.func @transform_0(%arg0: i32) -> (i32, i32, i32) {
    %c0_i32 = arith.constant 0 : i32
    %c0_i32_0 = arith.constant 0 : i32
    %c0_i32_1 = arith.constant 0 : i32
    return %arg0, %c0_i32, %c0_i32_0 : i32, i32, i32
  }
  func.func @transform_1(%arg0: i32) -> (i32, i32) {
    %c0_i32 = arith.constant 0 : i32
    %c0_i32_0 = arith.constant 0 : i32
    %c0_i32_1 = arith.constant 0 : i32
    return %c0_i32, %c0_i32_0 : i32, i32
  }
  func.func @transform_2(%arg0: i32) -> (i32, i32) {
    %c0_i32 = arith.constant 0 : i32
    %c0_i32_0 = arith.constant 0 : i32
    %c0_i32_1 = arith.constant 0 : i32
    return %c0_i32, %c0_i32_0 : i32, i32
  }
  func.func @transform_3(%arg0: i32) -> i32 {
    %c0_i32 = arith.constant 0 : i32
    %c0_i32_0 = arith.constant 0 : i32
    return %c0_i32 : i32
  }
  func.func @transform_4(%arg0: i32) -> (i32, i32, i32) {
    %c0_i32 = arith.constant 0 : i32
    %c0_i32_0 = arith.constant 0 : i32
    %c0_i32_1 = arith.constant 0 : i32
    return %arg0, %c0_i32, %c0_i32_0 : i32, i32, i32
  }
}

</mosaic_0001>

<bundles_post_ra>
// kernel: tpu_custom_call.1
= control target key start
LH: loop header
LB: loop body
LE: loop exit
PB: predicated region body
PF: predicated region fallthrough
CT: control target
= control target key end

     0   :  { %9 = vsyncpa [#allocation3], 0  ;;  %s5178_s0 = inlined_call_operand.hbm [shape: f32[2,32,256], index: 0, kind: input, shape index: {}]   ;;  %s5179_s1 = inlined_call_operand.vmem [shape: f32[2,32], index: 1, kind: input, shape index: {}]   ;;  %s5180_s2 = inlined_call_operand.vmem [shape: f32[2,32], index: 2, kind: input, shape index: {}]   ;;  %s5181_s3 = inlined_call_operand.vmem [shape: f32[98], index: 3, kind: input, shape index: {}]   ;;  %s5182_s4 = inlined_call_operand.hbm [shape: f32[2,32,256], index: 4, kind: output, shape index: {}]  }
   0x1   :  { %10 = vsyncpa [#allocation5], 0 }
   0x2   :  { %11 = vsyncpa [#allocation4], 0  ;;  %s2431_s15 = smov [#allocation2]   ;;  %s34_s19 = sshll.u32 %s5181_s3, 4  ;;  %s35_s19 = int_to_ptr.vmem [resolvable:$true] %s34_s19 }
   0x3   :  { %s17_s16 = sshll.u32 %s2431_s15, 4  ;;  %s2369_s22 = scalar_lea.hbm %s5178_s0, 2048  ;;  %s18_s16 = int_to_ptr.vmem [resolvable:$true] %s17_s16 }
   0x4   :  { %p2370_p0 = scmp.ne.s32.totalorder %s5178_s0, %s2369_s22  ;;  %p2373_p1 = scmp.lt.u32.totalorder %s2369_s22, %s5178_s0 }
   0x6   :  { %p2375_p2 = pnand %p2373_p1, %p2370_p0 }
   0x8   :  { %2378 = shalt.err (!%p2375_p2)
}
   0x9   :  { %s2379_s27 = scalar_lea.vmem %s18_s16, 2048  ;;  %p2384_p4 = scmp.lt.s32.totalorder %s18_s16, %s18_s16 }
   0xa   :  { %p2380_p3 = scmp.ne.s32.totalorder %s18_s16, %s2379_s27  ;;  %p2385_p5 = scmp.lt.s32.totalorder %s2379_s27, %s2379_s27 }
   0xc   :  { %p2386_p6 = por %p2385_p5, %p2384_p4 }
   0xe   :  { %p2387_p7 = pnand %p2386_p6, %p2380_p3 }
  0x10   :  { %2390 = shalt.err (!%p2387_p7)
}
  0x11   :  { %s5183_s3 = smov 256   ;;  %s2433_s28 = smov 16  }
  0x12   :  { %23 = dma.hbm_to_vmem [thread:$0]  %s5178_s0, 2048, %s18_s16, [#allocation3], %s5183_s3, %s5183_s3, %s2433_s28  }
  0x13   :  { %s2391_s5 = scalar_lea.vmem %s35_s19, 16  ;;  %p2396_p9 = scmp.lt.s32.totalorder %s35_s19, %s35_s19 }
  0x14   :  { %p2392_p8 = scmp.ne.s32.totalorder %s35_s19, %s2391_s5  ;;  %p2397_p10 = scmp.lt.s32.totalorder %s2391_s5, %s2391_s5 }
  0x16   :  { %p2398_p11 = por %p2397_p10, %p2396_p9 }
  0x18   :  { %p2399_p12 = pnand %p2398_p11, %p2392_p8 }
  0x1a   :  { %2402 = shalt.err (!%p2399_p12)
}
  0x1b   :  { %s2434_s6 = smov [#allocation6]  }
  0x1c   :  { %37 = dma.vmem_to_smem %s35_s19, 16, %s2434_s6, [#allocation5]  }
  0x1d   :  { %2425 = dma.done.wait [#allocation3], 2048  }
  0x1e   :  { %2426 = vsyncadd [#allocation3], 4294965248 }
  0x1f   :  { %2427 = dma.done.wait [#allocation5], 16  }
  0x20   :  { %2428 = vsyncadd [#allocation5], 4294967280 }
  0x21   :  { %44 = sfence }
  0x22   :  { %v2527_v0 = vld [vmem:[#allocation2 + $0x40] sm:$0xff]  ;;  %v2529_v1 = vld [vmem:[#allocation2 + $0x48] sm:$0xff]  ;;  %v2537_v5 = vld [vmem:[#allocation2 + $0x50] sm:$0xff]  ;;  %v126_v37 = vlaneseq  ;;  %vm137_vm0 = vcmask 130112   ;;  %vm144_vm1 = vcmask 195712   ;;  %vm151_vm2 = vcmask 261312  }
  0x23   :  { %v2531_v2 = vld [vmem:[#allocation2] sm:$0xff]  ;;  %v73_v3 = vadd.f32 %v2529_v1, %v2527_v0  ;;  %v2535_v4 = vld [vmem:[#allocation2 + $0x8] sm:$0xff]  ;;  %v2539_v6 = vld [vmem:[#allocation2 + $0x58] sm:$0xff]  ;;  %v106_v27 = vmax.f32 %v2527_v0, %v2529_v1  ;;  %vm172_vm3 = vcmask 1041409   ;;  %vm221_vm4 = vcmask 1043459   ;;  %s2253_s9 = sld [smem:[#allocation6 + $0x49]] }
  0x24   :  { %v61_v7 = vadd.f32 %v2535_v4, %v2531_v2  ;;  %v2543_v8 = vld [vmem:[#allocation2 + $0x10] sm:$0xff]  ;;  %v2545_v9 = vld [vmem:[#allocation2 + $0x18] sm:$0xff]  ;;  %v76_v10 = vadd.f32 %v2539_v6, %v2537_v5  ;;  %v2551_v12 = vld [vmem:[#allocation2 + $0x60] sm:$0xff]  ;;  %v94_v25 = vmax.f32 %v2531_v2, %v2535_v4  ;;  %v109_v26 = vmax.f32 %v2537_v5, %v2539_v6  ;;  %s2435_s10 = smov 51   ;;  %s2436_s11 = smov 50  }
  0x25   :  { %74 = vadd.xlane.f32.xlu1 %v73_v3  ;;  %v64_v11 = vadd.f32 %v2545_v9, %v2543_v8  ;;  %v2553_v13 = vld [vmem:[#allocation2 + $0x68] sm:$0xff]  ;;  %v2555_v14 = vld [vmem:[#allocation2 + $0x20] sm:$0xff]  ;;  %v2563_v18 = vld [vmem:[#allocation2 + $0x70] sm:$0xff]  ;;  %v97_v24 = vmax.f32 %v2543_v8, %v2545_v9  ;;  %v2591_v40 = vand.u32 127, %v126_v37  ;;  %v2593_v42 = vshrl.u32 %v126_v37, 7  ;;  %s2437_s12 = smov 49  }
  0x26   :  { %62 = vadd.xlane.f32.xlu0 %v61_v7  ;;  %v2557_v15 = vld [vmem:[#allocation2 + $0x28] sm:$0xff]  ;;  %v79_v16 = vadd.f32 %v2553_v13, %v2551_v12  ;;  %v2565_v19 = vld [vmem:[#allocation2 + $0x78] sm:$0xff]  ;;  %v2567_v20 = vld [vmem:[#allocation2 + $0x30] sm:$0xff]  ;;  %v112_v28 = vmax.f32 %v2551_v12, %v2553_v13  ;;  %vm224_vm5 = vcmask 1041408   ;;  %vm233_vm6 = vcmask 257024   ;;  %s2438_s13 = smov 48  }
  0x27   :  { %v67_v17 = vadd.f32 %v2557_v15, %v2555_v14  ;;  %v2569_v21 = vld [vmem:[#allocation2 + $0x38] sm:$0xff]  ;;  %v82_v22 = vadd.f32 %v2565_v19, %v2563_v18  ;;  %v100_v29 = vmax.f32 %v2555_v14, %v2557_v15  ;;  %v115_v30 = vmax.f32 %v2563_v18, %v2565_v19  ;;  %5310 = vst [vmem:[#allocation11_spill] sm:$0xff] %v2593_v42  ;;  %s2439_s14 = smov 47   ;;  %s2440_s15 = smov 46  }
  0x28   :  { %v70_v23 = vadd.f32 %v2569_v21, %v2567_v20  ;;  %v103_v31 = vmax.f32 %v2567_v20, %v2569_v21  ;;  %v132_v43 = vadd.s32 4294967288, %v2591_v40  ;;  %v139_v44 = vadd.s32 4294967280, %v2591_v40  ;;  %s2441_s16 = smov 45   ;;  %s2442_s17 = smov 35  }
  0x29   :  { %77 = vadd.xlane.f32.xlu1 %v76_v10  ;;  %v146_v46 = vadd.s32 4294967272, %v2591_v40  ;;  %v130_v48 = vsub.s32 %v2591_v40, %v2593_v42  ;;  %s2443_s18 = smov 34   ;;  %s2444_s19 = smov 33   ;;  %vm475_vm7 = vcmp.lt.s32.totalorder %v2591_v40, 51  ;;  %vm516_vm8 = vcmp.lt.s32.totalorder %v2591_v40, 50 }
  0x2a   :  { %65 = vadd.xlane.f32.xlu0 %v64_v11  ;;  %v135_v49 = vsub.s32 %v132_v43, %v2593_v42  ;;  %v142_v51 = vsub.s32 %v139_v44, %v2593_v42  ;;  %s2445_s20 = smov 32   ;;  %s2446_s21 = smov 31   ;;  %vm549_vm9 = vcmp.lt.s32.totalorder %v2591_v40, 49  ;;  %vm582_vm10 = vcmp.lt.s32.totalorder %v2591_v40, 48 }
  0x2b   :  { %v149_v58 = vsub.s32 %v146_v46, %v2593_v42  ;;  %s2447_s22 = smov 30   ;;  %s2448_s23 = smov 29   ;;  %vm615_vm11 = vcmp.lt.s32.totalorder %v2591_v40, 47  ;;  %vm648_vm12 = vcmp.lt.s32.totalorder %v2591_v40, 46  ;;  %vm403_vm13 = vcmp.ge.s32.totalorder %v2591_v40, 48 }
  0x2c   :  { %s2449_s24 = smov 19   ;;  %s2450_s25 = smov 18  }
  0x2d   :  { %80 = vadd.xlane.f32.xlu1 %v79_v16  ;;  %s2451_s26 = smov 17   ;;  %s2452_s27 = smov 15  }
  0x2e   :  { %68 = vadd.xlane.f32.xlu0 %v67_v17  ;;  %s2453_s29 = smov 14   ;;  %s2454_s30 = smov 13  }
  0x2f   :  { %s2455_s5 = smov 3   ;;  %s2456_s6 = smov 2  }
  0x30   :  { %s2457_s0 = smov 1   ;;  %s2458_s7 = smov 127  }
  0x31   :  { %83 = vadd.xlane.f32.xlu1 %v82_v22  ;;  %s2460_s8 = smov 125   ;;  %s5188_s3 = smov 113  }
  0x32   :  { %71 = vadd.xlane.f32.xlu0 %v70_v23 }
  0x35   :  { %98 = vmax.xlane.f32.xlu1 %v97_v24 }
  0x36   :  { %95 = vmax.xlane.f32.xlu0 %v94_v25 }
  0x39   :  { %110 = vmax.xlane.f32.xlu1 %v109_v26 }
  0x3a   :  { %107 = vmax.xlane.f32.xlu0 %v106_v27 }
  0x3d   :  { %113 = vmax.xlane.f32.xlu1 %v112_v28 }
  0x3e   :  { %101 = vmax.xlane.f32.xlu0 %v100_v29 }
  0x41   :  { %116 = vmax.xlane.f32.xlu1 %v115_v30 }
  0x42   :  { %104 = vmax.xlane.f32.xlu0 %v103_v31  ;;  %v2605_v31 = vsub.s32 1, %v2593_v42 }
  0x44   :  { %5311 = vst [vmem:[#allocation12_spill] sm:$0xff] %v2605_v31 }
  0xb2   :  { %v75_v32 = vpop.xlane.xlu1 %74 }
  0xb3   :  { %v63_v33 = vpop.xlane.xlu0 %62  ;;  %v90_v52 = vmul.f32 0.00390625, %v75_v32  ;;  %v2608_v32 = vsub.s32 0, %v2593_v42 }
  0xb4   :  { %v86_v53 = vmul.f32 0.00390625, %v63_v33 }
  0xb5   :  { %v156_v63 = vrot.slane %v90_v52, %v130_v48  ;;  %5312 = vst [vmem:[#allocation13_spill] sm:$0xff] %v2608_v32 }
  0xb6   :  { %v78_v34 = vpop.xlane.xlu1 %77  ;;  %v131_v3 = vrot.slane %v86_v53, %v130_v48 }
  0xb7   :  { %v66_v35 = vpop.xlane.xlu0 %65  ;;  %v91_v50 = vmul.f32 0.00390625, %v78_v34 }
  0xb8   :  { %v87_v54 = vmul.f32 0.00390625, %v66_v35 }
  0xb9   :  { %v160_v62 = vrot.slane %v91_v50, %v135_v49 }
  0xba   :  { %v81_v36 = vpop.xlane.xlu1 %80  ;;  %v136_v7 = vrot.slane %v87_v54, %v135_v49 }
  0xbb   :  { %v69_v38 = vpop.xlane.xlu0 %68  ;;  %v92_v55 = vmul.f32 0.00390625, %v81_v36  ;;  %v161_v29 = vsel %vm137_vm0, %v160_v62, %v156_v63  ;;  %v226_v36 = vld [vmem:[%s5179_s1] sm:$0x3]  ;;  %s2459_s1 = smov 126  }
  0xbc   :  { %v88_v57 = vmul.f32 0.00390625, %v69_v38  ;;  %v138_v33 = vsel %vm137_vm0, %v136_v7, %v131_v3  ;;  %v247_v50 = vrot.slane %v226_v36, %v2605_v31 }
  0xbd   :  { %v165_v10 = vrot.slane %v92_v55, %v142_v51 }
  0xbe   :  { %v84_v39 = vpop.xlane.xlu1 %83  ;;  %v143_v16 = vrot.slane %v88_v57, %v142_v51 }
  0xbf   :  { %v72_v41 = vpop.xlane.xlu0 %71  ;;  %v93_v59 = vmul.f32 0.00390625, %v84_v39  ;;  %v166_v34 = vsel %vm144_vm1, %v165_v10, %v161_v29 }
  0xc0   :  { %v89_v61 = vmul.f32 0.00390625, %v72_v41  ;;  %v145_v37 = vsel %vm144_vm1, %v143_v16, %v138_v33 }
  0xc1   :  { %v170_v17 = vrot.slane %v93_v59, %v149_v58 }
  0xc2   :  { %v99_v45 = vpop.xlane.xlu1 %98  ;;  %v150_v25 = vrot.slane %v89_v61, %v149_v58 }
  0xc3   :  { %v96_v47 = vpop.xlane.xlu0 %95  ;;  %v190_v26 = vrot.slane %v99_v45, %v135_v49  ;;  %v171_v43 = vsel %vm151_vm2, %v170_v17, %v166_v34 }
  0xc4   :  { %v186_v27 = vrot.slane %v96_v47, %v130_v48  ;;  %v152_v47 = vsel %vm151_vm2, %v150_v25, %v145_v37 }
  0xc5   :  { %v173_v53 = vsel %vm172_vm3, %v171_v43, %v152_v47 }
  0xc6   :  { %v111_v56 = vpop.xlane.xlu1 %110  ;;  %v191_v44 = vsel %vm137_vm0, %v190_v26, %v186_v27 }
  0xc7   :  { %v108_v60 = vpop.xlane.xlu0 %107  ;;  %v209_v22 = vrot.slane %v111_v56, %v135_v49 }
  0xc8   :  { %v205_v23 = vrot.slane %v108_v60, %v130_v48  ;;  %v227_v60 = vld [vmem:[%s5180_s2] sm:$0x3]  ;;  %s2252_s2 = sld [smem:[#allocation6 + $0x18]] }
  0xc9   :  { %v256_v61 = vrot.slane %v227_v60, %v2605_v31  ;;  %v241_v62 = vrot.slane %v227_v60, %v2608_v32 }
  0xca   :  { %v114_v11 = vpop.xlane.xlu1 %113  ;;  %v210_v38 = vsel %vm137_vm0, %v209_v22, %v205_v23  ;;  %vm681_vm0 = vcmp.lt.s32.totalorder %v2591_v40, 45 }
  0xcb   :  { %v102_v24 = vpop.xlane.xlu0 %101  ;;  %v214_v28 = vrot.slane %v114_v11, %v142_v51 }
  0xcc   :  { %v195_v30 = vrot.slane %v102_v24, %v142_v51  ;;  %v231_v51 = vrot.slane %v226_v36, %v2608_v32 }
  0xcd   :  { %v215_v45 = vsel %vm144_vm1, %v214_v28, %v210_v38 }
  0xce   :  { %v117_v35 = vpop.xlane.xlu1 %116  ;;  %v196_v48 = vsel %vm144_vm1, %v195_v30, %v191_v44 }
  0xcf   :  { %v219_v39 = vrot.slane %v117_v35, %v149_v58  ;;  %v105_v41 = vpop.xlane.xlu0 %104 }
  0xd0   :  { %v200_v46 = vrot.slane %v105_v41, %v149_v58 }
  0xd1   :  { %v220_v49 = vsel %vm151_vm2, %v219_v39, %v215_v45 }
  0xd2   :  { %v201_v52 = vsel %vm151_vm2, %v200_v46, %v196_v48 }
  0xd3   :  { %v222_v54 = vsel %vm221_vm4, %v220_v49, %v201_v52 }
  0xd4   :  { %v225_v55 = vsel %vm224_vm5, %v173_v53, %v222_v54 }
  0xd5   :  { %v248_v56 = vmul.f32 %v247_v50, %v225_v55  ;;  %v232_v57 = vmul.f32 %v231_v51, %v225_v55 }
  0xd7   :  { %v249_v58 = vsel %vm233_vm6, %v248_v56, 0.0  ;;  %v234_v59 = vsel %vm233_vm6, %v232_v57, 0.0  ;;  %v2684_v56 = vstv %s2253_s9  ;;  %s5186_s9 = smov 114   ;;  %vm714_vm6 = vcmp.lt.s32.totalorder %v2591_v40, 35 }
  0xd8   :  { %250 = vadd.xlane.f32.xlu1 %v249_v58  ;;  %235 = vadd.xlane.f32.xlu0 %v234_v59 }
 0x165   :  { %v251_v63 = vpop.xlane.xlu1 %250  ;;  %v236_v3 = vpop.xlane.xlu0 %235 }
 0x166   :  { %v252_v7 = vmax.f32 %v251_v63, 0.0  ;;  %v237_v10 = vmax.f32 %v236_v3, 0.0 }
 0x168   :  { %v257_v11 = vmul.f32 %v256_v61, %v252_v7  ;;  %v242_v16 = vmul.f32 %v241_v62, %v237_v10 }
 0x16a   :  { %v258_v17 = vadd.f32 %v257_v11, %v242_v16 }
 0x16c   :  { %v260_v22 = vrot.slane %v258_v17, 2 }
 0x16e   :  { %v262_v23 = vadd.f32 %v260_v22, %v258_v17 }
 0x170   :  { %v2204_v24 = vmul.f32 -1.442695, %v262_v23 }
 0x172   :  { %2357 = vpow2.f32 %v2204_v24 }
 0x17c   :  { %v2358_v25 = vpop.eup %2357 }
 0x17d   :  { %v266_v26 = vadd.f32 1.0, %v2358_v25 }
 0x17f   :  { %2359 = vrcp.f32 %v266_v26 }
 0x189   :  { %v2360_v27 = vpop.eup %2359 }
 0x18a   :  { %v272_v28 = vrot.slane %v2360_v27, %v2608_v32  ;;  %v291_v29 = vrot.slane %v2360_v27, %v2605_v31 }
 0x18c   :  { %278 = vbcast.lane.b32.xlu1 %v272_v28, 264  ;;  %274 = vbcast.lane.b32.xlu0 %v272_v28, 256 }
 0x190   :  { %282 = vbcast.lane.b32.xlu1 %v272_v28, 272  ;;  %293 = vbcast.lane.b32.xlu0 %v291_v29, 256 }
 0x194   :  { %286 = vbcast.lane.b32.xlu1 %v272_v28, 280  ;;  %301 = vbcast.lane.b32.xlu0 %v291_v29, 272 }
 0x198   :  { %297 = vbcast.lane.b32.xlu1 %v291_v29, 264 }
 0x19c   :  { %305 = vbcast.lane.b32.xlu1 %v291_v29, 280 }
 0x1fe   :  { %v279_v30 = vpop.permute.xlu1 %278  ;;  %v275_v33 = vpop.permute.xlu0 %274 }
 0x1ff   :  { %v2637_v34 = vmul.f32 %v279_v30, %v2543_v8  ;;  %v2640_v35 = vmul.f32 %v279_v30, %v2545_v9  ;;  %v2643_v36 = vmul.f32 %v275_v33, %v2531_v2  ;;  %v2646_v37 = vmul.f32 %v275_v33, %v2535_v4 }
 0x201   :  { %5313 = vst [vmem:[#allocation14_spill] sm:$0xff] %v2637_v34  ;;  %5314 = vst [vmem:[#allocation15_spill] sm:$0xff] %v2640_v35  ;;  %v323_v9 = vadd.f32 %v2637_v34, %v2643_v36  ;;  %v332_v2 = vadd.f32 %v2640_v35, %v2646_v37  ;;  %v364_v4 = vmax.f32 %v2643_v36, %v2637_v34 }
 0x202   :  { %5315 = vst [vmem:[#allocation16_spill] sm:$0xff] %v2643_v36  ;;  %5316 = vst [vmem:[#allocation17_spill] sm:$0xff] %v2646_v37  ;;  %v283_v38 = vpop.permute.xlu1 %282  ;;  %v294_v8 = vpop.permute.xlu0 %293  ;;  %v373_v43 = vmax.f32 %v2646_v37, %v2640_v35 }
 0x203   :  { %v2649_v39 = vmul.f32 %v283_v38, %v2555_v14  ;;  %v2652_v41 = vmul.f32 %v283_v38, %v2557_v15  ;;  %v2677_v54 = vmul.f32 %v294_v8, %v2527_v0  ;;  %v2680_v55 = vmul.f32 %v294_v8, %v2529_v1 }
 0x205   :  { %5317 = vst [vmem:[#allocation18_spill] sm:$0xff] %v2649_v39  ;;  %5318 = vst [vmem:[#allocation19_spill] sm:$0xff] %v2652_v41  ;;  %v324_v44 = vadd.f32 %v323_v9, %v2649_v39  ;;  %v333_v14 = vadd.f32 %v332_v2, %v2652_v41  ;;  %v365_v15 = vmax.f32 %v364_v4, %v2649_v39 }
 0x206   :  { %v287_v45 = vpop.permute.xlu1 %286  ;;  %v374_v46 = vmax.f32 %v373_v43, %v2652_v41  ;;  %v302_v53 = vpop.permute.xlu0 %301  ;;  %5321 = vst [vmem:[#allocation22_spill] sm:$0xff] %v2677_v54  ;;  %5322 = vst [vmem:[#allocation23_spill] sm:$0xff] %v2680_v55 }
 0x207   :  { %v2667_v47 = vmul.f32 %v287_v45, %v2567_v20  ;;  %v2670_v48 = vmul.f32 %v287_v45, %v2569_v21  ;;  %v2682_v20 = vstv %s2252_s2  ;;  %v2687_v61 = vmul.f32 %v302_v53, %v2551_v12  ;;  %s5184_s2 = smov 115  }
 0x208   :  { %v2690_v62 = vmul.f32 %v302_v53, %v2553_v13 }
 0x209   :  { %5319 = vst [vmem:[#allocation20_spill] sm:$0xff] %v2667_v47  ;;  %5320 = vst [vmem:[#allocation21_spill] sm:$0xff] %v2670_v48  ;;  %v325_v49 = vadd.f32 %v324_v44, %v2667_v47  ;;  %v334_v50 = vadd.f32 %v333_v14, %v2670_v48  ;;  %v366_v51 = vmax.f32 %v365_v15, %v2667_v47 }
 0x20a   :  { %v375_v52 = vmax.f32 %v374_v46, %v2670_v48  ;;  %v298_v21 = vpop.permute.xlu1 %297  ;;  %5323 = vst [vmem:[#allocation24_spill] sm:$0xff] %v2687_v61  ;;  %5324 = vst [vmem:[#allocation25_spill] sm:$0xff] %v2690_v62 }
 0x20b   :  { %v326_v57 = vrot.slane %v325_v49, 4  ;;  %v335_v58 = vrot.slane %v334_v50, 4  ;;  %v367_v59 = vrot.slane %v366_v51, 4  ;;  %v2693_v0 = vmul.f32 %v298_v21, %v2537_v5 }
 0x20c   :  { %v376_v60 = vrot.slane %v375_v52, 4  ;;  %v2696_v1 = vmul.f32 %v298_v21, %v2539_v6 }
 0x20d   :  { %5325 = vst [vmem:[#allocation26_spill] sm:$0xff] %v2693_v0  ;;  %v327_v63 = vadd.f32 %v326_v57, %v325_v49  ;;  %v336_v3 = vadd.f32 %v335_v58, %v334_v50  ;;  %v368_v7 = vmax.f32 %v366_v51, %v367_v59  ;;  %v341_v11 = vadd.f32 %v2693_v0, %v2677_v54 }
 0x20e   :  { %5326 = vst [vmem:[#allocation27_spill] sm:$0xff] %v2696_v1  ;;  %v377_v10 = vmax.f32 %v375_v52, %v376_v60  ;;  %v350_v12 = vadd.f32 %v2696_v1, %v2680_v55  ;;  %v382_v13 = vmax.f32 %v2677_v54, %v2693_v0  ;;  %v391_v5 = vmax.f32 %v2680_v55, %v2696_v1  ;;  %v306_v16 = vpop.permute.xlu1 %305 }
 0x20f   :  { %v328_v17 = vrot.slane %v327_v63, 2  ;;  %v337_v6 = vrot.slane %v336_v3, 2  ;;  %v369_v22 = vrot.slane %v368_v7, 2  ;;  %v2707_v24 = vmul.f32 %v306_v16, %v2563_v18 }
 0x210   :  { %v378_v23 = vrot.slane %v377_v10, 2  ;;  %v2710_v25 = vmul.f32 %v306_v16, %v2565_v19  ;;  %v342_v26 = vadd.f32 %v341_v11, %v2687_v61  ;;  %v351_v27 = vadd.f32 %v350_v12, %v2690_v62 }
 0x211   :  { %5327 = vst [vmem:[#allocation28_spill] sm:$0xff] %v2707_v24  ;;  %v329_v28 = vadd.f32 %v328_v17, %v327_v63  ;;  %v338_v29 = vadd.f32 %v337_v6, %v336_v3  ;;  %v370_v30 = vmax.f32 %v368_v7, %v369_v22  ;;  %v383_v9 = vmax.f32 %v382_v13, %v2687_v61 }
 0x212   :  { %5328 = vst [vmem:[#allocation29_spill] sm:$0xff] %v2710_v25  ;;  %v379_v33 = vmax.f32 %v377_v10, %v378_v23  ;;  %v343_v38 = vadd.f32 %v342_v26, %v2707_v24  ;;  %v352_v8 = vadd.f32 %v351_v27, %v2710_v25  ;;  %v392_v18 = vmax.f32 %v391_v5, %v2690_v62 }
 0x213   :  { %v330_v2 = vrot.slane %v329_v28, 1  ;;  %v339_v4 = vrot.slane %v338_v29, 1  ;;  %v371_v19 = vrot.slane %v370_v30, 1  ;;  %v384_v45 = vmax.f32 %v383_v9, %v2707_v24 }
 0x214   :  { %v380_v43 = vrot.slane %v379_v33, 1  ;;  %v344_v44 = vrot.slane %v343_v38, 4  ;;  %v353_v14 = vrot.slane %v352_v8, 4  ;;  %v393_v15 = vmax.f32 %v392_v18, %v2710_v25 }
 0x215   :  { %v331_v46 = vadd.f32 %v330_v2, %v329_v28  ;;  %v340_v49 = vadd.f32 %v339_v4, %v338_v29  ;;  %v372_v50 = vmax.f32 %v370_v30, %v371_v19  ;;  %v385_v21 = vrot.slane %v384_v45, 4 }
 0x216   :  { %v381_v51 = vmax.f32 %v379_v33, %v380_v43  ;;  %v345_v52 = vadd.f32 %v344_v44, %v343_v38  ;;  %v354_v53 = vadd.f32 %v353_v14, %v352_v8  ;;  %v394_v57 = vrot.slane %v393_v15, 4 }
 0x217   :  { %v2720_v58 = vmul.f32 0.03125, %v331_v46  ;;  %v2722_v59 = vmul.f32 0.03125, %v340_v49  ;;  %v386_v3 = vmax.f32 %v384_v45, %v385_v21  ;;  %v1279_v12 = vmul.f32 %v2684_v56, %v372_v50 }
 0x218   :  { %v346_v60 = vrot.slane %v345_v52, 2  ;;  %v355_v63 = vrot.slane %v354_v53, 2  ;;  %v395_v7 = vmax.f32 %v393_v15, %v394_v57  ;;  %v1280_v13 = vmul.f32 %v2684_v56, %v381_v51 }
 0x219   :  { %v1274_v10 = vmul.f32 %v2682_v20, %v2720_v58  ;;  %v1275_v11 = vmul.f32 %v2682_v20, %v2722_v59  ;;  %v387_v17 = vrot.slane %v386_v3, 2 }
 0x21a   :  { %v347_v5 = vadd.f32 %v346_v60, %v345_v52  ;;  %v356_v16 = vadd.f32 %v355_v63, %v354_v53  ;;  %v396_v6 = vrot.slane %v395_v7, 2 }
 0x21b   :  { %v1283_v22 = vadd.f32 %v1279_v12, %v1274_v10  ;;  %v1284_v23 = vadd.f32 %v1280_v13, %v1275_v11  ;;  %v388_v28 = vmax.f32 %v386_v3, %v387_v17 }
 0x21c   :  { %v348_v26 = vrot.slane %v347_v5, 1  ;;  %v357_v27 = vrot.slane %v356_v16, 1  ;;  %v397_v29 = vmax.f32 %v395_v7, %v396_v6 }
 0x21d   :  { %v389_v38 = vrot.slane %v388_v28, 1 }
 0x21e   :  { %v349_v30 = vadd.f32 %v348_v26, %v347_v5  ;;  %v358_v33 = vadd.f32 %v357_v27, %v356_v16  ;;  %v398_v8 = vrot.slane %v397_v29, 1 }
 0x21f   :  { %v390_v2 = vmax.f32 %v388_v28, %v389_v38 }
 0x220   :  { %v2730_v9 = vmul.f32 0.03125, %v349_v30  ;;  %v2732_v18 = vmul.f32 0.03125, %v358_v33  ;;  %v399_v4 = vmax.f32 %v397_v29, %v398_v8 }
 0x221   :  { %v2735_v19 = vsel %vm172_vm3, %v390_v2, %v372_v50  ;;  %v1281_v45 = vmul.f32 %v2684_v56, %v390_v2 }
 0x222   :  { %5329 = vst [vmem:[#allocation30_spill] sm:$0xff] %v2735_v19  ;;  %v2738_v43 = vsel %vm172_vm3, %v399_v4, %v381_v51  ;;  %v1276_v44 = vmul.f32 %v2682_v20, %v2730_v9  ;;  %v1277_v14 = vmul.f32 %v2682_v20, %v2732_v18  ;;  %v1282_v15 = vmul.f32 %v2684_v56, %v399_v4 }
 0x223   :  { %488 = vrot.lane.b32.xlu1 %v2738_v43, %s2435_s10  ;;  %486 = vrot.lane.b32.xlu0 %v2735_v19, %s2435_s10  ;;  %v3017_v24 = vsel %vm172_vm3, %v2732_v18, %v2722_v59  ;;  %v3024_v61 = vsel %vm172_vm3, %v2730_v9, %v2720_v58 }
 0x224   :  { %v1285_v46 = vadd.f32 %v1281_v45, %v1276_v44  ;;  %v1286_v49 = vadd.f32 %v1282_v15, %v1277_v14 }
 0x226   :  { %v2753_v50 = vsel %vm172_vm3, %v1285_v46, %v1283_v22  ;;  %v2756_v20 = vsel %vm172_vm3, %v1286_v49, %v1284_v23 }
 0x227   :  { %521 = vrot.lane.b32.xlu1 %v2738_v43, %s2436_s11  ;;  %5330 = vst [vmem:[#allocation31_spill] sm:$0xff] %v2753_v50  ;;  %5331 = vst [vmem:[#allocation32_spill] sm:$0xff] %v2756_v20  ;;  %519 = vrot.lane.b32.xlu0 %v2735_v19, %s2436_s11  ;;  %v3302_v20 = vadd.s32 128, %v2591_v40  ;;  %v3310_v50 = vand.u32 15, %v2591_v40 }
 0x229   :  { %5384 = vst [vmem:[#allocation83_spill] sm:$0xff] %v3302_v20  ;;  %vm5299_vm14 = vcmp.ge.s32.totalorder %v3310_v50, 3  ;;  %vm5297_vm15 = vcmp.ge.s32.totalorder %v3310_v50, 2  ;;  %vm5296_vm5 = vcmp.ge.s32.totalorder %v3310_v50, 1 }
 0x22a   :  { %vm3363_vm2 = vmand %vm403_vm13, %vm5299_vm14 }
 0x22b   :  { %554 = vrot.lane.b32.xlu1 %v2738_v43, %s2437_s12  ;;  %552 = vrot.lane.b32.xlu0 %v2735_v19, %s2437_s12  ;;  %vm3380_vm4 = vmand %vm403_vm13, %vm5297_vm15 }
 0x22f   :  { %587 = vrot.lane.b32.xlu1 %v2738_v43, %s2438_s13  ;;  %585 = vrot.lane.b32.xlu0 %v2735_v19, %s2438_s13 }
 0x233   :  { %620 = vrot.lane.b32.xlu1 %v2738_v43, %s2439_s14  ;;  %618 = vrot.lane.b32.xlu0 %v2735_v19, %s2439_s14 }
 0x237   :  { %653 = vrot.lane.b32.xlu1 %v2738_v43, %s2440_s15  ;;  %651 = vrot.lane.b32.xlu0 %v2735_v19, %s2440_s15 }
 0x23b   :  { %686 = vrot.lane.b32.xlu1 %v2738_v43, %s2441_s16  ;;  %684 = vrot.lane.b32.xlu0 %v2735_v19, %s2441_s16 }
 0x23f   :  { %719 = vrot.lane.b32.xlu1 %v2738_v43, %s2442_s17  ;;  %717 = vrot.lane.b32.xlu0 %v2735_v19, %s2442_s17 }
 0x243   :  { %752 = vrot.lane.b32.xlu1 %v2738_v43, %s2443_s18  ;;  %750 = vrot.lane.b32.xlu0 %v2735_v19, %s2443_s18 }
 0x247   :  { %785 = vrot.lane.b32.xlu1 %v2738_v43, %s2444_s19  ;;  %783 = vrot.lane.b32.xlu0 %v2735_v19, %s2444_s19 }
 0x24b   :  { %818 = vrot.lane.b32.xlu1 %v2738_v43, %s2445_s20  ;;  %816 = vrot.lane.b32.xlu0 %v2735_v19, %s2445_s20 }
 0x24f   :  { %851 = vrot.lane.b32.xlu1 %v2738_v43, %s2446_s21  ;;  %849 = vrot.lane.b32.xlu0 %v2735_v19, %s2446_s21 }
 0x253   :  { %884 = vrot.lane.b32.xlu1 %v2738_v43, %s2447_s22  ;;  %882 = vrot.lane.b32.xlu0 %v2735_v19, %s2447_s22 }
 0x257   :  { %917 = vrot.lane.b32.xlu1 %v2738_v43, %s2448_s23  ;;  %915 = vrot.lane.b32.xlu0 %v2735_v19, %s2448_s23 }
 0x25b   :  { %950 = vrot.lane.b32.xlu1 %v2738_v43, %s2449_s24  ;;  %948 = vrot.lane.b32.xlu0 %v2735_v19, %s2449_s24 }
 0x25f   :  { %983 = vrot.lane.b32.xlu1 %v2738_v43, %s2450_s25  ;;  %981 = vrot.lane.b32.xlu0 %v2735_v19, %s2450_s25 }
 0x263   :  { %1016 = vrot.lane.b32.xlu1 %v2738_v43, %s2451_s26  ;;  %1014 = vrot.lane.b32.xlu0 %v2735_v19, %s2451_s26 }
 0x267   :  { %1049 = vrot.lane.b32.xlu1 %v2738_v43, %s2433_s28  ;;  %1047 = vrot.lane.b32.xlu0 %v2735_v19, %s2433_s28 }
 0x26b   :  { %1082 = vrot.lane.b32.xlu1 %v2738_v43, %s2452_s27  ;;  %1080 = vrot.lane.b32.xlu0 %v2735_v19, %s2452_s27 }
 0x26f   :  { %1115 = vrot.lane.b32.xlu1 %v2738_v43, %s2453_s29  ;;  %1113 = vrot.lane.b32.xlu0 %v2735_v19, %s2453_s29 }
 0x273   :  { %1148 = vrot.lane.b32.xlu1 %v2738_v43, %s2454_s30  ;;  %1146 = vrot.lane.b32.xlu0 %v2735_v19, %s2454_s30 }
 0x277   :  { %1181 = vrot.lane.b32.xlu1 %v2738_v43, %s2455_s5  ;;  %1179 = vrot.lane.b32.xlu0 %v2735_v19, %s2455_s5 }
 0x27b   :  { %1214 = vrot.lane.b32.xlu1 %v2738_v43, %s2456_s6  ;;  %1212 = vrot.lane.b32.xlu0 %v2735_v19, %s2456_s6 }
 0x27f   :  { %1247 = vrot.lane.b32.xlu1 %v2738_v43, %s2457_s0  ;;  %1245 = vrot.lane.b32.xlu0 %v2735_v19, %s2457_s0 }
 0x283   :  { %1314 = vrot.lane.b32.xlu1 %v2738_v43, %s2458_s7  ;;  %1312 = vrot.lane.b32.xlu0 %v2735_v19, %s2458_s7 }
 0x287   :  { %1347 = vrot.lane.b32.xlu1 %v2738_v43, %s2459_s1  ;;  %1345 = vrot.lane.b32.xlu0 %v2735_v19, %s2459_s1 }
 0x28b   :  { %1380 = vrot.lane.b32.xlu1 %v2738_v43, %s2460_s8  ;;  %1378 = vrot.lane.b32.xlu0 %v2735_v19, %s2460_s8 }
 0x28f   :  { %1413 = vrot.lane.b32.xlu1 %v2738_v43, %s5184_s2  ;;  %1411 = vrot.lane.b32.xlu0 %v2735_v19, %s5184_s2  ;;  %s5190_s2 = smov 112  }
 0x293   :  { %1446 = vrot.lane.b32.xlu1 %v2738_v43, %s5186_s9  ;;  %1444 = vrot.lane.b32.xlu0 %v2735_v19, %s5186_s9  ;;  %s5192_s9 = smov 111  }
 0x295   :  { %v2868_v56 = vpop.permute.xlu1 %488  ;;  %v2870_v51 = vpop.permute.xlu0 %486 }
 0x297   :  { %1479 = vrot.lane.b32.xlu1 %v2738_v43, %s5188_s3  ;;  %1477 = vrot.lane.b32.xlu0 %v2735_v19, %s5188_s3  ;;  %s5194_s3 = smov 110  }
 0x299   :  { %v2876_v52 = vpop.permute.xlu1 %521  ;;  %v2878_v53 = vpop.permute.xlu0 %519 }
 0x29b   :  { %1512 = vrot.lane.b32.xlu1 %v2738_v43, %s5190_s2  ;;  %1510 = vrot.lane.b32.xlu0 %v2735_v19, %s5190_s2  ;;  %s5196_s2 = smov 109  }
 0x29d   :  { %v2884_v21 = vpop.permute.xlu1 %554  ;;  %v2886_v57 = vpop.permute.xlu0 %552 }
 0x29f   :  { %1545 = vrot.lane.b32.xlu1 %v2738_v43, %s5192_s9  ;;  %1543 = vrot.lane.b32.xlu0 %v2735_v19, %s5192_s9  ;;  %s5198_s9 = smov 99  }
 0x2a1   :  { %v2892_v60 = vpop.permute.xlu1 %587  ;;  %v2894_v63 = vpop.permute.xlu0 %585 }
 0x2a3   :  { %1578 = vrot.lane.b32.xlu1 %v2738_v43, %s5194_s3  ;;  %1576 = vrot.lane.b32.xlu0 %v2735_v19, %s5194_s3  ;;  %s5200_s3 = smov 98  }
 0x2a5   :  { %v2900_v3 = vpop.permute.xlu1 %620  ;;  %v2902_v7 = vpop.permute.xlu0 %618 }
 0x2a7   :  { %1611 = vrot.lane.b32.xlu1 %v2738_v43, %s5196_s2  ;;  %1609 = vrot.lane.b32.xlu0 %v2735_v19, %s5196_s2  ;;  %s5202_s2 = smov 97  }
 0x2a9   :  { %v2908_v10 = vpop.permute.xlu1 %653  ;;  %v2910_v11 = vpop.permute.xlu0 %651 }
 0x2ab   :  { %1644 = vrot.lane.b32.xlu1 %v2738_v43, %s5198_s9  ;;  %1642 = vrot.lane.b32.xlu0 %v2735_v19, %s5198_s9  ;;  %s5204_s9 = smov 96  }
 0x2ad   :  { %v2916_v12 = vpop.permute.xlu1 %686  ;;  %v2918_v13 = vpop.permute.xlu0 %684 }
 0x2af   :  { %1677 = vrot.lane.b32.xlu1 %v2738_v43, %s5200_s3  ;;  %1675 = vrot.lane.b32.xlu0 %v2735_v19, %s5200_s3  ;;  %s5206_s3 = smov 95  }
 0x2b1   :  { %v2924_v5 = vpop.permute.xlu1 %719  ;;  %v2926_v16 = vpop.permute.xlu0 %717 }
 0x2b3   :  { %1710 = vrot.lane.b32.xlu1 %v2738_v43, %s5202_s2  ;;  %1708 = vrot.lane.b32.xlu0 %v2735_v19, %s5202_s2  ;;  %s5208_s2 = smov 94  }
 0x2b5   :  { %v2932_v17 = vpop.permute.xlu1 %752  ;;  %v2934_v6 = vpop.permute.xlu0 %750 }
 0x2b7   :  { %1743 = vrot.lane.b32.xlu1 %v2738_v43, %s5204_s9  ;;  %1741 = vrot.lane.b32.xlu0 %v2735_v19, %s5204_s9  ;;  %s5210_s9 = smov 93  }
 0x2b9   :  { %v2940_v22 = vpop.permute.xlu1 %785  ;;  %v2942_v23 = vpop.permute.xlu0 %783 }
 0x2bb   :  { %1776 = vrot.lane.b32.xlu1 %v2738_v43, %s5206_s3  ;;  %1774 = vrot.lane.b32.xlu0 %v2735_v19, %s5206_s3  ;;  %s5212_s3 = smov 83  }
 0x2bd   :  { %v2948_v26 = vpop.permute.xlu1 %818  ;;  %v2950_v27 = vpop.permute.xlu0 %816 }
 0x2bf   :  { %1809 = vrot.lane.b32.xlu1 %v2738_v43, %s5208_s2  ;;  %1807 = vrot.lane.b32.xlu0 %v2735_v19, %s5208_s2  ;;  %s5214_s2 = smov 82  }
 0x2c1   :  { %v2956_v28 = vpop.permute.xlu1 %851  ;;  %v2958_v29 = vpop.permute.xlu0 %849 }
 0x2c3   :  { %1842 = vrot.lane.b32.xlu1 %v2738_v43, %s5210_s9  ;;  %1840 = vrot.lane.b32.xlu0 %v2735_v19, %s5210_s9  ;;  %s5216_s9 = smov 81  }
 0x2c5   :  { %v2964_v30 = vpop.permute.xlu1 %884  ;;  %v2966_v33 = vpop.permute.xlu0 %882 }
 0x2c7   :  { %1875 = vrot.lane.b32.xlu1 %v2738_v43, %s5212_s3  ;;  %1873 = vrot.lane.b32.xlu0 %v2735_v19, %s5212_s3  ;;  %s2478_s3 = smov 80  }
 0x2c9   :  { %v2972_v38 = vpop.permute.xlu1 %917  ;;  %v2974_v8 = vpop.permute.xlu0 %915 }
 0x2cb   :  { %1908 = vrot.lane.b32.xlu1 %v2738_v43, %s5214_s2  ;;  %1906 = vrot.lane.b32.xlu0 %v2735_v19, %s5214_s2  ;;  %s2479_s2 = smov 79  }
 0x2cd   :  { %v2980_v2 = vpop.permute.xlu1 %950  ;;  %v2982_v4 = vpop.permute.xlu0 %948 }
 0x2cf   :  { %1941 = vrot.lane.b32.xlu1 %v2738_v43, %s5216_s9  ;;  %1939 = vrot.lane.b32.xlu0 %v2735_v19, %s5216_s9  ;;  %s2480_s9 = smov 78  }
 0x2d1   :  { %v2988_v44 = vpop.permute.xlu1 %983  ;;  %v2990_v14 = vpop.permute.xlu0 %981 }
 0x2d3   :  { %1974 = vrot.lane.b32.xlu1 %v2738_v43, %s2478_s3  ;;  %1972 = vrot.lane.b32.xlu0 %v2735_v19, %s2478_s3 }
 0x2d5   :  { %v2996_v45 = vpop.permute.xlu1 %1016  ;;  %v2998_v15 = vpop.permute.xlu0 %1014 }
 0x2d7   :  { %2007 = vrot.lane.b32.xlu1 %v2738_v43, %s2479_s2  ;;  %2005 = vrot.lane.b32.xlu0 %v2735_v19, %s2479_s2 }
 0x2d9   :  { %v3004_v46 = vpop.permute.xlu1 %1049  ;;  %v3006_v49 = vpop.permute.xlu0 %1047 }
 0x2db   :  { %2040 = vrot.lane.b32.xlu1 %v2738_v43, %s2480_s9  ;;  %2038 = vrot.lane.b32.xlu0 %v2735_v19, %s2480_s9 }
 0x2dd   :  { %v3012_v25 = vpop.permute.xlu1 %1082  ;;  %v3019_v62 = vpop.permute.xlu0 %1080 }
 0x2df   :  { %473 = vrot.lane.b32.xlu1 %v3017_v24, %s2435_s10  ;;  %471 = vrot.lane.b32.xlu0 %v3024_v61, %s2435_s10  ;;  %s3230_s10 = sld [smem:[#allocation6 + $0x31]] }
 0x2e1   :  { %v3030_v1 = vpop.permute.xlu1 %1115  ;;  %v3032_v0 = vpop.permute.xlu0 %1113 }
 0x2e3   :  { %514 = vrot.lane.b32.xlu1 %v3017_v24, %s2436_s11  ;;  %512 = vrot.lane.b32.xlu0 %v3024_v61, %s2436_s11  ;;  %s3232_s11 = sld [smem:[#allocation6 + $0x32]] }
 0x2e5   :  { %v3038_v59 = vpop.permute.xlu1 %1148  ;;  %v3040_v58 = vpop.permute.xlu0 %1146 }
 0x2e7   :  { %547 = vrot.lane.b32.xlu1 %v3017_v24, %s2437_s12  ;;  %545 = vrot.lane.b32.xlu0 %v3024_v61, %s2437_s12  ;;  %s3236_s12 = sld [smem:[#allocation6 + $0x33]] }
 0x2e9   :  { %v3046_v9 = vpop.permute.xlu1 %1181  ;;  %v3048_v18 = vpop.permute.xlu0 %1179 }
 0x2eb   :  { %580 = vrot.lane.b32.xlu1 %v3017_v24, %s2438_s13  ;;  %578 = vrot.lane.b32.xlu0 %v3024_v61, %s2438_s13  ;;  %s3238_s13 = sld [smem:[#allocation6 + $0x34]] }
 0x2ed   :  { %v3054_v55 = vpop.permute.xlu1 %1214  ;;  %v3056_v54 = vpop.permute.xlu0 %1212 }
 0x2ee   :  { %5332 = vst [vmem:[#allocation33_spill] sm:$0xff] %v3054_v55  ;;  %5333 = vst [vmem:[#allocation34_spill] sm:$0xff] %v3056_v54  ;;  %v523_v54 = vsel %vm516_vm8, %v2878_v53, %v2876_v52 }
 0x2ef   :  { %613 = vrot.lane.b32.xlu1 %v3017_v24, %s2439_s14  ;;  %611 = vrot.lane.b32.xlu0 %v3024_v61, %s2439_s14  ;;  %s3242_s14 = sld [smem:[#allocation6 + $0x35]] }
 0x2f1   :  { %v3062_v48 = vpop.permute.xlu1 %1247  ;;  %v3064_v47 = vpop.permute.xlu0 %1245 }
 0x2f2   :  { %5334 = vst [vmem:[#allocation35_spill] sm:$0xff] %v3062_v48  ;;  %5335 = vst [vmem:[#allocation36_spill] sm:$0xff] %v3064_v47  ;;  %v556_v48 = vsel %vm549_vm9, %v2886_v57, %v2884_v21 }
 0x2f3   :  { %646 = vrot.lane.b32.xlu1 %v3017_v24, %s2440_s15  ;;  %644 = vrot.lane.b32.xlu0 %v3024_v61, %s2440_s15  ;;  %s3244_s15 = sld [smem:[#allocation6 + $0x36]] }
 0x2f5   :  { %v3070_v41 = vpop.permute.xlu1 %1314  ;;  %v3072_v39 = vpop.permute.xlu0 %1312 }
 0x2f6   :  { %5336 = vst [vmem:[#allocation37_spill] sm:$0xff] %v3070_v41  ;;  %5337 = vst [vmem:[#allocation38_spill] sm:$0xff] %v3072_v39 }
 0x2f7   :  { %679 = vrot.lane.b32.xlu1 %v3017_v24, %s2441_s16  ;;  %677 = vrot.lane.b32.xlu0 %v3024_v61, %s2441_s16  ;;  %s3248_s16 = sld [smem:[#allocation6 + $0x37]] }
 0x2f9   :  { %v3078_v35 = vpop.permute.xlu1 %1347  ;;  %v3080_v34 = vpop.permute.xlu0 %1345 }
 0x2fa   :  { %5338 = vst [vmem:[#allocation39_spill] sm:$0xff] %v3078_v35  ;;  %5339 = vst [vmem:[#allocation40_spill] sm:$0xff] %v3080_v34  ;;  %v490_v35 = vsel %vm475_vm7, %v2870_v51, %v2868_v56 }
 0x2fb   :  { %712 = vrot.lane.b32.xlu1 %v3017_v24, %s2442_s17  ;;  %710 = vrot.lane.b32.xlu0 %v3024_v61, %s2442_s17  ;;  %s3250_s17 = sld [smem:[#allocation6 + $0x38]] }
 0x2fd   :  { %v3086_v37 = vpop.permute.xlu1 %1380  ;;  %v3088_v36 = vpop.permute.xlu0 %1378 }
 0x2fe   :  { %5340 = vst [vmem:[#allocation41_spill] sm:$0xff] %v3086_v37  ;;  %5341 = vst [vmem:[#allocation42_spill] sm:$0xff] %v3088_v36 }
 0x2ff   :  { %745 = vrot.lane.b32.xlu1 %v3017_v24, %s2443_s18  ;;  %743 = vrot.lane.b32.xlu0 %v3024_v61, %s2443_s18  ;;  %s3254_s18 = sld [smem:[#allocation6 + $0x39]] }
 0x301   :  { %v3094_v31 = vpop.permute.xlu1 %1413  ;;  %v3096_v32 = vpop.permute.xlu0 %1411 }
 0x302   :  { %5342 = vst [vmem:[#allocation43_spill] sm:$0xff] %v3094_v31  ;;  %5343 = vst [vmem:[#allocation44_spill] sm:$0xff] %v3096_v32 }
 0x303   :  { %778 = vrot.lane.b32.xlu1 %v3017_v24, %s2444_s19  ;;  %776 = vrot.lane.b32.xlu0 %v3024_v61, %s2444_s19  ;;  %s3258_s19 = sld [smem:[#allocation6]] }
 0x305   :  { %v3102_v42 = vpop.permute.xlu1 %1446  ;;  %v3104_v37 = vpop.permute.xlu0 %1444 }
 0x306   :  { %5344 = vst [vmem:[#allocation45_spill] sm:$0xff] %v3102_v42  ;;  %5345 = vst [vmem:[#allocation46_spill] sm:$0xff] %v3104_v37 }
 0x307   :  { %811 = vrot.lane.b32.xlu1 %v3017_v24, %s2445_s20  ;;  %809 = vrot.lane.b32.xlu0 %v3024_v61, %s2445_s20  ;;  %s3260_s20 = sld [smem:[#allocation6 + $0x3a]] }
 0x309   :  { %v3110_v36 = vpop.permute.xlu1 %1479  ;;  %v3112_v31 = vpop.permute.xlu0 %1477  ;;  %v494_v47 = vstv %s3258_s19  ;;  %s3596_s19 = sld [smem:[#allocation6 + $0xa]] }
 0x30a   :  { %5346 = vst [vmem:[#allocation47_spill] sm:$0xff] %v3110_v36  ;;  %5347 = vst [vmem:[#allocation48_spill] sm:$0xff] %v3112_v31 }
 0x30b   :  { %844 = vrot.lane.b32.xlu1 %v3017_v24, %s2446_s21  ;;  %842 = vrot.lane.b32.xlu0 %v3024_v61, %s2446_s21  ;;  %s3262_s21 = sld [smem:[#allocation6 + $0x3b]] }
 0x30d   :  { %v3118_v32 = vpop.permute.xlu1 %1512  ;;  %v3120_v42 = vpop.permute.xlu0 %1510 }
 0x30e   :  { %5348 = vst [vmem:[#allocation49_spill] sm:$0xff] %v3118_v32  ;;  %5349 = vst [vmem:[#allocation50_spill] sm:$0xff] %v3120_v42 }
 0x30f   :  { %877 = vrot.lane.b32.xlu1 %v3017_v24, %s2447_s22  ;;  %875 = vrot.lane.b32.xlu0 %v3024_v61, %s2447_s22  ;;  %s5380_s22 = smov 115  }
 0x311   :  { %v3126_v37 = vpop.permute.xlu1 %1545  ;;  %v3128_v36 = vpop.permute.xlu0 %1543 }
 0x312   :  { %5350 = vst [vmem:[#allocation51_spill] sm:$0xff] %v3126_v37  ;;  %5351 = vst [vmem:[#allocation52_spill] sm:$0xff] %v3128_v36 }
 0x313   :  { %910 = vrot.lane.b32.xlu1 %v3017_v24, %s2448_s23  ;;  %908 = vrot.lane.b32.xlu0 %v3024_v61, %s2448_s23  ;;  %s3276_s23 = sld [smem:[#allocation6 + $0x1]] }
 0x315   :  { %v3134_v31 = vpop.permute.xlu1 %1578  ;;  %v3136_v32 = vpop.permute.xlu0 %1576 }
 0x316   :  { %5352 = vst [vmem:[#allocation53_spill] sm:$0xff] %v3134_v31  ;;  %5353 = vst [vmem:[#allocation54_spill] sm:$0xff] %v3136_v32 }
 0x317   :  { %943 = vrot.lane.b32.xlu1 %v3017_v24, %s2449_s24  ;;  %941 = vrot.lane.b32.xlu0 %v3024_v61, %s2449_s24  ;;  %s5383_s24 = smov 114  }
 0x319   :  { %v3142_v42 = vpop.permute.xlu1 %1611  ;;  %v3144_v37 = vpop.permute.xlu0 %1609 }
 0x31a   :  { %5354 = vst [vmem:[#allocation55_spill] sm:$0xff] %v3142_v42  ;;  %5355 = vst [vmem:[#allocation56_spill] sm:$0xff] %v3144_v37 }
 0x31b   :  { %976 = vrot.lane.b32.xlu1 %v3017_v24, %s2450_s25  ;;  %974 = vrot.lane.b32.xlu0 %v3024_v61, %s2450_s25  ;;  %s3313_s25 = sld [smem:[#allocation6 + $0x2]] }
 0x31d   :  { %v3150_v36 = vpop.permute.xlu1 %1644  ;;  %v3152_v31 = vpop.permute.xlu0 %1642 }
 0x31e   :  { %5356 = vst [vmem:[#allocation57_spill] sm:$0xff] %v3150_v36  ;;  %5357 = vst [vmem:[#allocation58_spill] sm:$0xff] %v3152_v31 }
 0x31f   :  { %1009 = vrot.lane.b32.xlu1 %v3017_v24, %s2451_s26  ;;  %1007 = vrot.lane.b32.xlu0 %v3024_v61, %s2451_s26  ;;  %s5385_s26 = smov 113  }
 0x321   :  { %v3158_v32 = vpop.permute.xlu1 %1677  ;;  %v3160_v42 = vpop.permute.xlu0 %1675 }
 0x322   :  { %5358 = vst [vmem:[#allocation59_spill] sm:$0xff] %v3158_v32  ;;  %5359 = vst [vmem:[#allocation60_spill] sm:$0xff] %v3160_v42 }
 0x323   :  { %1042 = vrot.lane.b32.xlu1 %v3017_v24, %s2433_s28  ;;  %1040 = vrot.lane.b32.xlu0 %v3024_v61, %s2433_s28 }
 0x325   :  { %v3166_v37 = vpop.permute.xlu1 %1710  ;;  %v3168_v36 = vpop.permute.xlu0 %1708 }
 0x326   :  { %5360 = vst [vmem:[#allocation61_spill] sm:$0xff] %v3166_v37  ;;  %5361 = vst [vmem:[#allocation62_spill] sm:$0xff] %v3168_v36 }
 0x327   :  { %1075 = vrot.lane.b32.xlu1 %v3017_v24, %s2452_s27  ;;  %1073 = vrot.lane.b32.xlu0 %v3024_v61, %s2452_s27  ;;  %s3344_s27 = sld [smem:[#allocation6 + $0x3]] }
 0x329   :  { %v3174_v31 = vpop.permute.xlu1 %1743  ;;  %v3176_v32 = vpop.permute.xlu0 %1741 }
 0x32a   :  { %5362 = vst [vmem:[#allocation63_spill] sm:$0xff] %v3174_v31  ;;  %5363 = vst [vmem:[#allocation64_spill] sm:$0xff] %v3176_v32 }
 0x32b   :  { %1108 = vrot.lane.b32.xlu1 %v3017_v24, %s2453_s29  ;;  %1106 = vrot.lane.b32.xlu0 %v3024_v61, %s2453_s29  ;;  %s5386_s29 = smov 112  }
 0x32d   :  { %v3182_v42 = vpop.permute.xlu1 %1776  ;;  %v3184_v37 = vpop.permute.xlu0 %1774 }
 0x32e   :  { %5364 = vst [vmem:[#allocation65_spill] sm:$0xff] %v3182_v42  ;;  %5365 = vst [vmem:[#allocation66_spill] sm:$0xff] %v3184_v37 }
 0x32f   :  { %1141 = vrot.lane.b32.xlu1 %v3017_v24, %s2454_s30  ;;  %1139 = vrot.lane.b32.xlu0 %v3024_v61, %s2454_s30  ;;  %s3385_s30 = sld [smem:[#allocation6 + $0x4]] }
 0x331   :  { %v3190_v36 = vpop.permute.xlu1 %1809  ;;  %v3192_v31 = vpop.permute.xlu0 %1807 }
 0x332   :  { %5366 = vst [vmem:[#allocation67_spill] sm:$0xff] %v3190_v36  ;;  %5367 = vst [vmem:[#allocation68_spill] sm:$0xff] %v3192_v31 }
 0x333   :  { %1174 = vrot.lane.b32.xlu1 %v3017_v24, %s2455_s5  ;;  %1172 = vrot.lane.b32.xlu0 %v3024_v61, %s2455_s5  ;;  %s5392_s5 = smov 111  }
 0x335   :  { %v3198_v32 = vpop.permute.xlu1 %1842  ;;  %v3200_v42 = vpop.permute.xlu0 %1840 }
 0x336   :  { %5368 = vst [vmem:[#allocation69_spill] sm:$0xff] %v3198_v32  ;;  %5369 = vst [vmem:[#allocation70_spill] sm:$0xff] %v3200_v42 }
 0x337   :  { %1207 = vrot.lane.b32.xlu1 %v3017_v24, %s2456_s6  ;;  %1205 = vrot.lane.b32.xlu0 %v3024_v61, %s2456_s6  ;;  %s3419_s6 = sld [smem:[#allocation6 + $0x5]] }
 0x339   :  { %v3206_v37 = vpop.permute.xlu1 %1875  ;;  %v3208_v36 = vpop.permute.xlu0 %1873 }
 0x33a   :  { %5370 = vst [vmem:[#allocation71_spill] sm:$0xff] %v3206_v37  ;;  %5371 = vst [vmem:[#allocation72_spill] sm:$0xff] %v3208_v36 }
 0x33b   :  { %1240 = vrot.lane.b32.xlu1 %v3017_v24, %s2457_s0  ;;  %1238 = vrot.lane.b32.xlu0 %v3024_v61, %s2457_s0  ;;  %s5397_s0 = smov 110  }
 0x33d   :  { %v3214_v31 = vpop.permute.xlu1 %1908  ;;  %v3216_v32 = vpop.permute.xlu0 %1906 }
 0x33e   :  { %5372 = vst [vmem:[#allocation73_spill] sm:$0xff] %v3214_v31  ;;  %5373 = vst [vmem:[#allocation74_spill] sm:$0xff] %v3216_v32 }
 0x33f   :  { %1307 = vrot.lane.b32.xlu1 %v3017_v24, %s2458_s7  ;;  %1305 = vrot.lane.b32.xlu0 %v3024_v61, %s2458_s7  ;;  %s3448_s7 = sld [smem:[#allocation6 + $0x6]] }
 0x341   :  { %v3222_v42 = vpop.permute.xlu1 %1941  ;;  %v3224_v37 = vpop.permute.xlu0 %1939 }
 0x342   :  { %5374 = vst [vmem:[#allocation75_spill] sm:$0xff] %v3222_v42  ;;  %5375 = vst [vmem:[#allocation76_spill] sm:$0xff] %v3224_v37  ;;  %v530_v37 = vstv %s3232_s11  ;;  %s3510_s11 = sld [smem:[#allocation6 + $0x3c]] }
 0x343   :  { %1340 = vrot.lane.b32.xlu1 %v3017_v24, %s2459_s1  ;;  %1338 = vrot.lane.b32.xlu0 %v3024_v61, %s2459_s1  ;;  %s5400_s1 = smov 109  }
 0x345   :  { %v3234_v32 = vpop.permute.xlu1 %1974  ;;  %v3240_v31 = vpop.permute.xlu0 %1972 }
 0x346   :  { %5376 = vst [vmem:[#allocation77_spill] sm:$0xff] %v3234_v32  ;;  %5377 = vst [vmem:[#allocation78_spill] sm:$0xff] %v3240_v31 }
 0x347   :  { %1373 = vrot.lane.b32.xlu1 %v3017_v24, %s2460_s8  ;;  %1371 = vrot.lane.b32.xlu0 %v3024_v61, %s2460_s8  ;;  %s3484_s8 = sld [smem:[#allocation6 + $0x7]] }
 0x349   :  { %v3256_v31 = vpop.permute.xlu1 %2007  ;;  %v3264_v32 = vpop.permute.xlu0 %2005 }
 0x34a   :  { %5378 = vst [vmem:[#allocation79_spill] sm:$0xff] %v3256_v31  ;;  %5379 = vst [vmem:[#allocation80_spill] sm:$0xff] %v3264_v32  ;;  %v497_v31 = vstv %s3230_s10  ;;  %v563_v32 = vstv %s3236_s12  ;;  %s5405_s10 = smov 99   ;;  %s3522_s12 = sld [smem:[#allocation6 + $0x8]] }
 0x34b   :  { %1406 = vrot.lane.b32.xlu1 %v3017_v24, %s5380_s22  ;;  %1404 = vrot.lane.b32.xlu0 %v3024_v61, %s5380_s22  ;;  %s3624_s22 = sld [smem:[#allocation6 + $0x3f]] }
 0x34d   :  { %v3274_v42 = vpop.permute.xlu1 %2040  ;;  %v3282_v34 = vpop.permute.xlu0 %2038 }
 0x34e   :  { %5381 = vst [vmem:[#allocation81_spill] sm:$0xff] %v3274_v42  ;;  %5382 = vst [vmem:[#allocation82_spill] sm:$0xff] %v3282_v34  ;;  %v491_v42 = vsel %vm475_vm7, %v2868_v56, %v2870_v51  ;;  %v524_v56 = vsel %vm516_vm8, %v2876_v52, %v2878_v53  ;;  %v499_v34 = vmul.f32 %v497_v31, %v490_v35  ;;  %v3333_v35 = vand.u32 15, %v3302_v20 }
 0x34f   :  { %1439 = vrot.lane.b32.xlu1 %v3017_v24, %s5383_s24  ;;  %1437 = vrot.lane.b32.xlu0 %v3024_v61, %s5383_s24  ;;  %v498_v41 = vmul.f32 %v497_v31, %v491_v42  ;;  %v557_v51 = vsel %vm549_vm9, %v2884_v21, %v2886_v57  ;;  %v531_v31 = vmul.f32 %v530_v37, %v524_v56  ;;  %s3663_s24 = sld [smem:[#allocation6 + $0x40]] }
 0x350   :  { %v532_v56 = vmul.f32 %v530_v37, %v523_v54  ;;  %v564_v36 = vmul.f32 %v563_v32, %v557_v51  ;;  %v565_v37 = vmul.f32 %v563_v32, %v556_v48  ;;  %vm5300_vm1 = vcmp.ge.s32.totalorder %v3333_v35, 3 }
 0x351   :  { %v474_v39 = vpop.permute.xlu1 %473  ;;  %v472_v55 = vpop.permute.xlu0 %471  ;;  %v589_v32 = vsel %vm582_vm10, %v2894_v63, %v2892_v60  ;;  %v5389_v48 = vstv %s3238_s13  ;;  %vm5298_vm3 = vcmp.ge.s32.totalorder %v3333_v35, 2 }
 0x352   :  { %v476_v19 = vsel %vm475_vm7, %v472_v55, %v474_v39  ;;  %v477_v42 = vsel %vm475_vm7, %v474_v39, %v472_v55  ;;  %v527_v55 = vstv %s3276_s23  ;;  %vm5295_vm7 = vcmp.ge.s32.totalorder %v3333_v35, 1  ;;  %s3635_s23 = sld [smem:[#allocation6 + $0xb]] }
 0x353   :  { %1472 = vrot.lane.b32.xlu1 %v3017_v24, %s5385_s26  ;;  %v495_v52 = vmul.f32 %v494_v47, %v477_v42  ;;  %v496_v53 = vmul.f32 %v494_v47, %v476_v19  ;;  %1470 = vrot.lane.b32.xlu0 %v3024_v61, %s5385_s26  ;;  %v590_v47 = vsel %vm582_vm10, %v2892_v60, %v2894_v63  ;;  %s3702_s26 = sld [smem:[#allocation6 + $0x41]] }
 0x354   :  { %v597_v51 = vmul.f32 %v5389_v48, %v590_v47  ;;  %v623_v60 = vsel %vm615_vm11, %v2900_v3, %v2902_v7 }
 0x355   :  { %v515_v39 = vpop.permute.xlu1 %514  ;;  %v513_v19 = vpop.permute.xlu0 %512  ;;  %v500_v21 = vadd.f32 %v498_v41, %v495_v52  ;;  %v501_v57 = vadd.f32 %v499_v34, %v496_v53  ;;  %v560_v53 = vstv %s3313_s25  ;;  %s3674_s25 = sld [smem:[#allocation6 + $0xc]] }
 0x356   :  { %v517_v42 = vsel %vm516_vm8, %v513_v19, %v515_v39  ;;  %v518_v20 = vsel %vm516_vm8, %v515_v39, %v513_v19  ;;  %vm3414_vm8 = vmand %vm403_vm13, %vm5296_vm5 }
 0x357   :  { %1505 = vrot.lane.b32.xlu1 %v3017_v24, %s5386_s29  ;;  %v528_v41 = vmul.f32 %v527_v55, %v518_v20  ;;  %v529_v54 = vmul.f32 %v527_v55, %v517_v42  ;;  %1503 = vrot.lane.b32.xlu0 %v3024_v61, %s5386_s29  ;;  %v508_v47 = vsel %vm3363_vm2, %v500_v21, 0.0  ;;  %v509_v19 = vsel %vm5300_vm1, %v501_v57, 0.0  ;;  %s5430_s29 = smov 93  }
 0x359   :  { %v548_v20 = vpop.permute.xlu1 %547  ;;  %v533_v63 = vadd.f32 %v531_v31, %v528_v41  ;;  %v534_v39 = vadd.f32 %v532_v56, %v529_v54  ;;  %v546_v55 = vpop.permute.xlu0 %545  ;;  %v655_v54 = vsel %vm648_vm12, %v2910_v11, %v2908_v10 }
 0x35a   :  { %v550_v42 = vsel %vm549_vm9, %v546_v55, %v548_v20  ;;  %v551_v48 = vsel %vm549_vm9, %v548_v20, %v546_v55  ;;  %v593_v20 = vstv %s3344_s27  ;;  %vm5294_vm9 = vcmp.lt.s32.totalorder %v3310_v50, 15  ;;  %s3705_s27 = sld [smem:[#allocation6 + $0xd]] }
 0x35b   :  { %1538 = vrot.lane.b32.xlu1 %v3017_v24, %s5392_s5  ;;  %v541_v31 = vsel %vm3380_vm4, %v533_v63, 0.0  ;;  %v542_v56 = vsel %vm5298_vm3, %v534_v39, 0.0  ;;  %v561_v21 = vmul.f32 %v560_v53, %v551_v48  ;;  %v562_v57 = vmul.f32 %v560_v53, %v550_v42  ;;  %1536 = vrot.lane.b32.xlu0 %v3024_v61, %s5392_s5  ;;  %vm3479_vm2 = vmand %vm403_vm13, %vm5294_vm9  ;;  %s5434_s5 = smov 83  }
 0x35c   :  { %v543_v34 = vadd.f32 %v541_v31, %v508_v47  ;;  %v544_v41 = vadd.f32 %v542_v56, %v509_v19  ;;  %v5395_v53 = vstv %s3238_s13  ;;  %v622_v39 = vsel %vm615_vm11, %v2902_v7, %v2900_v3  ;;  %s5410_s13 = smov 98  }
 0x35d   :  { %v581_v52 = vpop.permute.xlu1 %580  ;;  %v598_v63 = vmul.f32 %v5395_v53, %v589_v32  ;;  %v566_v55 = vadd.f32 %v564_v36, %v561_v21  ;;  %v567_v47 = vadd.f32 %v565_v37, %v562_v57  ;;  %v579_v19 = vpop.permute.xlu0 %578  ;;  %v5396_v42 = vstv %s3242_s14  ;;  %s3546_s14 = sld [smem:[#allocation6 + $0x3d]] }
 0x35e   :  { %v630_v48 = vmul.f32 %v5396_v42, %v623_v60  ;;  %v656_v31 = vsel %vm648_vm12, %v2908_v10, %v2910_v11  ;;  %v583_v56 = vsel %vm582_vm10, %v579_v19, %v581_v52  ;;  %v584_v32 = vsel %vm582_vm10, %v581_v52, %v579_v19 }
 0x35f   :  { %1571 = vrot.lane.b32.xlu1 %v3017_v24, %s5397_s0  ;;  %v574_v36 = vsel %vm3414_vm8, %v566_v55, 0.0  ;;  %v575_v3 = vsel %vm5295_vm7, %v567_v47, 0.0  ;;  %v594_v7 = vmul.f32 %v593_v20, %v584_v32  ;;  %v595_v37 = vmul.f32 %v593_v20, %v583_v56  ;;  %1569 = vrot.lane.b32.xlu0 %v3024_v61, %s5397_s0  ;;  %s5439_s0 = smov 82  }
 0x360   :  { %v5398_v60 = vmov %v5396_v42  ;;  %v576_v57 = vadd.f32 %v574_v36, %v543_v34  ;;  %v577_v53 = vadd.f32 %v575_v3, %v544_v41  ;;  %v626_v19 = vstv %s3385_s30  ;;  %s3740_s30 = sld [smem:[#allocation6 + $0xe]] }
 0x361   :  { %v631_v21 = vmul.f32 %v5398_v60, %v622_v39  ;;  %v614_v52 = vpop.permute.xlu1 %613  ;;  %v599_v55 = vadd.f32 %v597_v51, %v594_v7  ;;  %v600_v47 = vadd.f32 %v598_v63, %v595_v37  ;;  %v612_v20 = vpop.permute.xlu0 %611  ;;  %v5399_v42 = vstv %s3244_s15  ;;  %s3558_s15 = sld [smem:[#allocation6 + $0x9]] }
 0x362   :  { %v663_v56 = vmul.f32 %v5399_v42, %v656_v31  ;;  %v689_v34 = vsel %vm681_vm0, %v2916_v12, %v2918_v13  ;;  %v616_v41 = vsel %vm615_vm11, %v612_v20, %v614_v52  ;;  %v617_v10 = vsel %vm615_vm11, %v614_v52, %v612_v20 }
 0x363   :  { %1604 = vrot.lane.b32.xlu1 %v3017_v24, %s5400_s1  ;;  %vm747_vm10 = vcmp.lt.s32.totalorder %v2591_v40, 34  ;;  %v607_v11 = vsel %vm403_vm13, %v599_v55, 0.0  ;;  %v610_v51 = vadd.f32 %v600_v47, %v577_v53  ;;  %v627_v63 = vmul.f32 %v626_v19, %v617_v10  ;;  %1602 = vrot.lane.b32.xlu0 %v3024_v61, %s5400_s1  ;;  %s3816_s1 = sld [smem:[#allocation6 + $0x10]] }
 0x364   :  { %v628_v39 = vmul.f32 %v626_v19, %v616_v41  ;;  %v5401_v31 = vmov %v5399_v42  ;;  %v609_v36 = vadd.f32 %v607_v11, %v576_v57  ;;  %vm5292_vm11 = vcmp.lt.s32.totalorder %v3333_v35, 15 }
 0x365   :  { %v664_v32 = vmul.f32 %v5401_v31, %v655_v54  ;;  %v647_v7 = vpop.permute.xlu1 %646  ;;  %v659_v37 = vstv %s3419_s6  ;;  %v688_v60 = vsel %vm681_vm0, %v2918_v13, %v2916_v12  ;;  %v632_v57 = vadd.f32 %v630_v48, %v627_v63  ;;  %v645_v52 = vpop.permute.xlu0 %644  ;;  %s3777_s6 = sld [smem:[#allocation6 + $0xf]] }
 0x366   :  { %v633_v53 = vadd.f32 %v631_v21, %v628_v39  ;;  %vm5293_vm4 = vcmp.lt.s32.totalorder %v3310_v50, 14  ;;  %v5404_v19 = vstv %s3248_s16  ;;  %v722_v55 = vsel %vm714_vm6, %v2924_v5, %v2926_v16  ;;  %s5414_s16 = smov 97  }
 0x367   :  { %v696_v54 = vmul.f32 %v5404_v19, %v689_v34  ;;  %v649_v47 = vsel %vm648_vm12, %v645_v52, %v647_v7  ;;  %v650_v20 = vsel %vm648_vm12, %v647_v7, %v645_v52  ;;  %1637 = vrot.lane.b32.xlu1 %v3017_v24, %s5405_s10  ;;  %vm780_vm8 = vcmp.lt.s32.totalorder %v2591_v40, 33  ;;  %1635 = vrot.lane.b32.xlu0 %v3024_v61, %s5405_s10  ;;  %s5442_s10 = smov 81  }
 0x368   :  { %v640_v12 = vsel %vm3479_vm2, %v632_v57, 0.0  ;;  %v641_v13 = vsel %vm5292_vm11, %v633_v53, 0.0  ;;  %v660_v48 = vmul.f32 %v659_v37, %v650_v20  ;;  %v661_v21 = vmul.f32 %v659_v37, %v649_v47  ;;  %vm3517_vm2 = vmand %vm403_vm13, %vm5293_vm4 }
 0x369   :  { %v642_v42 = vadd.f32 %v640_v12, %v609_v36  ;;  %v643_v34 = vadd.f32 %v641_v13, %v610_v51  ;;  %vm5303_vm12 = vcmp.lt.s32.totalorder %v3333_v35, 14  ;;  %v680_v10 = vpop.permute.xlu1 %679  ;;  %v692_v11 = vstv %s3448_s7  ;;  %v678_v51 = vpop.permute.xlu0 %677  ;;  %s3805_s7 = sld [smem:[#allocation6 + $0x42]] }
 0x36a   :  { %v5408_v63 = vmov %v5404_v19  ;;  %v665_v31 = vadd.f32 %v663_v56, %v660_v48  ;;  %v666_v3 = vadd.f32 %v664_v32, %v661_v21  ;;  %vm5302_vm11 = vcmp.lt.s32.totalorder %v3310_v50, 13 }
 0x36b   :  { %v697_v39 = vmul.f32 %v5408_v63, %v688_v60  ;;  %v721_v36 = vsel %vm714_vm6, %v2926_v16, %v2924_v5  ;;  %v5409_v7 = vstv %s3250_s17  ;;  %v682_v57 = vsel %vm681_vm0, %v678_v51, %v680_v10  ;;  %1670 = vrot.lane.b32.xlu1 %v3017_v24, %s5410_s13  ;;  %1668 = vrot.lane.b32.xlu0 %v3024_v61, %s5410_s13  ;;  %vm3553_vm9 = vmand %vm403_vm13, %vm5302_vm11  ;;  %s3585_s17 = sld [smem:[#allocation6 + $0x3e]] }
 0x36c   :  { %v729_v37 = vmul.f32 %v5409_v7, %v722_v55  ;;  %v683_v53 = vsel %vm681_vm0, %v680_v10, %v678_v51  ;;  %vm813_vm4 = vcmp.lt.s32.totalorder %v2591_v40, 32  ;;  %v673_v56 = vsel %vm3517_vm2, %v665_v31, 0.0  ;;  %s3869_s13 = sld [smem:[#allocation6 + $0x46]] }
 0x36d   :  { %v674_v5 = vsel %vm5303_vm12, %v666_v3, 0.0  ;;  %v693_v16 = vmul.f32 %v692_v11, %v683_v53  ;;  %v694_v32 = vmul.f32 %v692_v11, %v682_v57  ;;  %v675_v60 = vadd.f32 %v673_v56, %v642_v42  ;;  %v713_v55 = vpop.permute.xlu1 %712  ;;  %v711_v21 = vpop.permute.xlu0 %710 }
 0x36e   :  { %v676_v52 = vadd.f32 %v674_v5, %v643_v34  ;;  %vm5301_vm0 = vcmp.lt.s32.totalorder %v3333_v35, 13  ;;  %v725_v47 = vstv %s3484_s8  ;;  %v5413_v20 = vmov %v5409_v7  ;;  %s3820_s8 = sld [smem:[#allocation6 + $0x43]] }
 0x36f   :  { %v730_v12 = vmul.f32 %v5413_v20, %v721_v36  ;;  %v698_v13 = vadd.f32 %v696_v54, %v693_v16  ;;  %v699_v48 = vadd.f32 %v697_v39, %v694_v32  ;;  %vm415_vm2 = vcmp.ge.s32.totalorder %v2591_v40, 32  ;;  %1703 = vrot.lane.b32.xlu1 %v3017_v24, %s5414_s16  ;;  %1701 = vrot.lane.b32.xlu0 %v3024_v61, %s5414_s16  ;;  %s3917_s16 = sld [smem:[#allocation6 + $0x12]] }
 0x370   :  { %v754_v42 = vsel %vm747_vm10, %v2934_v6, %v2932_v17  ;;  %v755_v34 = vsel %vm747_vm10, %v2932_v17, %v2934_v6  ;;  %v715_v41 = vsel %vm714_vm6, %v711_v21, %v713_v55  ;;  %v716_v54 = vsel %vm714_vm6, %v713_v55, %v711_v21  ;;  %vm3591_vm6 = vmand %vm415_vm2, %vm5299_vm14 }
 0x371   :  { %vm846_vm13 = vcmp.lt.s32.totalorder %v2591_v40, 31  ;;  %v706_v10 = vsel %vm3553_vm9, %v698_v13, 0.0  ;;  %v707_v17 = vsel %vm5301_vm0, %v699_v48, 0.0  ;;  %v726_v6 = vmul.f32 %v725_v47, %v716_v54  ;;  %v746_v51 = vpop.permute.xlu1 %745  ;;  %v744_v32 = vpop.permute.xlu0 %743 }
 0x372   :  { %v727_v11 = vmul.f32 %v725_v47, %v715_v41  ;;  %v860_v63 = vstv %s3510_s11  ;;  %v708_v39 = vadd.f32 %v706_v10, %v675_v60  ;;  %v709_v31 = vadd.f32 %v707_v17, %v676_v52  ;;  %s3844_s11 = sld [smem:[#allocation6 + $0x44]] }
 0x373   :  { %v758_v36 = vstv %s3522_s12  ;;  %v5417_v7 = vstv %s3254_s18  ;;  %v731_v5 = vadd.f32 %v729_v37, %v726_v6  ;;  %v787_v60 = vsel %vm780_vm8, %v2942_v23, %v2940_v22  ;;  %s5419_s18 = smov 96   ;;  %s3859_s12 = sld [smem:[#allocation6 + $0x45]] }
 0x374   :  { %v762_v57 = vmul.f32 %v5417_v7, %v755_v34  ;;  %v5418_v53 = vmov %v5417_v7  ;;  %v732_v16 = vadd.f32 %v730_v12, %v727_v11  ;;  %v788_v52 = vsel %vm780_vm8, %v2940_v22, %v2942_v23  ;;  %1736 = vrot.lane.b32.xlu1 %v3017_v24, %s5419_s18  ;;  %1734 = vrot.lane.b32.xlu0 %v3024_v61, %s5419_s18  ;;  %s4021_s18 = sld [smem:[#allocation6 + $0x16]] }
 0x375   :  { %v763_v56 = vmul.f32 %v5418_v53, %v754_v42  ;;  %v748_v19 = vsel %vm747_vm10, %v744_v32, %v746_v51  ;;  %v749_v55 = vsel %vm747_vm10, %v746_v51, %v744_v32  ;;  %vm879_vm9 = vcmp.lt.s32.totalorder %v2591_v40, 30  ;;  %vm3630_vm10 = vmand %vm415_vm2, %vm5297_vm15  ;;  %v779_v21 = vpop.permute.xlu1 %778  ;;  %v777_v11 = vpop.permute.xlu0 %776 }
 0x376   :  { %v739_v37 = vsel %vm3591_vm6, %v731_v5, 0.0  ;;  %v740_v22 = vsel %vm5300_vm1, %v732_v16, 0.0  ;;  %v759_v23 = vmul.f32 %v758_v36, %v749_v55  ;;  %v760_v47 = vmul.f32 %v758_v36, %v748_v19 }
 0x377   :  { %v893_v20 = vstv %s3546_s14  ;;  %v741_v12 = vadd.f32 %v739_v37, %v708_v39  ;;  %v742_v13 = vadd.f32 %v740_v22, %v709_v31  ;;  %v791_v42 = vstv %s3558_s15  ;;  %s3884_s14 = sld [smem:[#allocation6 + $0x47]]  ;;  %s3897_s15 = sld [smem:[#allocation6 + $0x48]] }
 0x378   :  { %v5422_v34 = vstv %s3260_s20  ;;  %v764_v17 = vadd.f32 %v762_v57, %v759_v23  ;;  %v765_v6 = vadd.f32 %v763_v56, %v760_v47  ;;  %v820_v39 = vsel %vm813_vm4, %v2950_v27, %v2948_v26  ;;  %s5424_s20 = smov 95  }
 0x379   :  { %v795_v41 = vmul.f32 %v5422_v34, %v788_v52  ;;  %v5423_v54 = vmov %v5422_v34  ;;  %v821_v31 = vsel %vm813_vm4, %v2948_v26, %v2950_v27  ;;  %v781_v3 = vsel %vm780_vm8, %v777_v11, %v779_v21  ;;  %1769 = vrot.lane.b32.xlu1 %v3017_v24, %s5424_s20  ;;  %1767 = vrot.lane.b32.xlu0 %v3024_v61, %s5424_s20  ;;  %v812_v16 = vpop.permute.xlu1 %811  ;;  %v810_v23 = vpop.permute.xlu0 %809  ;;  %s4085_s20 = sld [smem:[#allocation6 + $0x4b]] }
 0x37a   :  { %v796_v10 = vmul.f32 %v5423_v54, %v787_v60  ;;  %v782_v51 = vsel %vm780_vm8, %v779_v21, %v777_v11  ;;  %vm912_vm6 = vcmp.lt.s32.totalorder %v2591_v40, 29  ;;  %v772_v36 = vsel %vm3630_vm10, %v764_v17, 0.0  ;;  %vm3669_vm8 = vmand %vm415_vm2, %vm5296_vm5 }
 0x37b   :  { %v773_v26 = vsel %vm5298_vm3, %v765_v6, 0.0  ;;  %v792_v27 = vmul.f32 %v791_v42, %v782_v51  ;;  %v793_v7 = vmul.f32 %v791_v42, %v781_v3  ;;  %v926_v57 = vstv %s3585_s17  ;;  %s3965_s17 = sld [smem:[#allocation6 + $0x14]] }
 0x37c   :  { %v774_v53 = vadd.f32 %v772_v36, %v741_v12  ;;  %v775_v56 = vadd.f32 %v773_v26, %v742_v13  ;;  %v824_v32 = vstv %s3596_s19  ;;  %v5427_v60 = vstv %s3262_s21  ;;  %s5429_s21 = smov 94   ;;  %s3995_s19 = sld [smem:[#allocation6 + $0x15]] }
 0x37d   :  { %v828_v52 = vmul.f32 %v5427_v60, %v821_v31  ;;  %v5428_v19 = vmov %v5427_v60  ;;  %v797_v37 = vadd.f32 %v795_v41, %v792_v27  ;;  %v798_v22 = vadd.f32 %v796_v10, %v793_v7  ;;  %1802 = vrot.lane.b32.xlu1 %v3017_v24, %s5429_s21  ;;  %1800 = vrot.lane.b32.xlu0 %v3024_v61, %s5429_s21  ;;  %v845_v10 = vpop.permute.xlu1 %844  ;;  %v843_v3 = vpop.permute.xlu0 %842  ;;  %s4099_s21 = sld [smem:[#allocation6 + $0x4e]] }
 0x37e   :  { %v829_v55 = vmul.f32 %v5428_v19, %v820_v39  ;;  %v853_v47 = vsel %vm846_vm13, %v2958_v29, %v2956_v28  ;;  %v854_v12 = vsel %vm846_vm13, %v2956_v28, %v2958_v29  ;;  %vm945_vm10 = vcmp.lt.s32.totalorder %v2591_v40, 19 }
 0x37f   :  { %v814_v13 = vsel %vm813_vm4, %v810_v23, %v812_v16  ;;  %v815_v48 = vsel %vm813_vm4, %v812_v16, %v810_v23  ;;  %v805_v21 = vsel %vm3669_vm8, %v797_v37, 0.0  ;;  %v806_v42 = vsel %vm5295_vm7, %v798_v22, 0.0 }
 0x380   :  { %v825_v28 = vmul.f32 %v824_v32, %v815_v48  ;;  %v826_v29 = vmul.f32 %v824_v32, %v814_v13  ;;  %v959_v34 = vstv %s3624_s22  ;;  %v807_v41 = vadd.f32 %v805_v21, %v774_v53  ;;  %s4046_s22 = sld [smem:[#allocation6 + $0x17]] }
 0x381   :  { %v808_v54 = vadd.f32 %v806_v42, %v775_v56  ;;  %v857_v17 = vstv %s3635_s23  ;;  %v861_v6 = vmul.f32 %v860_v63, %v854_v12  ;;  %v862_v11 = vmul.f32 %v860_v63, %v853_v47  ;;  %1835 = vrot.lane.b32.xlu1 %v3017_v24, %s5430_s29  ;;  %1833 = vrot.lane.b32.xlu0 %v3024_v61, %s5430_s29  ;;  %v878_v16 = vpop.permute.xlu1 %877  ;;  %v876_v37 = vpop.permute.xlu0 %875  ;;  %s4072_s23 = sld [smem:[#allocation6 + $0x4a]]  ;;  %s4111_s29 = sld [smem:[#allocation6 + $0x51]] }
 0x382   :  { %v830_v39 = vadd.f32 %v828_v52, %v825_v28  ;;  %v831_v31 = vadd.f32 %v829_v55, %v826_v29  ;;  %v886_v51 = vsel %vm879_vm9, %v2966_v33, %v2964_v30  ;;  %v887_v36 = vsel %vm879_vm9, %v2964_v30, %v2966_v33 }
 0x383   :  { %v847_v26 = vsel %vm846_vm13, %v843_v3, %v845_v10  ;;  %v848_v63 = vsel %vm846_vm13, %v845_v10, %v843_v3  ;;  %vm978_vm4 = vcmp.lt.s32.totalorder %v2591_v40, 18  ;;  %v992_v30 = vstv %s3663_s24  ;;  %s4091_s24 = sld [smem:[#allocation6 + $0x4c]] }
 0x384   :  { %v838_v27 = vsel %vm415_vm2, %v830_v39, 0.0  ;;  %v841_v7 = vadd.f32 %v831_v31, %v808_v54  ;;  %v858_v53 = vmul.f32 %v857_v17, %v848_v63  ;;  %v859_v56 = vmul.f32 %v857_v17, %v847_v26 }
 0x385   :  { %v840_v33 = vadd.f32 %v838_v27, %v807_v41  ;;  %vm5431_vm8 = vcmp.lt.s32.totalorder %v3310_v50, 15  ;;  %v890_v32 = vstv %s3674_s25  ;;  %v894_v60 = vmul.f32 %v893_v20, %v887_v36  ;;  %1868 = vrot.lane.b32.xlu1 %v3017_v24, %s5434_s5  ;;  %1866 = vrot.lane.b32.xlu0 %v3024_v61, %s5434_s5  ;;  %v911_v29 = vpop.permute.xlu1 %910  ;;  %s4093_s25 = sld [smem:[#allocation6 + $0x4d]]  ;;  %s4116_s5 = sld [smem:[#allocation6 + $0x53]] }
 0x386   :  { %vm3735_vm13 = vmand %vm415_vm2, %vm5431_vm8  ;;  %v895_v52 = vmul.f32 %v893_v20, %v886_v51  ;;  %v863_v19 = vadd.f32 %v861_v6, %v858_v53  ;;  %v864_v55 = vadd.f32 %v862_v11, %v859_v56  ;;  %v919_v22 = vsel %vm912_vm6, %v2974_v8, %v2972_v38  ;;  %v909_v11 = vpop.permute.xlu0 %908 }
 0x387   :  { %v920_v23 = vsel %vm912_vm6, %v2972_v38, %v2974_v8  ;;  %v880_v47 = vsel %vm879_vm9, %v876_v37, %v878_v16  ;;  %v881_v20 = vsel %vm879_vm9, %v878_v16, %v876_v37  ;;  %vm1011_vm8 = vcmp.lt.s32.totalorder %v2591_v40, 17 }
 0x388   :  { %v871_v12 = vsel %vm3735_vm13, %v863_v19, 0.0  ;;  %vm5435_vm7 = vcmp.lt.s32.totalorder %v3333_v35, 15  ;;  %v891_v38 = vmul.f32 %v890_v32, %v881_v20  ;;  %v892_v8 = vmul.f32 %v890_v32, %v880_v47 }
 0x389   :  { %v872_v13 = vsel %vm5435_vm7, %v864_v55, 0.0  ;;  %v1025_v48 = vstv %s3702_s26  ;;  %v873_v21 = vadd.f32 %v871_v12, %v840_v33  ;;  %vm5436_vm9 = vcmp.lt.s32.totalorder %v3310_v50, 14  ;;  %1901 = vrot.lane.b32.xlu1 %v3017_v24, %s5439_s0  ;;  %1899 = vrot.lane.b32.xlu0 %v3024_v61, %s5439_s0  ;;  %vm3811_vm7 = vmand %vm415_vm2, %vm5302_vm11  ;;  %v944_v53 = vpop.permute.xlu1 %943  ;;  %s4101_s26 = sld [smem:[#allocation6 + $0x4f]]  ;;  %s4124_s0 = sld [smem:[#allocation6 + $0x55]] }
 0x38a   :  { %v874_v42 = vadd.f32 %v872_v13, %v841_v7  ;;  %vm3772_vm5 = vmand %vm415_vm2, %vm5436_vm9  ;;  %v923_v41 = vstv %s3705_s27  ;;  %v927_v54 = vmul.f32 %v926_v57, %v920_v23  ;;  %v953_v10 = vsel %vm945_vm10, %v2980_v2, %v2982_v4  ;;  %v942_v32 = vpop.permute.xlu0 %941  ;;  %s4109_s27 = sld [smem:[#allocation6 + $0x50]] }
 0x38b   :  { %v896_v17 = vadd.f32 %v894_v60, %v891_v38  ;;  %v897_v6 = vadd.f32 %v895_v52, %v892_v8  ;;  %v928_v39 = vmul.f32 %v926_v57, %v919_v22  ;;  %v952_v31 = vsel %vm945_vm10, %v2982_v4, %v2980_v2 }
 0x38c   :  { %v913_v3 = vsel %vm912_vm6, %v909_v11, %v911_v29  ;;  %v914_v51 = vsel %vm912_vm6, %v911_v29, %v909_v11  ;;  %v960_v2 = vmul.f32 %v959_v34, %v953_v10  ;;  %v956_v56 = vstv %s3740_s30  ;;  %s4114_s30 = sld [smem:[#allocation6 + $0x52]] }
 0x38d   :  { %v904_v36 = vsel %vm3772_vm5, %v896_v17, 0.0  ;;  %v905_v57 = vsel %vm5303_vm12, %v897_v6, 0.0  ;;  %v924_v26 = vmul.f32 %v923_v41, %v914_v51  ;;  %v925_v63 = vmul.f32 %v923_v41, %v913_v3  ;;  %1934 = vrot.lane.b32.xlu1 %v3017_v24, %s5442_s10  ;;  %1932 = vrot.lane.b32.xlu0 %v3024_v61, %s5442_s10  ;;  %v977_v20 = vpop.permute.xlu1 %976  ;;  %s4142_s10 = sld [smem:[#allocation6 + $0x59]] }
 0x38e   :  { %v906_v4 = vadd.f32 %v904_v36, %v873_v21  ;;  %v907_v27 = vadd.f32 %v905_v57, %v874_v42  ;;  %v961_v33 = vmul.f32 %v959_v34, %v952_v31  ;;  %vm423_vm5 = vcmp.ge.s32.totalorder %v2591_v40, 16  ;;  %v975_v42 = vpop.permute.xlu0 %974 }
 0x38f   :  { %v929_v5 = vadd.f32 %v927_v54, %v924_v26  ;;  %v930_v16 = vadd.f32 %v928_v39, %v925_v63  ;;  %v985_v60 = vsel %vm978_vm4, %v2990_v14, %v2988_v44  ;;  %v986_v52 = vsel %vm978_vm4, %v2988_v44, %v2990_v14  ;;  %vm3850_vm6 = vmand %vm423_vm5, %vm5299_vm14 }
 0x390   :  { %v946_v34 = vsel %vm945_vm10, %v942_v32, %v944_v53  ;;  %v947_v19 = vsel %vm945_vm10, %v944_v53, %v942_v32  ;;  %vm1044_vm2 = vcmp.lt.s32.totalorder %v2591_v40, 16  ;;  %v989_v12 = vstv %s3777_s6  ;;  %vm3890_vm10 = vmand %vm423_vm5, %vm5297_vm15  ;;  %s4122_s6 = sld [smem:[#allocation6 + $0x54]] }
 0x391   :  { %v937_v55 = vsel %vm3811_vm7, %v929_v5, 0.0  ;;  %v938_v37 = vsel %vm5301_vm0, %v930_v16, 0.0  ;;  %v957_v22 = vmul.f32 %v956_v56, %v947_v19  ;;  %v958_v23 = vmul.f32 %v956_v56, %v946_v34  ;;  %1967 = vrot.lane.b32.xlu1 %v3017_v24, %s2478_s3  ;;  %1965 = vrot.lane.b32.xlu0 %v3024_v61, %s2478_s3  ;;  %v1010_v31 = vpop.permute.xlu1 %1009  ;;  %s3909_s3 = sld [smem:[#allocation6 + $0x11]] }
 0x392   :  { %v939_v44 = vadd.f32 %v937_v55, %v906_v4  ;;  %v940_v14 = vadd.f32 %v938_v37, %v907_v27  ;;  %v993_v13 = vmul.f32 %v992_v30, %v986_v52  ;;  %v994_v38 = vmul.f32 %v992_v30, %v985_v60  ;;  %v1008_v26 = vpop.permute.xlu0 %1007 }
 0x393   :  { %v962_v8 = vadd.f32 %v960_v2, %v957_v22  ;;  %v963_v21 = vadd.f32 %v961_v33, %v958_v23  ;;  %v1018_v28 = vsel %vm1011_vm8, %v2998_v15, %v2996_v45  ;;  %v1019_v29 = vsel %vm1011_vm8, %v2996_v45, %v2998_v15 }
 0x394   :  { %v979_v30 = vsel %vm978_vm4, %v975_v42, %v977_v20  ;;  %v980_v41 = vsel %vm978_vm4, %v977_v20, %v975_v42  ;;  %v1058_v17 = vstv %s3805_s7  ;;  %v1022_v3 = vstv %s3816_s1  ;;  %s4130_s7 = sld [smem:[#allocation6 + $0x56]]  ;;  %s4132_s1 = sld [smem:[#allocation6 + $0x57]] }
 0x395   :  { %v970_v54 = vsel %vm3850_vm6, %v962_v8, 0.0  ;;  %v971_v10 = vsel %vm5300_vm1, %v963_v21, 0.0  ;;  %v990_v45 = vmul.f32 %v989_v12, %v980_v41  ;;  %v991_v15 = vmul.f32 %v989_v12, %v979_v30  ;;  %2000 = vrot.lane.b32.xlu1 %v3017_v24, %s2479_s2  ;;  %1998 = vrot.lane.b32.xlu0 %v3024_v61, %s2479_s2  ;;  %v1043_v60 = vpop.permute.xlu1 %1042  ;;  %s3931_s2 = sld [smem:[#allocation6 + $0x13]] }
 0x396   :  { %v972_v6 = vadd.f32 %v970_v54, %v939_v44  ;;  %v973_v11 = vadd.f32 %v971_v10, %v940_v14  ;;  %vm1077_vm4 = vcmp.lt.s32.totalorder %v2591_v40, 15  ;;  %v1091_v51 = vstv %s3820_s8  ;;  %v1041_v55 = vpop.permute.xlu0 %1040  ;;  %s4140_s8 = sld [smem:[#allocation6 + $0x58]] }
 0x397   :  { %v995_v36 = vadd.f32 %v993_v13, %v990_v45  ;;  %v996_v57 = vadd.f32 %v994_v38, %v991_v15  ;;  %v1026_v63 = vmul.f32 %v1025_v48, %v1019_v29  ;;  %v1027_v2 = vmul.f32 %v1025_v48, %v1018_v28 }
 0x398   :  { %v1012_v4 = vsel %vm1011_vm8, %v1008_v26, %v1010_v31  ;;  %v1013_v27 = vsel %vm1011_vm8, %v1010_v31, %v1008_v26  ;;  %vm1110_vm13 = vcmp.lt.s32.totalorder %v2591_v40, 14  ;;  %v1124_v33 = vstv %s3844_s11  ;;  %s4148_s11 = sld [smem:[#allocation6 + $0x5a]] }
 0x399   :  { %v1003_v7 = vsel %vm3890_vm10, %v995_v36, 0.0  ;;  %v1004_v53 = vsel %vm5298_vm3, %v996_v57, 0.0  ;;  %v1023_v56 = vmul.f32 %v1022_v3, %v1013_v27  ;;  %v1024_v48 = vmul.f32 %v1022_v3, %v1012_v4  ;;  %2033 = vrot.lane.b32.xlu1 %v3017_v24, %s2480_s9  ;;  %2031 = vrot.lane.b32.xlu0 %v3024_v61, %s2480_s9  ;;  %v1076_v13 = vpop.permute.xlu1 %1075  ;;  %s2481_s9 = smov 77   ;;  %v5452_v4 = vld [vmem:[#allocation34_spill] sm:$0xff]  ;;  %v5453_v27 = vld [vmem:[#allocation33_spill] sm:$0xff] }
 0x39a   :  { %v1005_v5 = vadd.f32 %v1003_v7, %v972_v6  ;;  %v1006_v16 = vadd.f32 %v1004_v53, %v973_v11  ;;  %vm5447_vm8 = vcmp.ge.s32.totalorder %v3310_v50, 1  ;;  %vm1143_vm7 = vcmp.lt.s32.totalorder %v2591_v40, 13  ;;  %v1074_v42 = vpop.permute.xlu0 %1073 }
 0x39b   :  { %vm3925_vm9 = vmand %vm423_vm5, %vm5447_vm8  ;;  %v1157_v52 = vstv %s3859_s12  ;;  %v1028_v34 = vadd.f32 %v1026_v63, %v1023_v56  ;;  %v1029_v19 = vadd.f32 %v1027_v2, %v1024_v48  ;;  %v1052_v37 = vsel %vm1044_vm2, %v3004_v46, %v3006_v49  ;;  %v5451_v63 = vld [vmem:[#allocation30_spill] sm:$0xff]  ;;  %s4150_s12 = sld [smem:[#allocation6 + $0x5b]] }
 0x39c   :  { %vm1176_vm6 = vcmp.lt.s32.totalorder %v2591_v40, 3  ;;  %v1190_v22 = vstv %s3869_s13  ;;  %vm1209_vm10 = vcmp.lt.s32.totalorder %v2591_v40, 2  ;;  %v1051_v23 = vsel %vm1044_vm2, %v3006_v49, %v3004_v46  ;;  %s4156_s13 = sld [smem:[#allocation6 + $0x5c]] }
 0x39d   :  { %v1085_v44 = vsel %vm1077_vm4, %v3012_v25, %v3019_v62  ;;  %v1036_v14 = vsel %vm3925_vm9, %v1028_v34, 0.0  ;;  %vm5450_vm8 = vcmp.ge.s32.totalorder %v3333_v35, 1  ;;  %v1084_v46 = vsel %vm1077_vm4, %v3019_v62, %v3012_v25  ;;  %2066 = vrot.lane.b32.xlu1 %v3017_v24, %s2481_s9  ;;  %2064 = vrot.lane.b32.xlu0 %v3024_v61, %s2481_s9  ;;  %v1109_v6 = vpop.permute.xlu1 %1108 }
 0x39e   :  { %v1037_v47 = vsel %vm5450_vm8, %v1029_v19, 0.0  ;;  %v1223_v49 = vstv %s3884_s14  ;;  %v3961_v20 = vadd.f32 %v1036_v14, %v1005_v5  ;;  %v1059_v38 = vmul.f32 %v1058_v17, %v1052_v37  ;;  %v1107_v39 = vpop.permute.xlu0 %1106  ;;  %v5457_v14 = vld [vmem:[#allocation35_spill] sm:$0xff]  ;;  %s4160_s14 = sld [smem:[#allocation6 + $0x5d]] }
 0x39f   :  { %v3963_v12 = vadd.f32 %v1037_v47, %v1006_v16  ;;  %v1118_v8 = vsel %vm1110_vm13, %v3030_v1, %v3032_v0  ;;  %vm1242_vm9 = vcmp.lt.s32.totalorder %v2591_v40, 1  ;;  %v1256_v21 = vstv %s3897_s15  ;;  %v5458_v47 = vld [vmem:[#allocation36_spill] sm:$0xff]  ;;  %s4162_s15 = sld [smem:[#allocation6 + $0x5e]] }
 0x3a0   :  { %v1060_v62 = vmul.f32 %v1058_v17, %v1051_v23  ;;  %v1092_v25 = vmul.f32 %v1091_v51, %v1085_v44  ;;  %v1055_v28 = vstv %s3909_s3  ;;  %v1046_v29 = vsel %vm1044_vm2, %v1043_v60, %v1041_v55  ;;  %s4170_s3 = sld [smem:[#allocation6 + $0x5f]] }
 0x3a1   :  { %v1093_v30 = vmul.f32 %v1091_v51, %v1084_v46  ;;  %v1088_v41 = vstv %s3917_s16  ;;  %v1078_v54 = vsel %vm1077_vm4, %v1074_v42, %v1076_v13  ;;  %v1079_v10 = vsel %vm1077_vm4, %v1076_v13, %v1074_v42  ;;  %2073 = vrot.lane.b32.xlu1 %v2738_v43, %s2481_s9  ;;  %2071 = vrot.lane.b32.xlu0 %v5451_v63, %s2481_s9  ;;  %v1142_v43 = vpop.permute.xlu1 %1141  ;;  %s4172_s16 = sld [smem:[#allocation6 + $0x60]]  ;;  %s4425_s9 = sld [smem:[#allocation6 + $0x1b]] }
 0x3a2   :  { %v1117_v45 = vsel %vm1110_vm13, %v3032_v0, %v3030_v1  ;;  %v1125_v15 = vmul.f32 %v1124_v33, %v1118_v8  ;;  %v1150_v24 = vsel %vm1143_vm7, %v3040_v58, %v3038_v59  ;;  %v1151_v17 = vsel %vm1143_vm7, %v3038_v59, %v3040_v58  ;;  %v1140_v5 = vpop.permute.xlu0 %1139 }
 0x3a3   :  { %v1184_v61 = vsel %vm1176_vm6, %v3046_v9, %v3048_v18  ;;  %v1045_v0 = vsel %vm1044_vm2, %v1041_v55, %v1043_v60  ;;  %v1056_v1 = vmul.f32 %v1055_v28, %v1046_v29  ;;  %v1121_v11 = vstv %s3931_s2  ;;  %s4368_s2 = sld [smem:[#allocation6 + $0x19]] }
 0x3a4   :  { %v1089_v31 = vmul.f32 %v1088_v41, %v1079_v10  ;;  %v1090_v3 = vmul.f32 %v1088_v41, %v1078_v54  ;;  %v1111_v59 = vsel %vm1110_vm13, %v1107_v39, %v1109_v6  ;;  %v1112_v58 = vsel %vm1110_vm13, %v1109_v6, %v1107_v39 }
 0x3a5   :  { %v1126_v51 = vmul.f32 %v1124_v33, %v1117_v45  ;;  %v1158_v36 = vmul.f32 %v1157_v52, %v1151_v17  ;;  %v1159_v57 = vmul.f32 %v1157_v52, %v1150_v24  ;;  %v1183_v26 = vsel %vm1176_vm6, %v3048_v18, %v3046_v9 }
 0x3a6   :  { %v1191_v2 = vmul.f32 %v1190_v22, %v1184_v61  ;;  %v1217_v7 = vsel %vm1209_vm10, %v5453_v27, %v5452_v4  ;;  %v1057_v53 = vmul.f32 %v1055_v28, %v1045_v0  ;;  %v1154_v56 = vstv %s3965_s17  ;;  %v1173_v28 = vpop.permute.xlu0 %1172  ;;  %s4405_s17 = sld [smem:[#allocation6 + $0x1a]] }
 0x3a7   :  { %v1216_v9 = vsel %vm1209_vm10, %v5452_v4, %v5453_v27  ;;  %v1061_v18 = vadd.f32 %v1059_v38, %v1056_v1  ;;  %v1122_v48 = vmul.f32 %v1121_v11, %v1112_v58  ;;  %v1123_v33 = vmul.f32 %v1121_v11, %v1111_v59  ;;  %v1175_v38 = vpop.permute.xlu1 %1174 }
 0x3a8   :  { %v1094_v16 = vadd.f32 %v1092_v25, %v1089_v31  ;;  %v1095_v32 = vadd.f32 %v1093_v30, %v1090_v3  ;;  %v1144_v60 = vsel %vm1143_vm7, %v1140_v5, %v1142_v43  ;;  %v1145_v52 = vsel %vm1143_vm7, %v1142_v43, %v1140_v5 }
 0x3a9   :  { %v1192_v34 = vmul.f32 %v1190_v22, %v1183_v26  ;;  %v1224_v19 = vmul.f32 %v1223_v49, %v1217_v7  ;;  %vm5454_vm2 = vcmp.lt.s32.totalorder %v3310_v50, 15  ;;  %v1155_v37 = vmul.f32 %v1154_v56, %v1145_v52 }
 0x3aa   :  { %vm4037_vm4 = vmand %vm423_vm5, %vm5454_vm2  ;;  %v1156_v23 = vmul.f32 %v1154_v56, %v1144_v60  ;;  %v1225_v44 = vmul.f32 %v1223_v49, %v1216_v9  ;;  %v1249_v46 = vsel %vm1242_vm9, %v5458_v47, %v5457_v14  ;;  %v1062_v13 = vadd.f32 %v1060_v62, %v1057_v53  ;;  %v1206_v3 = vpop.permute.xlu0 %1205 }
 0x3ab   :  { %v1187_v22 = vstv %s3995_s19  ;;  %v1250_v8 = vsel %vm1242_vm9, %v5457_v14, %v5458_v47  ;;  %v1069_v42 = vsel %vm423_vm5, %v1061_v18, 0.0  ;;  %v1127_v49 = vadd.f32 %v1125_v15, %v1122_v48  ;;  %vm4080_vm2 = vmand %vm423_vm5, %vm5302_vm11  ;;  %v1208_v1 = vpop.permute.xlu1 %1207  ;;  %s4459_s19 = sld [smem:[#allocation6 + $0x1c]] }
 0x3ac   :  { %v1128_v25 = vadd.f32 %v1126_v51, %v1123_v33  ;;  %v1102_v62 = vsel %vm4037_vm4, %v1094_v16, 0.0  ;;  %vm5459_vm13 = vcmp.lt.s32.totalorder %v3333_v35, 15  ;;  %vm5460_vm7 = vcmp.lt.s32.totalorder %v3310_v50, 14 }
 0x3ad   :  { %v1103_v29 = vsel %vm5459_vm13, %v1095_v32, 0.0  ;;  %vm4062_vm8 = vmand %vm423_vm5, %vm5460_vm7  ;;  %v1177_v41 = vsel %vm1176_vm6, %v1173_v28, %v1175_v38  ;;  %v1178_v54 = vsel %vm1176_vm6, %v1175_v38, %v1173_v28  ;;  %v1160_v10 = vadd.f32 %v1158_v36, %v1155_v37 }
 0x3ae   :  { %v1161_v45 = vadd.f32 %v1159_v57, %v1156_v23  ;;  %v1188_v15 = vmul.f32 %v1187_v22, %v1178_v54  ;;  %v1189_v24 = vmul.f32 %v1187_v22, %v1177_v41  ;;  %v1257_v17 = vmul.f32 %v1256_v21, %v1250_v8  ;;  %v1239_v48 = vpop.permute.xlu0 %1238 }
 0x3af   :  { %v1071_v6 = vadd.f32 %v1069_v42, %v3961_v20  ;;  %v1072_v61 = vadd.f32 %v1062_v13, %v3963_v12  ;;  %v1220_v11 = vstv %s4021_s18  ;;  %v1135_v39 = vsel %vm4062_vm8, %v1127_v49, 0.0  ;;  %v1241_v53 = vpop.permute.xlu1 %1240  ;;  %s4511_s18 = sld [smem:[#allocation6 + $0x1d]] }
 0x3b0   :  { %v1136_v20 = vsel %vm5303_vm12, %v1128_v25, 0.0  ;;  %v1193_v12 = vadd.f32 %v1191_v2, %v1188_v15  ;;  %v1194_v31 = vadd.f32 %v1192_v34, %v1189_v24  ;;  %v1210_v51 = vsel %vm1209_vm10, %v1206_v3, %v1208_v1  ;;  %v5467_v15 = vld [vmem:[#allocation31_spill] sm:$0xff] }
 0x3b1   :  { %v1104_v59 = vadd.f32 %v1102_v62, %v1071_v6  ;;  %v1105_v58 = vadd.f32 %v1103_v29, %v1072_v61  ;;  %v1211_v36 = vsel %vm1209_vm10, %v1208_v1, %v1206_v3  ;;  %v1168_v57 = vsel %vm4080_vm2, %v1160_v10, 0.0 }
 0x3b2   :  { %v1169_v26 = vsel %vm5301_vm0, %v1161_v45, 0.0  ;;  %v1221_v63 = vmul.f32 %v1220_v11, %v1211_v36  ;;  %v1222_v2 = vmul.f32 %v1220_v11, %v1210_v51  ;;  %v1258_v4 = vmul.f32 %v1256_v21, %v1249_v46  ;;  %v4152_v13 = vpop.permute.xlu0 %1305  ;;  %v5469_v36 = vld [vmem:[#allocation37_spill] sm:$0xff] }
 0x3b3   :  { %v1137_v27 = vadd.f32 %v1135_v39, %v1104_v59  ;;  %v1138_v7 = vadd.f32 %v1136_v20, %v1105_v58  ;;  %v1253_v43 = vstv %s4046_s22  ;;  %v1201_v56 = vsel %vm5299_vm14, %v1193_v12, 0.0  ;;  %s4544_s22 = sld [smem:[#allocation6 + $0x1e]] }
 0x3b4   :  { %v1202_v9 = vsel %vm5300_vm1, %v1194_v31, 0.0  ;;  %v1226_v18 = vadd.f32 %v1224_v19, %v1221_v63  ;;  %v1227_v21 = vadd.f32 %v1225_v44, %v1222_v2  ;;  %v1243_v16 = vsel %vm1242_vm9, %v1239_v48, %v1241_v53  ;;  %v4144_v44 = vpop.permute.xlu1 %1307  ;;  %v5471_v2 = vld [vmem:[#allocation39_spill] sm:$0xff] }
 0x3b5   :  { %v1170_v33 = vadd.f32 %v1168_v57, %v1137_v27  ;;  %v1171_v5 = vadd.f32 %v1169_v26, %v1138_v7  ;;  %v1244_v32 = vsel %vm1242_vm9, %v1241_v53, %v1239_v48  ;;  %v1255_v19 = vmul.f32 %v1253_v43, %v1243_v16  ;;  %v5470_v57 = vld [vmem:[#allocation38_spill] sm:$0xff] }
 0x3b6   :  { %v1234_v60 = vsel %vm5297_vm15, %v1226_v18, 0.0  ;;  %v1235_v52 = vsel %vm5298_vm3, %v1227_v21, 0.0  ;;  %v1254_v34 = vmul.f32 %v1253_v43, %v1244_v32  ;;  %vm1309_vm5 = vcmp.lt.s32.totalorder %v2591_v40, 127  ;;  %v4180_v10 = vpop.permute.xlu0 %1338  ;;  %v5473_v43 = vld [vmem:[#allocation41_spill] sm:$0xff] }
 0x3b7   :  { %v1323_v55 = vstv %s4072_s23  ;;  %v1203_v37 = vadd.f32 %v1201_v56, %v1170_v33  ;;  %v1204_v23 = vadd.f32 %v1202_v9, %v1171_v5  ;;  %vm1342_vm6 = vcmp.lt.s32.totalorder %v2591_v40, 126  ;;  %v5474_v56 = vld [vmem:[#allocation42_spill] sm:$0xff]  ;;  %v5475_v33 = vld [vmem:[#allocation43_spill] sm:$0xff]  ;;  %v5476_v5 = vld [vmem:[#allocation44_spill] sm:$0xff]  ;;  %s4604_s23 = sld [smem:[#allocation6 + $0x1f]] }
 0x3b8   :  { %v1356_v14 = vstv %s4085_s20  ;;  %v1259_v47 = vadd.f32 %v1257_v17, %v1254_v34  ;;  %v1260_v46 = vadd.f32 %v1258_v4, %v1255_v19  ;;  %vm1375_vm10 = vcmp.lt.s32.totalorder %v2591_v40, 125  ;;  %v4174_v30 = vpop.permute.xlu1 %1340  ;;  %v5468_v17 = vld [vmem:[#allocation32_spill] sm:$0xff]  ;;  %s4632_s20 = sld [smem:[#allocation6 + $0x20]] }
 0x3b9   :  { %vm1408_vm9 = vcmp.lt.s32.totalorder %v2591_v40, 115  ;;  %v1236_v38 = vadd.f32 %v1234_v60, %v1203_v37  ;;  %v1237_v22 = vadd.f32 %v1235_v52, %v1204_v23  ;;  %v1389_v8 = vstv %s4091_s24  ;;  %v5472_v4 = vld [vmem:[#allocation40_spill] sm:$0xff]  ;;  %s4649_s24 = sld [smem:[#allocation6 + $0x21]] }
 0x3ba   :  { %v1422_v42 = vstv %s4093_s25  ;;  %vm5465_vm4 = vcmp.ge.s32.totalorder %v3310_v50, 1  ;;  %vm5466_vm13 = vcmp.ge.s32.totalorder %v3333_v35, 1  ;;  %vm5304_vm7 = vcmp.lt.s32.totalorder %v2591_v40, 114  ;;  %v4205_v51 = vpop.permute.xlu0 %1371  ;;  %s4685_s25 = sld [smem:[#allocation6 + $0x22]] }
 0x3bb   :  { %v1267_v49 = vsel %vm5465_vm4, %v1259_v47, 0.0  ;;  %v1268_v25 = vsel %vm5466_vm13, %v1260_v46, 0.0  ;;  %v1455_v28 = vstv %s4099_s21  ;;  %vm1474_vm8 = vcmp.lt.s32.totalorder %v2591_v40, 113  ;;  %s4687_s21 = sld [smem:[#allocation6 + $0x23]] }
 0x3bc   :  { %v1269_v62 = vadd.f32 %v1267_v49, %v1236_v38  ;;  %v1270_v29 = vadd.f32 %v1268_v25, %v1237_v22  ;;  %v1488_v41 = vstv %s4101_s26  ;;  %vm5305_vm2 = vcmp.lt.s32.totalorder %v2591_v40, 112  ;;  %v4198_v12 = vpop.permute.xlu1 %1373  ;;  %v5477_v38 = vld [vmem:[#allocation45_spill] sm:$0xff]  ;;  %v5478_v22 = vld [vmem:[#allocation46_spill] sm:$0xff]  ;;  %s4725_s26 = sld [smem:[#allocation6 + $0x24]] }
 0x3bd   :  { %v1521_v54 = vstv %s4109_s27  ;;  %vm1540_vm4 = vcmp.lt.s32.totalorder %v2591_v40, 111  ;;  %v1554_v45 = vstv %s4111_s29  ;;  %vm5306_vm13 = vcmp.lt.s32.totalorder %v2591_v40, 110  ;;  %s4735_s27 = sld [smem:[#allocation6 + $0x25]]  ;;  %s4737_s29 = sld [smem:[#allocation6 + $0x26]] }
 0x3be   :  { %v4185_v24 = vadd.f32 %v5467_v15, %v1269_v62  ;;  %v4188_v6 = vadd.f32 %v5468_v17, %v1270_v29  ;;  %v1587_v61 = vstv %s4114_s30  ;;  %vm1606_vm15 = vcmp.lt.s32.totalorder %v2591_v40, 109  ;;  %v4263_v47 = vpop.permute.xlu0 %1404  ;;  %v5479_v29 = vld [vmem:[#allocation47_spill] sm:$0xff]  ;;  %v5480_v15 = vld [vmem:[#allocation48_spill] sm:$0xff]  ;;  %s4759_s30 = sld [smem:[#allocation6 + $0x27]] }
 0x3bf   :  { %v1620_v0 = vstv %s4116_s5  ;;  %v1653_v1 = vstv %s4122_s6  ;;  %v1686_v11 = vstv %s4124_s0  ;;  %v1719_v39 = vstv %s4130_s7  ;;  %s4780_s5 = sld [smem:[#allocation6 + $0x28]]  ;;  %s4782_s6 = sld [smem:[#allocation6 + $0x29]] }
 0x3c0   :  { %v1752_v20 = vstv %s4132_s1  ;;  %vm5307_vm3 = vcmp.lt.s32.totalorder %v2591_v40, 99  ;;  %v1785_v31 = vstv %s4140_s8  ;;  %v1818_v3 = vstv %s4142_s10  ;;  %v4244_v52 = vpop.permute.xlu1 %1406  ;;  %s4820_s0 = sld [smem:[#allocation6 + $0x2a]]  ;;  %s4897_s7 = sld [smem:[#allocation6 + $0x2b]] }
 0x3c1   :  { %v1851_v59 = vstv %s4148_s11  ;;  %v1316_v26 = vsel %vm1309_vm5, %v5470_v57, %v5469_v36  ;;  %v1317_v63 = vsel %vm1309_vm5, %v5469_v36, %v5470_v57  ;;  %v1349_v27 = vsel %vm1342_vm6, %v5472_v4, %v5471_v2  ;;  %v5481_v57 = vld [vmem:[#allocation49_spill] sm:$0xff]  ;;  %s4935_s1 = sld [smem:[#allocation6 + $0x2c]]  ;;  %s4965_s8 = sld [smem:[#allocation6 + $0x2d]] }
 0x3c2   :  { %vm1672_vm14 = vcmp.lt.s32.totalorder %v2591_v40, 98  ;;  %v1350_v53 = vsel %vm1342_vm6, %v5471_v2, %v5472_v4  ;;  %v1382_v9 = vsel %vm1375_vm10, %v5474_v56, %v5473_v43  ;;  %vm1705_vm1 = vcmp.lt.s32.totalorder %v2591_v40, 97  ;;  %v5483_v4 = vld [vmem:[#allocation51_spill] sm:$0xff]  ;;  %s4967_s10 = sld [smem:[#allocation6 + $0x2e]]  ;;  %s5006_s11 = sld [smem:[#allocation6 + $0x2f]] }
 0x3c3   :  { %vm1738_vm0 = vcmp.lt.s32.totalorder %v2591_v40, 96  ;;  %v1383_v48 = vsel %vm1375_vm10, %v5473_v43, %v5474_v56  ;;  %v1415_v16 = vsel %vm1408_vm9, %v5476_v5, %v5475_v33  ;;  %vm1771_vm11 = vcmp.lt.s32.totalorder %v2591_v40, 95 }
 0x3c4   :  { %v4248_v34 = vmul.f32 %v1323_v55, %v1316_v26  ;;  %v4252_v19 = vmul.f32 %v1323_v55, %v1317_v63  ;;  %v4256_v37 = vmul.f32 %v1356_v14, %v1349_v27  ;;  %v1416_v23 = vsel %vm1408_vm9, %v5475_v33, %v5476_v5  ;;  %v5482_v26 = vld [vmem:[#allocation50_spill] sm:$0xff]  ;;  %v5484_v27 = vld [vmem:[#allocation52_spill] sm:$0xff]  ;;  %v4314_v43 = vpop.permute.xlu1 %1439 }
 0x3c5   :  { %vm5308_vm12 = vcmp.lt.s32.totalorder %v2591_v40, 94  ;;  %v4267_v46 = vmul.f32 %v1356_v14, %v1350_v53  ;;  %v4271_v55 = vmul.f32 %v1389_v8, %v1382_v9  ;;  %v1448_v49 = vsel %vm5304_vm7, %v5478_v22, %v5477_v38  ;;  %v5486_v33 = vld [vmem:[#allocation54_spill] sm:$0xff] }
 0x3c6   :  { %v1449_v25 = vsel %vm5304_vm7, %v5477_v38, %v5478_v22  ;;  %v4283_v62 = vmul.f32 %v1389_v8, %v1383_v48  ;;  %v4287_v14 = vmul.f32 %v1422_v42, %v1415_v16  ;;  %v1481_v17 = vsel %vm1474_vm8, %v5480_v15, %v5479_v29  ;;  %v5485_v48 = vld [vmem:[#allocation53_spill] sm:$0xff]  ;;  %v4333_v16 = vpop.permute.xlu0 %1437  ;;  %v5487_v22 = vld [vmem:[#allocation55_spill] sm:$0xff] }
 0x3c7   :  { %v1482_v36 = vsel %vm1474_vm8, %v5479_v29, %v5480_v15  ;;  %vm1837_vm7 = vcmp.lt.s32.totalorder %v2591_v40, 93  ;;  %v4300_v8 = vmul.f32 %v1422_v42, %v1416_v23  ;;  %v1514_v63 = vsel %vm5305_vm2, %v5482_v26, %v5481_v57 }
 0x3c8   :  { %v1515_v2 = vsel %vm5305_vm2, %v5481_v57, %v5482_v26  ;;  %v1547_v53 = vsel %vm1540_vm4, %v5484_v27, %v5483_v4  ;;  %v4318_v42 = vmul.f32 %v1455_v28, %v1448_v49  ;;  %v4322_v56 = vmul.f32 %v1455_v28, %v1449_v25  ;;  %v5488_v49 = vld [vmem:[#allocation56_spill] sm:$0xff]  ;;  %v5490_v26 = vld [vmem:[#allocation58_spill] sm:$0xff] }
 0x3c9   :  { %v1548_v9 = vsel %vm1540_vm4, %v5483_v4, %v5484_v27  ;;  %v1580_v5 = vsel %vm5306_vm13, %v5486_v33, %v5485_v48  ;;  %vm1870_vm2 = vcmp.lt.s32.totalorder %v2591_v40, 83  ;;  %v4337_v23 = vmul.f32 %v1488_v41, %v1481_v17  ;;  %v4386_v4 = vpop.permute.xlu1 %1472 }
 0x3ca   :  { %v4341_v28 = vmul.f32 %v1488_v41, %v1482_v36  ;;  %v1581_v38 = vsel %vm5306_vm13, %v5485_v48, %v5486_v33  ;;  %v1613_v25 = vsel %vm1606_vm15, %v5488_v49, %v5487_v22  ;;  %v4353_v29 = vmul.f32 %v1521_v54, %v1514_v63 }
 0x3cb   :  { %v4357_v15 = vmul.f32 %v1521_v54, %v1515_v2  ;;  %v4361_v17 = vmul.f32 %v1554_v45, %v1547_v53  ;;  %v1614_v41 = vsel %vm1606_vm15, %v5487_v22, %v5488_v49  ;;  %vm1903_vm13 = vcmp.lt.s32.totalorder %v2591_v40, 82  ;;  %v5489_v54 = vld [vmem:[#allocation57_spill] sm:$0xff]  ;;  %v5491_v53 = vld [vmem:[#allocation59_spill] sm:$0xff]  ;;  %v5494_v22 = vld [vmem:[#allocation62_spill] sm:$0xff] }
 0x3cc   :  { %v4372_v36 = vmul.f32 %v1554_v45, %v1548_v9  ;;  %v4376_v57 = vmul.f32 %v1587_v61, %v1580_v5  ;;  %v1646_v63 = vsel %vm5307_vm3, %v5490_v26, %v5489_v54  ;;  %v1647_v2 = vsel %vm5307_vm3, %v5489_v54, %v5490_v26  ;;  %v5492_v9 = vld [vmem:[#allocation60_spill] sm:$0xff]  ;;  %v5495_v54 = vld [vmem:[#allocation63_spill] sm:$0xff] }
 0x3cd   :  { %v4390_v45 = vmul.f32 %v1587_v61, %v1581_v38  ;;  %v4394_v27 = vmul.f32 %v1620_v0, %v1613_v25  ;;  %v1679_v48 = vsel %vm1672_vm14, %v5492_v9, %v5491_v53  ;;  %v1680_v33 = vsel %vm1672_vm14, %v5491_v53, %v5492_v9  ;;  %v4407_v61 = vpop.permute.xlu0 %1470  ;;  %v5493_v38 = vld [vmem:[#allocation61_spill] sm:$0xff]  ;;  %v5496_v26 = vld [vmem:[#allocation64_spill] sm:$0xff]  ;;  %v4461_v21 = vpop.permute.xlu1 %1505 }
 0x3ce   :  { %vm1936_vm3 = vcmp.lt.s32.totalorder %v2591_v40, 81  ;;  %v4411_v5 = vmul.f32 %v1620_v0, %v1614_v41  ;;  %v1712_v49 = vsel %vm1705_vm1, %v5494_v22, %v5493_v38  ;;  %v1713_v25 = vsel %vm1705_vm1, %v5493_v38, %v5494_v22  ;;  %v5497_v38 = vld [vmem:[#allocation65_spill] sm:$0xff]  ;;  %v5498_v22 = vld [vmem:[#allocation66_spill] sm:$0xff] }
 0x3cf   :  { %v1745_v53 = vsel %vm1738_vm0, %v5496_v26, %v5495_v54  ;;  %v4429_v0 = vmul.f32 %v1653_v1, %v1646_v63  ;;  %v4433_v41 = vmul.f32 %v1653_v1, %v1647_v2  ;;  %v1746_v9 = vsel %vm1738_vm0, %v5495_v54, %v5496_v26  ;;  %v5499_v2 = vld [vmem:[#allocation67_spill] sm:$0xff]  ;;  %v5500_v54 = vld [vmem:[#allocation68_spill] sm:$0xff] }
 0x3d0   :  { %v1778_v60 = vsel %vm1771_vm11, %v5498_v22, %v5497_v38  ;;  %v4445_v32 = vmul.f32 %v1686_v11, %v1679_v48  ;;  %v4449_v63 = vmul.f32 %v1686_v11, %v1680_v33  ;;  %v1779_v1 = vsel %vm1771_vm11, %v5497_v38, %v5498_v22 }
 0x3d1   :  { %v1811_v26 = vsel %vm5308_vm12, %v5500_v54, %v5499_v2  ;;  %v4465_v48 = vmul.f32 %v1719_v39, %v1712_v49  ;;  %v4469_v11 = vmul.f32 %v1719_v39, %v1713_v25  ;;  %v4473_v33 = vmul.f32 %v1752_v20, %v1745_v53  ;;  %v4479_v22 = vpop.permute.xlu0 %1503  ;;  %v5506_v39 = vld [vmem:[#allocation69_spill] sm:$0xff]  ;;  %v5507_v25 = vld [vmem:[#allocation70_spill] sm:$0xff]  ;;  %v4529_v58 = vpop.permute.xlu1 %1538 }
 0x3d2   :  { %v1812_v38 = vsel %vm5308_vm12, %v5499_v2, %v5500_v54  ;;  %v4483_v18 = vmul.f32 %v1752_v20, %v1746_v9  ;;  %v4487_v49 = vmul.f32 %v1785_v31, %v1778_v60  ;;  %v1844_v53 = vsel %vm1837_vm7, %v5507_v25, %v5506_v39 }
 0x3d3   :  { %5501 = vst [vmem:[#allocation30_spill] sm:$0xff] %v4465_v48  ;;  %5502 = vst [vmem:[#allocation34_spill] sm:$0xff] %v4469_v11  ;;  %v1845_v2 = vsel %vm1837_vm7, %v5506_v39, %v5507_v25  ;;  %v4499_v54 = vmul.f32 %v1785_v31, %v1779_v1  ;;  %v4503_v20 = vmul.f32 %v1818_v3, %v1811_v26  ;;  %vm5309_vm12 = vcmp.lt.s32.totalorder %v2591_v40, 80  ;;  %v5511_v31 = vld [vmem:[#allocation71_spill] sm:$0xff]  ;;  %v5512_v1 = vld [vmem:[#allocation72_spill] sm:$0xff] }
 0x3d4   :  { %5503 = vst [vmem:[#allocation33_spill] sm:$0xff] %v4473_v33  ;;  %5504 = vst [vmem:[#allocation35_spill] sm:$0xff] %v4483_v18  ;;  %v1320_v60 = vstv %s4368_s2  ;;  %v1310_v9 = vsel %vm1309_vm5, %v4152_v13, %v4144_v44  ;;  %v4515_v39 = vmul.f32 %v1818_v3, %v1812_v38  ;;  %v1877_v26 = vsel %vm1870_vm2, %v5512_v1, %v5511_v31  ;;  %v5521_v11 = vld [vmem:[#allocation75_spill] sm:$0xff]  ;;  %v5522_v48 = vld [vmem:[#allocation76_spill] sm:$0xff] }
 0x3d5   :  { %5505 = vst [vmem:[#allocation36_spill] sm:$0xff] %v4487_v49  ;;  %5508 = vst [vmem:[#allocation31_spill] sm:$0xff] %v4499_v54  ;;  %v1878_v25 = vsel %vm1870_vm2, %v5511_v31, %v5512_v1  ;;  %v1311_v7 = vsel %vm1309_vm5, %v4144_v44, %v4152_v13  ;;  %v4533_v3 = vmul.f32 %v1851_v59, %v1844_v53  ;;  %v4546_v44 = vpop.permute.xlu0 %1536  ;;  %v5515_v13 = vld [vmem:[#allocation73_spill] sm:$0xff]  ;;  %v5516_v1 = vld [vmem:[#allocation74_spill] sm:$0xff] }
 0x3d6   :  { %5509 = vst [vmem:[#allocation32_spill] sm:$0xff] %v4503_v20  ;;  %5510 = vst [vmem:[#allocation37_spill] sm:$0xff] %v4515_v39  ;;  %v4537_v38 = vmul.f32 %v1851_v59, %v1845_v2  ;;  %v1353_v39 = vstv %s4405_s17  ;;  %v1343_v31 = vsel %vm1342_vm6, %v4180_v10, %v4174_v30  ;;  %v1910_v53 = vsel %vm1903_vm13, %v5516_v1, %v5515_v13 }
 0x3d7   :  { %5513 = vst [vmem:[#allocation38_spill] sm:$0xff] %v4533_v3  ;;  %v1911_v59 = vsel %vm1903_vm13, %v5515_v13, %v5516_v1  ;;  %v1321_v2 = vmul.f32 %v1320_v60, %v1310_v9  ;;  %v5517_v3 = vstv %s4150_s12  ;;  %v1322_v49 = vmul.f32 %v1320_v60, %v1311_v7  ;;  %v4578_v7 = vpop.permute.xlu1 %1571  ;;  %s5072_s12 = sld [smem:[#allocation6 + $0x30]] }
 0x3d8   :  { %5514 = vst [vmem:[#allocation39_spill] sm:$0xff] %v4537_v38  ;;  %v1386_v38 = vstv %s4425_s9  ;;  %v4559_v20 = vmul.f32 %v5517_v3, %v1877_v26  ;;  %v5519_v33 = vmov %v5517_v3  ;;  %v1344_v18 = vsel %vm1342_vm6, %v4174_v30, %v4180_v10 }
 0x3d9   :  { %v4563_v54 = vmul.f32 %v5519_v33, %v1878_v25  ;;  %v1943_v13 = vsel %vm1936_vm3, %v5522_v48, %v5521_v11  ;;  %v1354_v9 = vmul.f32 %v1353_v39, %v1343_v31  ;;  %v1376_v26 = vsel %vm1375_vm10, %v4205_v51, %v4198_v12  ;;  %v5527_v31 = vld [vmem:[#allocation83_spill] sm:$0xff]  ;;  %v4593_v1 = vpop.permute.xlu0 %1569 }
 0x3da   :  { %5518 = vst [vmem:[#allocation40_spill] sm:$0xff] %v4559_v20  ;;  %v1419_v33 = vstv %s4459_s19  ;;  %v5523_v60 = vstv %s4156_s13  ;;  %v1377_v3 = vsel %vm1375_vm10, %v4198_v12, %v4205_v51  ;;  %vm440_vm5 = vcmp.lt.s32.totalorder %v5527_v31, 240  ;;  %s5074_s13 = sld [smem:[#allocation6 + $0x61]] }
 0x3db   :  { %5520 = vst [vmem:[#allocation41_spill] sm:$0xff] %v4563_v54  ;;  %v4582_v25 = vmul.f32 %v5523_v60, %v1910_v53  ;;  %v5525_v30 = vmov %v5523_v60  ;;  %v1944_v54 = vsel %vm1936_vm3, %v5521_v11, %v5522_v48  ;;  %v1326_v53 = vadd.f32 %v4248_v34, %v1321_v2 }
 0x3dc   :  { %v4586_v10 = vmul.f32 %v5525_v30, %v1911_v59  ;;  %v1355_v60 = vmul.f32 %v1353_v39, %v1344_v18  ;;  %v1409_v59 = vsel %vm1408_vm9, %v4263_v47, %v4244_v52  ;;  %v5528_v12 = vstv %s4160_s14  ;;  %v4621_v39 = vpop.permute.xlu1 %1604  ;;  %s2483_s14 = smov [#allocation7]  }
 0x3dd   :  { %5524 = vst [vmem:[#allocation42_spill] sm:$0xff] %v4582_v25  ;;  %v4608_v51 = vmul.f32 %v5528_v12, %v1943_v13  ;;  %v1327_v30 = vadd.f32 %v4252_v19, %v1322_v49  ;;  %v1452_v25 = vstv %s4511_s18  ;;  %v1359_v48 = vadd.f32 %v4256_v37, %v1354_v9  ;;  %v5534_v13 = vld [vmem:[#allocation77_spill] sm:$0xff]  ;;  %v5535_v9 = vld [vmem:[#allocation78_spill] sm:$0xff] }
 0x3de   :  { %5526 = vst [vmem:[#allocation43_spill] sm:$0xff] %v4586_v10  ;;  %v1387_v10 = vmul.f32 %v1386_v38, %v1376_v26  ;;  %v1388_v11 = vmul.f32 %v1386_v38, %v1377_v3  ;;  %v1410_v18 = vsel %vm1408_vm9, %v4244_v52, %v4263_v47  ;;  %vm5530_vm6 = vcmp.lt.s32.totalorder %v2591_v40, 114  ;;  %v4634_v52 = vpop.permute.xlu0 %1602 }
 0x3df   :  { %5529 = vst [vmem:[#allocation44_spill] sm:$0xff] %v4608_v51  ;;  %v1442_v34 = vsel %vm5530_vm6, %v4333_v16, %v4314_v43  ;;  %v1420_v2 = vmul.f32 %v1419_v33, %v1409_v59  ;;  %vm5531_vm10 = vmmov %vm5530_vm6  ;;  %v1485_v37 = vstv %s4544_s22  ;;  %v1475_v49 = vsel %vm1474_vm8, %v4407_v61, %v4386_v4 }
 0x3e0   :  { %v1443_v19 = vsel %vm5531_vm10, %v4314_v43, %v4333_v16  ;;  %v5532_v47 = vmov %v5528_v12  ;;  %v4644_v26 = vsel %vm5309_vm12, %v5535_v9, %v5534_v13  ;;  %vm5536_vm9 = vcmp.lt.s32.totalorder %v3310_v50, 15 }
 0x3e1   :  { %v4638_v38 = vmul.f32 %v5532_v47, %v1944_v54  ;;  %v1334_v43 = vsel %vm5536_vm9, %v1326_v53, 0.0  ;;  %v1360_v16 = vadd.f32 %v4267_v46, %v1355_v60  ;;  %vm5537_vm6 = vcmp.lt.s32.totalorder %v3333_v35, 15  ;;  %v4657_v53 = vpop.permute.xlu1 %1637 }
 0x3e2   :  { %v1335_v3 = vsel %vm5537_vm6, %v1327_v30, 0.0  ;;  %v1392_v54 = vadd.f32 %v4271_v55, %v1387_v10  ;;  %v1421_v59 = vmul.f32 %v1419_v33, %v1410_v18  ;;  %v1453_v12 = vmul.f32 %v1452_v25, %v1442_v34 }
 0x3e3   :  { %5533 = vst [vmem:[#allocation45_spill] sm:$0xff] %v4638_v38  ;;  %vm5538_vm10 = vcmp.lt.s32.totalorder %v3310_v50, 14  ;;  %v1393_v38 = vadd.f32 %v4283_v62, %v1388_v11  ;;  %v1454_v51 = vmul.f32 %v1452_v25, %v1443_v19  ;;  %v1486_v20 = vmul.f32 %v1485_v37, %v1475_v49  ;;  %v4671_v62 = vpop.permute.xlu0 %1635 }
 0x3e4   :  { %v1367_v47 = vsel %vm5538_vm10, %v1359_v48, 0.0  ;;  %v4663_v46 = vsel %vm5309_vm12, %v5534_v13, %v5535_v9  ;;  %v1336_v60 = vadd.f32 %v1334_v43, %v4185_v24  ;;  %v1425_v55 = vadd.f32 %v4287_v14, %v1420_v2 }
 0x3e5   :  { %v1476_v33 = vsel %vm1474_vm8, %v4386_v4, %v4407_v61  ;;  %v1337_v25 = vadd.f32 %v1335_v3, %v4188_v6  ;;  %vm5539_vm9 = vcmp.lt.s32.totalorder %v3333_v35, 14  ;;  %v1518_v30 = vstv %s4604_s23  ;;  %v4701_v34 = vpop.permute.xlu1 %1670 }
 0x3e6   :  { %v1368_v10 = vsel %vm5539_vm9, %v1360_v16, 0.0  ;;  %vm5540_vm6 = vcmp.lt.s32.totalorder %v2591_v40, 112  ;;  %v1369_v48 = vadd.f32 %v1367_v47, %v1336_v60  ;;  %vm5541_vm10 = vcmp.lt.s32.totalorder %v3310_v50, 13 }
 0x3e7   :  { %v1509_v24 = vsel %vm5540_vm6, %v4461_v21, %v4479_v22  ;;  %v1400_v14 = vsel %vm5541_vm10, %v1392_v54, 0.0  ;;  %v1426_v4 = vadd.f32 %v4300_v8, %v1421_v59  ;;  %v1458_v61 = vadd.f32 %v4318_v42, %v1453_v12 }
 0x3e8   :  { %vm5542_vm8 = vcmp.lt.s32.totalorder %v3333_v35, 13  ;;  %vm5543_vm9 = vcmp.ge.s32.totalorder %v3333_v35, 3  ;;  %v1459_v8 = vadd.f32 %v4322_v56, %v1454_v51  ;;  %v1487_v18 = vmul.f32 %v1485_v37, %v1476_v33  ;;  %v4714_v56 = vpop.permute.xlu0 %1668 }
 0x3e9   :  { %v1401_v6 = vsel %vm5542_vm8, %v1393_v38, 0.0  ;;  %vm4695_vm6 = vmand %vm440_vm5, %vm5543_vm9  ;;  %v1491_v42 = vadd.f32 %v4337_v23, %v1486_v20  ;;  %v1370_v2 = vadd.f32 %v1368_v10, %v1337_v25  ;;  %vm5546_vm10 = vcmp.ge.s32.totalorder %v3310_v50, 3  ;;  %v4744_v12 = vpop.permute.xlu1 %1703 }
 0x3ea   :  { %v1433_v19 = vsel %vm5546_vm10, %v1425_v55, 0.0  ;;  %vm5547_vm8 = vcmp.ge.s32.totalorder %v3333_v35, 2  ;;  %v1520_v38 = vmul.f32 %v1518_v30, %v1509_v24  ;;  %v1551_v13 = vstv %s4632_s20 }
 0x3eb   :  { %vm4709_vm12 = vmand %vm440_vm5, %vm5547_vm8  ;;  %v1402_v51 = vadd.f32 %v1400_v14, %v1369_v48  ;;  %vm5550_vm9 = vcmp.lt.s32.totalorder %v2591_v40, 112  ;;  %v1541_v20 = vsel %vm1540_vm4, %v4546_v44, %v4529_v58  ;;  %v1584_v37 = vstv %s4649_s24 }
 0x3ec   :  { %v1508_v23 = vsel %vm5550_vm9, %v4479_v22, %v4461_v21  ;;  %v1403_v9 = vadd.f32 %v1401_v6, %v1370_v2  ;;  %v1434_v43 = vsel %vm4695_vm6, %v1426_v4, 0.0  ;;  %vm5551_vm10 = vcmp.ge.s32.totalorder %v3310_v50, 2  ;;  %v1702_v55 = vpop.permute.xlu0 %1701 }
 0x3ed   :  { %v1466_v16 = vsel %vm5551_vm10, %v1458_v61, 0.0  ;;  %v1542_v21 = vsel %vm1540_vm4, %v4529_v58, %v4546_v44  ;;  %v1435_v22 = vadd.f32 %v1433_v19, %v1402_v51  ;;  %v1467_v3 = vsel %vm4709_vm12, %v1459_v8, 0.0  ;;  %v4778_v8 = vpop.permute.xlu1 %1736 }
 0x3ee   :  { %v1492_v54 = vadd.f32 %v4341_v28, %v1487_v18  ;;  %vm5552_vm6 = vcmp.ge.s32.totalorder %v3310_v50, 1  ;;  %vm5553_vm8 = vcmp.ge.s32.totalorder %v3333_v35, 1  ;;  %v1519_v44 = vmul.f32 %v1518_v30, %v1508_v23 }
 0x3ef   :  { %v1499_v59 = vsel %vm5552_vm6, %v1491_v42, 0.0  ;;  %vm4750_vm4 = vmand %vm440_vm5, %vm5553_vm8  ;;  %v1525_v47 = vadd.f32 %v4357_v15, %v1520_v38  ;;  %v1552_v60 = vmul.f32 %v1551_v13, %v1541_v20  ;;  %vm5556_vm12 = vcmp.lt.s32.totalorder %v2591_v40, 110 }
 0x3f0   :  { %v1574_v28 = vsel %vm5556_vm12, %v4593_v1, %v4578_v7  ;;  %v5557_v33 = vstv %s4162_s15  ;;  %v1436_v10 = vadd.f32 %v1434_v43, %v1403_v9  ;;  %v1468_v24 = vadd.f32 %v1466_v16, %v1435_v22  ;;  %vm5558_vm9 = vmmov %vm5556_vm12  ;;  %v4793_v2 = vpop.permute.xlu0 %1734 }
 0x3f1   :  { %v4764_v25 = vmul.f32 %v5557_v33, %v4644_v26  ;;  %v1553_v48 = vmul.f32 %v1551_v13, %v1542_v21  ;;  %v1575_v15 = vsel %vm5558_vm9, %v4578_v7, %v4593_v1  ;;  %v1617_v30 = vstv %s4685_s25  ;;  %v1770_v9 = vpop.permute.xlu1 %1769 }
 0x3f2   :  { %v1607_v14 = vsel %vm1606_vm15, %v4634_v52, %v4621_v39  ;;  %v1650_v4 = vstv %s4687_s21  ;;  %v1469_v61 = vadd.f32 %v1467_v3, %v1436_v10  ;;  %v1500_v26 = vsel %vm4750_vm4, %v1492_v54, 0.0 }
 0x3f3   :  { %v1501_v6 = vadd.f32 %v1499_v59, %v1468_v24  ;;  %v1585_v11 = vmul.f32 %v1584_v37, %v1574_v28  ;;  %v1524_v7 = vadd.f32 %v4353_v29, %v1519_v44  ;;  %v1533_v1 = vsel %vm440_vm5, %v1525_v47, 0.0 }
 0x3f4   :  { %v1557_v18 = vadd.f32 %v4361_v17, %v1552_v60  ;;  %v1608_v42 = vsel %vm1606_vm15, %v4621_v39, %v4634_v52  ;;  %vm448_vm10 = vcmp.lt.s32.totalorder %v5527_v31, 224  ;;  %v1558_v19 = vadd.f32 %v4372_v36, %v1553_v48  ;;  %v1768_v22 = vpop.permute.xlu0 %1767 }
 0x3f5   :  { %v1586_v49 = vmul.f32 %v1584_v37, %v1575_v15  ;;  %v1618_v38 = vmul.f32 %v1617_v30, %v1607_v14  ;;  %vm5559_vm6 = vcmp.lt.s32.totalorder %v2591_v40, 99  ;;  %v1502_v17 = vadd.f32 %v1500_v26, %v1469_v61  ;;  %v1803_v28 = vpop.permute.xlu1 %1802 }
 0x3f6   :  { %v1640_v29 = vsel %vm5559_vm6, %v4671_v62, %v4657_v53  ;;  %vm5560_vm8 = vcmp.lt.s32.totalorder %v3333_v35, 15  ;;  %v1683_v52 = vstv %s4725_s26  ;;  %v1716_v13 = vstv %s4735_s27  ;;  %vm5563_vm4 = vmmov %vm5559_vm6 }
 0x3f7   :  { %vm4804_vm15 = vmand %vm440_vm5, %vm5560_vm8  ;;  %v1749_v36 = vstv %s4737_s29  ;;  %v1590_v51 = vadd.f32 %v4376_v57, %v1585_v11  ;;  %v1619_v23 = vmul.f32 %v1617_v30, %v1608_v42  ;;  %v1641_v20 = vsel %vm5563_vm4, %v4657_v53, %v4671_v62 }
 0x3f8   :  { %v1673_v37 = vsel %vm1672_vm14, %v4714_v56, %v4701_v34  ;;  %v1534_v43 = vadd.f32 %v1524_v7, %v1501_v6  ;;  %v1535_v16 = vadd.f32 %v1533_v1, %v1502_v17  ;;  %v1651_v21 = vmul.f32 %v1650_v4, %v1640_v29  ;;  %v5577_v17 = vld [vmem:[#allocation30_spill] sm:$0xff] }
 0x3f9   :  { %v1782_v57 = vstv %s4759_s30  ;;  %vm5564_vm12 = vcmp.lt.s32.totalorder %v3310_v50, 15  ;;  %v1566_v53 = vsel %vm4804_vm15, %v1558_v19, 0.0  ;;  %v1591_v62 = vadd.f32 %v4390_v45, %v1586_v49  ;;  %v1836_v7 = vpop.permute.xlu1 %1835 }
 0x3fa   :  { %v1565_v3 = vsel %vm5564_vm12, %v1557_v18, 0.0  ;;  %v1623_v54 = vadd.f32 %v4394_v27, %v1618_v38  ;;  %vm5565_vm9 = vcmp.lt.s32.totalorder %v3333_v35, 14  ;;  %v1652_v58 = vmul.f32 %v1650_v4, %v1641_v20 }
 0x3fb   :  { %vm4833_vm6 = vmand %vm440_vm5, %vm5565_vm9  ;;  %v1674_v44 = vsel %vm1672_vm14, %v4701_v34, %v4714_v56  ;;  %v1684_v47 = vmul.f32 %v1683_v52, %v1673_v37  ;;  %v1706_v45 = vsel %vm1705_vm1, %v1702_v55, %v4744_v12  ;;  %vm5568_vm8 = vcmp.lt.s32.totalorder %v3310_v50, 14  ;;  %v5591_v34 = vld [vmem:[#allocation31_spill] sm:$0xff] }
 0x3fc   :  { %v1598_v27 = vsel %vm5568_vm8, %v1590_v51, 0.0  ;;  %v1624_v60 = vadd.f32 %v4411_v5, %v1619_v23  ;;  %v1815_v33 = vstv %s4780_s5  ;;  %v1848_v10 = vstv %s4782_s6  ;;  %v1801_v5 = vpop.permute.xlu0 %1800 }
 0x3fd   :  { %v1567_v24 = vadd.f32 %v1565_v3, %v1534_v43  ;;  %v1568_v48 = vadd.f32 %v1566_v53, %v1535_v16  ;;  %vm5569_vm15 = vcmp.lt.s32.totalorder %v3333_v35, 13  ;;  %v1656_v56 = vadd.f32 %v4429_v0, %v1651_v21  ;;  %v1869_v21 = vpop.permute.xlu1 %1868 }
 0x3fe   :  { %vm4853_vm14 = vmand %vm440_vm5, %vm5569_vm15  ;;  %v1707_v15 = vsel %vm1705_vm1, %v4744_v12, %v1702_v55  ;;  %v1599_v30 = vsel %vm4833_vm6, %v1591_v62, 0.0  ;;  %vm5572_vm4 = vcmp.lt.s32.totalorder %v3310_v50, 13  ;;  %v1685_v4 = vmul.f32 %v1683_v52, %v1674_v44 }
 0x3ff   :  { %v1631_v14 = vsel %vm5572_vm4, %v1623_v54, 0.0  ;;  %v1717_v61 = vmul.f32 %v1716_v13, %v1706_v45  ;;  %vm2002_vm5 = vcmp.lt.s32.totalorder %v2591_v40, 79  ;;  %v1600_v26 = vadd.f32 %v1598_v27, %v1567_v24 }
 0x400   :  { %v1657_v6 = vadd.f32 %v4433_v41, %v1652_v58  ;;  %v1689_v0 = vadd.f32 %v4445_v32, %v1684_v47  ;;  %v1740_v12 = vsel %vm1738_vm0, %v4778_v8, %v4793_v2  ;;  %v1632_v55 = vsel %vm4853_vm14, %v1624_v60, 0.0  ;;  %v1834_v38 = vpop.permute.xlu0 %1833  ;;  %v5589_v47 = vld [vmem:[#allocation35_spill] sm:$0xff] }
 0x401   :  { %vm5573_vm1 = vcmp.ge.s32.totalorder %v3333_v35, 3  ;;  %v1718_v41 = vmul.f32 %v1716_v13, %v1707_v15  ;;  %v1772_v32 = vsel %vm1771_vm11, %v1768_v22, %v1770_v9  ;;  %v1881_v1 = vstv %s4820_s0 }
 0x402   :  { %vm4878_vm12 = vmand %vm448_vm10, %vm5573_vm1  ;;  %v1601_v18 = vadd.f32 %v1599_v30, %v1568_v48  ;;  %v1633_v42 = vadd.f32 %v1631_v14, %v1600_v26  ;;  %vm5576_vm9 = vcmp.ge.s32.totalorder %v3310_v50, 3  ;;  %v1773_v49 = vsel %vm1771_vm11, %v1770_v9, %v1768_v22  ;;  %v1902_v30 = vpop.permute.xlu1 %1901 }
 0x403   :  { %v1664_v19 = vsel %vm5576_vm9, %v1656_v56, 0.0  ;;  %v1690_v29 = vadd.f32 %v4449_v63, %v1685_v4  ;;  %v1722_v39 = vadd.f32 %v5577_v17, %v1717_v61  ;;  %v1739_v52 = vsel %vm1738_vm0, %v4793_v2, %v4778_v8  ;;  %v5582_v2 = vld [vmem:[#allocation34_spill] sm:$0xff]  ;;  %v5592_v61 = vld [vmem:[#allocation33_spill] sm:$0xff] }
 0x404   :  { %v1751_v13 = vmul.f32 %v1749_v36, %v1740_v12  ;;  %v1634_v51 = vadd.f32 %v1632_v55, %v1601_v18  ;;  %v1665_v23 = vsel %vm4878_vm12, %v1657_v6, 0.0  ;;  %vm5578_vm11 = vcmp.ge.s32.totalorder %v3333_v35, 2  ;;  %v1867_v54 = vpop.permute.xlu0 %1866  ;;  %v5596_v12 = vld [vmem:[#allocation79_spill] sm:$0xff]  ;;  %v5597_v55 = vld [vmem:[#allocation80_spill] sm:$0xff] }
 0x405   :  { %vm4905_vm6 = vmand %vm448_vm10, %vm5578_vm11  ;;  %vm5581_vm8 = vcmp.ge.s32.totalorder %v3310_v50, 2  ;;  %v1783_v8 = vmul.f32 %v1782_v57, %v1772_v32  ;;  %v1723_v37 = vadd.f32 %v5582_v2, %v1718_v41  ;;  %v1784_v9 = vmul.f32 %v1782_v57, %v1773_v49  ;;  %v5600_v49 = vld [vmem:[#allocation37_spill] sm:$0xff] }
 0x406   :  { %v1697_v20 = vsel %vm5581_vm8, %v1689_v0, 0.0  ;;  %vm5583_vm0 = vcmp.lt.s32.totalorder %v2591_v40, 94  ;;  %v1666_v22 = vadd.f32 %v1664_v19, %v1633_v42  ;;  %vm5585_vm14 = vcmp.ge.s32.totalorder %v3333_v35, 1  ;;  %v5599_v42 = vld [vmem:[#allocation32_spill] sm:$0xff]  ;;  %v1935_v63 = vpop.permute.xlu1 %1934 }
 0x407   :  { %v1805_v43 = vsel %vm5583_vm0, %v1801_v5, %v1803_v28  ;;  %vm5584_vm15 = vmmov %vm5583_vm0  ;;  %v1750_v53 = vmul.f32 %v1749_v36, %v1739_v52  ;;  %v1838_v57 = vsel %vm1837_vm7, %v1834_v38, %v1836_v7  ;;  %v1839_v62 = vsel %vm1837_vm7, %v1836_v7, %v1834_v38  ;;  %v5590_v36 = vld [vmem:[#allocation36_spill] sm:$0xff] }
 0x408   :  { %v1806_v16 = vsel %vm5584_vm15, %v1803_v28, %v1801_v5  ;;  %vm4920_vm4 = vmand %vm448_vm10, %vm5585_vm14  ;;  %v1667_v59 = vadd.f32 %v1665_v23, %v1634_v51  ;;  %v1698_v58 = vsel %vm4905_vm6, %v1690_v29, 0.0  ;;  %vm5588_vm1 = vcmp.ge.s32.totalorder %v3310_v50, 1  ;;  %v1900_v0 = vpop.permute.xlu0 %1899 }
 0x409   :  { %v1730_v44 = vsel %vm5588_vm1, %v1722_v39, 0.0  ;;  %v1756_v45 = vadd.f32 %v5589_v47, %v1751_v13  ;;  %v1699_v27 = vadd.f32 %v1697_v20, %v1666_v22  ;;  %v1788_v60 = vadd.f32 %v5590_v36, %v1783_v8  ;;  %v5604_v39 = vld [vmem:[#allocation38_spill] sm:$0xff]  ;;  %v5605_v13 = vld [vmem:[#allocation39_spill] sm:$0xff] }
 0x40a   :  { %v1816_v28 = vmul.f32 %v1815_v33, %v1805_v43  ;;  %v1817_v24 = vmul.f32 %v1815_v33, %v1806_v16  ;;  %v1731_v48 = vsel %vm4920_vm4, %v1723_v37, 0.0  ;;  %v1789_v56 = vadd.f32 %v5591_v34, %v1784_v9  ;;  %v1968_v47 = vpop.permute.xlu1 %1967 }
 0x40b   :  { %v1849_v15 = vmul.f32 %v1848_v10, %v1838_v57  ;;  %v1850_v5 = vmul.f32 %v1848_v10, %v1839_v62  ;;  %v1700_v14 = vadd.f32 %v1698_v58, %v1667_v59  ;;  %v1732_v4 = vadd.f32 %v1730_v44, %v1699_v27  ;;  %v5611_v59 = vld [vmem:[#allocation40_spill] sm:$0xff] }
 0x40c   :  { %v1755_v26 = vadd.f32 %v5592_v61, %v1750_v53  ;;  %vm5593_vm7 = vcmp.lt.s32.totalorder %v3333_v35, 15  ;;  %v1871_v33 = vsel %vm1870_vm2, %v1867_v54, %v1869_v21  ;;  %v2009_v10 = vsel %vm2002_vm5, %v5597_v55, %v5596_v12  ;;  %v1933_v43 = vpop.permute.xlu0 %1932 }
 0x40d   :  { %vm4946_vm12 = vmand %vm448_vm10, %vm5593_vm7  ;;  %v1764_v11 = vsel %vm448_vm10, %v1756_v45, 0.0  ;;  %v1872_v41 = vsel %vm1870_vm2, %v1869_v21, %v1867_v54  ;;  %v1914_v32 = vstv %s4897_s7  ;;  %v1733_v7 = vadd.f32 %v1731_v48, %v1700_v14  ;;  %v5612_v45 = vld [vmem:[#allocation41_spill] sm:$0xff] }
 0x40e   :  { %vm5598_vm9 = vcmp.lt.s32.totalorder %v3310_v50, 15  ;;  %v1821_v19 = vadd.f32 %v5599_v42, %v1816_v28  ;;  %v1822_v38 = vadd.f32 %v5600_v49, %v1817_v24  ;;  %vm2035_vm11 = vcmp.lt.s32.totalorder %v2591_v40, 78 }
 0x40f   :  { %v1796_v18 = vsel %vm5598_vm9, %v1788_v60, 0.0  ;;  %v1797_v29 = vsel %vm4946_vm12, %v1789_v56, 0.0  ;;  %vm5601_vm2 = vcmp.lt.s32.totalorder %v3333_v35, 14  ;;  %v1854_v52 = vadd.f32 %v5604_v39, %v1849_v15 }
 0x410   :  { %vm4976_vm6 = vmand %vm448_vm10, %vm5601_vm2  ;;  %v1855_v51 = vadd.f32 %v5605_v13, %v1850_v5  ;;  %v1882_v23 = vmul.f32 %v1881_v1, %v1871_v33  ;;  %v1765_v20 = vadd.f32 %v1755_v26, %v1732_v4  ;;  %v1766_v8 = vadd.f32 %v1764_v11, %v1733_v7  ;;  %v1966_v24 = vpop.permute.xlu0 %1965  ;;  %v2001_v11 = vpop.permute.xlu1 %2000 }
 0x411   :  { %vm5606_vm8 = vcmp.lt.s32.totalorder %v3333_v35, 13  ;;  %v1883_v37 = vmul.f32 %v1881_v1, %v1872_v41  ;;  %v1904_v9 = vsel %vm1903_vm13, %v1900_v0, %v1902_v30  ;;  %vm456_vm15 = vcmp.lt.s32.totalorder %v5527_v31, 208 }
 0x412   :  { %vm4988_vm0 = vmand %vm448_vm10, %vm5606_vm8  ;;  %v1905_v16 = vsel %vm1903_vm13, %v1902_v30, %v1900_v0  ;;  %v1947_v21 = vstv %s4935_s1  ;;  %v1937_v22 = vsel %vm1936_vm3, %v1933_v43, %v1935_v63  ;;  %v1798_v3 = vadd.f32 %v1796_v18, %v1765_v20  ;;  %v5619_v0 = vld [vmem:[#allocation42_spill] sm:$0xff]  ;;  %v5622_v18 = vld [vmem:[#allocation44_spill] sm:$0xff] }
 0x413   :  { %v1799_v53 = vadd.f32 %v1797_v29, %v1766_v8  ;;  %vm5609_vm10 = vcmp.lt.s32.totalorder %v3310_v50, 14  ;;  %v1830_v1 = vsel %vm4976_vm6, %v1822_v38, 0.0  ;;  %vm5610_vm14 = vcmp.lt.s32.totalorder %v3310_v50, 13 }
 0x414   :  { %v1829_v57 = vsel %vm5609_vm10, %v1821_v19, 0.0  ;;  %v1862_v62 = vsel %vm5610_vm14, %v1854_v52, 0.0  ;;  %v1863_v54 = vsel %vm4988_vm0, %v1855_v51, 0.0  ;;  %v1887_v58 = vadd.f32 %v5611_v59, %v1882_v23  ;;  %v1999_v19 = vpop.permute.xlu0 %1998  ;;  %v5628_v51 = vld [vmem:[#allocation81_spill] sm:$0xff]  ;;  %v5629_v23 = vld [vmem:[#allocation82_spill] sm:$0xff] }
 0x415   :  { %v1915_v44 = vmul.f32 %v1914_v32, %v1904_v9  ;;  %v1888_v27 = vadd.f32 %v5612_v45, %v1883_v37  ;;  %v1916_v36 = vmul.f32 %v1914_v32, %v1905_v16  ;;  %v1938_v60 = vsel %vm1936_vm3, %v1935_v63, %v1933_v43  ;;  %v5631_v43 = vld [vmem:[#allocation45_spill] sm:$0xff] }
 0x416   :  { %v1948_v28 = vmul.f32 %v1947_v21, %v1937_v22  ;;  %v5613_v48 = vstv %s4162_s15  ;;  %v2010_v56 = vsel %vm2002_vm5, %v5596_v12, %v5597_v55  ;;  %v1831_v15 = vadd.f32 %v1829_v57, %v1798_v3  ;;  %s2191_s15 = sshll.u32 %s2483_s14, 4  ;;  %s2192_s15 = int_to_ptr.vmem [resolvable:$true] %s2191_s15 }
 0x417   :  { %v1985_v34 = vmul.f32 %v5613_v48, %v4663_v46  ;;  %v1832_v5 = vadd.f32 %v1830_v1, %v1799_v53  ;;  %vm5614_vm13 = vcmp.ge.s32.totalorder %v3333_v35, 3  ;;  %v5617_v14 = vstv %s4170_s3  ;;  %s2403_s3 = scalar_lea.vmem %s2192_s15, 2048  ;;  %p2408_p0 = scmp.lt.s32.totalorder %s2192_s15, %s2192_s15 }
 0x418   :  { %vm5027_vm4 = vmand %vm456_vm15, %vm5614_vm13  ;;  %v2017_v4 = vmul.f32 %v5617_v14, %v2009_v10  ;;  %v1980_v61 = vstv %s4965_s8  ;;  %vm5618_vm3 = vcmp.lt.s32.totalorder %v2591_v40, 80  ;;  %v2013_v26 = vstv %s4967_s10  ;;  %v5621_v10 = vld [vmem:[#allocation43_spill] sm:$0xff]  ;;  %p2404_p13 = scmp.ne.s32.totalorder %s2192_s15, %s2403_s3  ;;  %p2409_p1 = scmp.lt.s32.totalorder %s2403_s3, %s2403_s3 }
 0x419   :  { %v1971_v46 = vsel %vm5618_vm3, %v1968_v47, %v1966_v24  ;;  %v1864_v6 = vadd.f32 %v1862_v62, %v1831_v15  ;;  %v1865_v33 = vadd.f32 %v1863_v54, %v1832_v5  ;;  %v1920_v12 = vadd.f32 %v5619_v0, %v1915_v44  ;;  %vm5626_vm9 = vmmov %vm5618_vm3  ;;  %v2032_v62 = vpop.permute.xlu0 %2031 }
 0x41a   :  { %v1949_v55 = vmul.f32 %v1947_v21, %v1938_v60  ;;  %vm5620_vm1 = vcmp.ge.s32.totalorder %v3310_v50, 3  ;;  %v1896_v32 = vsel %vm5027_vm4, %v1888_v27, 0.0  ;;  %v1921_v7 = vadd.f32 %v5621_v10, %v1916_v36  ;;  %v2034_v21 = vpop.permute.xlu1 %2033  ;;  %p2410_p2 = por %p2409_p1, %p2408_p0 }
 0x41b   :  { %v1895_v41 = vsel %vm5620_vm1, %v1887_v58, 0.0  ;;  %v1953_v42 = vadd.f32 %v5622_v18, %v1948_v28  ;;  %vm5623_vm7 = vcmp.ge.s32.totalorder %v3333_v35, 2  ;;  %v1970_v38 = vsel %vm5626_vm9, %v1966_v24, %v1968_v47 }
 0x41c   :  { %vm5048_vm12 = vmand %vm456_vm15, %vm5623_vm7  ;;  %v1982_v29 = vmul.f32 %v1980_v61, %v1971_v46  ;;  %v2003_v17 = vsel %vm2002_vm5, %v1999_v19, %v2001_v11  ;;  %v2004_v39 = vsel %vm2002_vm5, %v2001_v11, %v1999_v19  ;;  %v5627_v52 = vmov %v5617_v14  ;;  %p2411_p3 = pnand %p2410_p2, %p2404_p13 }
 0x41d   :  { %v2018_v13 = vmul.f32 %v5627_v52, %v2010_v56  ;;  %v2042_v63 = vsel %vm2035_vm11, %v5629_v23, %v5628_v51  ;;  %v2043_v20 = vsel %vm2035_vm11, %v5628_v51, %v5629_v23  ;;  %v2046_v8 = vstv %s5006_s11 }
 0x41e   :  { %v1897_v2 = vadd.f32 %v1895_v41, %v1864_v6  ;;  %v1898_v37 = vadd.f32 %v1896_v32, %v1865_v33  ;;  %vm5630_vm2 = vcmp.ge.s32.totalorder %v3310_v50, 2  ;;  %v1954_v16 = vadd.f32 %v5631_v43, %v1949_v55  ;;  %v2067_v15 = vpop.permute.xlu1 %2066 }
 0x41f   :  { %v1928_v9 = vsel %vm5630_vm2, %v1920_v12, 0.0  ;;  %v1929_v22 = vsel %vm5048_vm12, %v1921_v7, 0.0  ;;  %vm5632_vm5 = vcmp.ge.s32.totalorder %v3333_v35, 1  ;;  %v1981_v53 = vmul.f32 %v1980_v61, %v1970_v38  ;;  %v2065_v61 = vpop.permute.xlu0 %2064 }
 0x420   :  { %vm5082_vm6 = vmand %vm456_vm15, %vm5632_vm5  ;;  %v2014_v57 = vmul.f32 %v2013_v26, %v2003_v17  ;;  %v2015_v1 = vmul.f32 %v2013_v26, %v2004_v39  ;;  %vm5635_vm8 = vcmp.ge.s32.totalorder %v3310_v50, 1  ;;  %v1987_v59 = vadd.f32 %v1985_v34, %v1982_v29 }
 0x421   :  { %v1961_v54 = vsel %vm5635_vm8, %v1953_v42, 0.0  ;;  %v2036_v58 = vsel %vm2035_vm11, %v2032_v62, %v2034_v21  ;;  %v2037_v44 = vsel %vm2035_vm11, %v2034_v21, %v2032_v62  ;;  %v5636_v47 = vstv %s4172_s16 }
 0x422   :  { %v2050_v45 = vmul.f32 %v5636_v47, %v2042_v63  ;;  %v1930_v27 = vadd.f32 %v1928_v9, %v1897_v2  ;;  %v2047_v36 = vmul.f32 %v2046_v8, %v2036_v58  ;;  %v2048_v60 = vmul.f32 %v2046_v8, %v2037_v44  ;;  %v2074_v11 = vpop.permute.xlu1 %2073 }
 0x423   :  { %v5637_v28 = vmov %v5636_v47  ;;  %v1931_v48 = vadd.f32 %v1929_v22, %v1898_v37  ;;  %v1962_v56 = vsel %vm5082_vm6, %v1954_v16, 0.0  ;;  %vm2068_vm0 = vcmp.lt.s32.totalorder %v2591_v40, 77  ;;  %v2072_v42 = vpop.permute.xlu0 %2071 }
 0x424   :  { %v2051_v24 = vmul.f32 %v5637_v28, %v2043_v20  ;;  %v1963_v34 = vadd.f32 %v1961_v54, %v1930_v27  ;;  %v1986_v5 = vadd.f32 %v4764_v25, %v1981_v53  ;;  %v2019_v30 = vadd.f32 %v2017_v4, %v2014_v57  ;;  %v5648_v54 = vld [vmem:[#allocation11_spill] sm:$0xff]  ;;  %v5650_v28 = vld [vmem:[#allocation12_spill] sm:$0xff] }
 0x425   :  { %v2020_v14 = vadd.f32 %v2018_v13, %v2015_v1  ;;  %v1995_v46 = vsel %vm456_vm15, %v1987_v59, 0.0  ;;  %vm5638_vm11 = vcmp.lt.s32.totalorder %v3333_v35, 15  ;;  %v2052_v6 = vadd.f32 %v2050_v45, %v2047_v36  ;;  %v5649_v36 = vld [vmem:[#allocation13_spill] sm:$0xff] }
 0x426   :  { %vm5106_vm10 = vmand %vm456_vm15, %vm5638_vm11  ;;  %v2053_v33 = vadd.f32 %v2051_v24, %v2048_v60  ;;  %v1964_v0 = vadd.f32 %v1962_v56, %v1931_v48  ;;  %vm5641_vm14 = vcmp.lt.s32.totalorder %v3333_v35, 14  ;;  %v2079_v4 = vstv %s5072_s12 }
 0x427   :  { %vm5114_vm13 = vmand %vm456_vm15, %vm5641_vm14  ;;  %v2069_v12 = vsel %vm2068_vm0, %v2065_v61, %v2067_v15  ;;  %v2070_v55 = vsel %vm2068_vm0, %v2067_v15, %v2065_v61  ;;  %v2082_v41 = vstv %s5074_s13  ;;  %v1996_v32 = vadd.f32 %v1986_v5, %v1963_v34  ;;  %v5651_v15 = vld [vmem:[#allocation16_spill] sm:$0xff]  ;;  %v5652_v5 = vld [vmem:[#allocation17_spill] sm:$0xff] }
 0x428   :  { %v1997_v10 = vadd.f32 %v1995_v46, %v1964_v0  ;;  %vm5644_vm4 = vcmp.lt.s32.totalorder %v3310_v50, 15  ;;  %v2028_v18 = vsel %vm5106_vm10, %v2020_v14, 0.0  ;;  %vm5645_vm3 = vcmp.lt.s32.totalorder %v3310_v50, 14  ;;  %v5653_v14 = vld [vmem:[#allocation14_spill] sm:$0xff]  ;;  %v5654_v46 = vld [vmem:[#allocation15_spill] sm:$0xff] }
 0x429   :  { %v2027_v7 = vsel %vm5644_vm4, %v2019_v30, 0.0  ;;  %v2060_v19 = vsel %vm5645_vm3, %v2052_v6, 0.0  ;;  %v2061_v49 = vsel %vm5114_vm13, %v2053_v33, 0.0  ;;  %v2075_v38 = vsel %vm2068_vm0, %v2072_v42, %v2074_v11  ;;  %v5655_v6 = vld [vmem:[#allocation18_spill] sm:$0xff]  ;;  %v5656_v0 = vld [vmem:[#allocation19_spill] sm:$0xff] }
 0x42a   :  { %v2076_v29 = vsel %vm2068_vm0, %v2074_v11, %v2072_v42  ;;  %v2080_v17 = vmul.f32 %v2079_v4, %v2069_v12  ;;  %v2081_v39 = vmul.f32 %v2079_v4, %v2070_v55  ;;  %v2083_v52 = vmul.f32 %v2082_v41, %v2075_v38  ;;  %v5657_v4 = vld [vmem:[#allocation20_spill] sm:$0xff]  ;;  %v5658_v55 = vld [vmem:[#allocation21_spill] sm:$0xff] }
 0x42b   :  { %v2084_v13 = vmul.f32 %v2082_v41, %v2076_v29  ;;  %v2029_v51 = vadd.f32 %v2027_v7, %v1996_v32  ;;  %v2030_v23 = vadd.f32 %v2028_v18, %v1997_v10  ;;  %vm5646_vm1 = vcmp.lt.s32.totalorder %v3333_v35, 13  ;;  %v5659_v41 = vld [vmem:[#allocation22_spill] sm:$0xff]  ;;  %v5660_v10 = vld [vmem:[#allocation23_spill] sm:$0xff]  ;;  %v5663_v38 = vld [vmem:[#allocation24_spill] sm:$0xff] }
 0x42c   :  { %vm2088_vm7 = vmand %vm456_vm15, %vm5646_vm1  ;;  %v2085_v63 = vadd.f32 %v2083_v52, %v2080_v17  ;;  %vm5647_vm12 = vcmp.lt.s32.totalorder %v3310_v50, 13  ;;  %v2482_v31 = vmov 1966171168   ;;  %v5661_v18 = vld [vmem:[#allocation26_spill] sm:$0xff]  ;;  %v5664_v17 = vld [vmem:[#allocation25_spill] sm:$0xff] }
 0x42d   :  { %v2086_v20 = vadd.f32 %v2084_v13, %v2081_v39  ;;  %v2062_v8 = vadd.f32 %v2060_v19, %v2029_v51  ;;  %v2063_v2 = vadd.f32 %v2061_v49, %v2030_v23  ;;  %v2113_v57 = vunpack.c.l.s4 %v2482_v31  ;;  %v5662_v19 = vld [vmem:[#allocation27_spill] sm:$0xff]  ;;  %v5665_v52 = vld [vmem:[#allocation28_spill] sm:$0xff]  ;;  %v5666_v51 = vld [vmem:[#allocation29_spill] sm:$0xff] }
 0x42e   :  { %v2093_v37 = vsel %vm5647_vm12, %v2085_v63, 0.0 }
 0x42f   :  { %v2094_v40 = vsel %vm2088_vm7, %v2086_v20, 0.0  ;;  %v2095_v9 = vadd.f32 %v2093_v37, %v2062_v8  ;;  %v2114_v1 = vunpack.c.0.s8 %v2113_v57 }
 0x430   :  { %v2096_v43 = vadd.f32 %v2094_v40, %v2063_v2 }
 0x431   :  { %v2302_v16 = vmul.f32 -1.442695, %v2095_v9  ;;  %v2117_v50 = vsub.s32 %v2114_v1, %v5648_v54 }
 0x432   :  { %v2303_v21 = vmul.f32 -1.442695, %v2096_v43 }
 0x433   :  { %2361 = vpow2.f32 %v2302_v16 }
 0x434   :  { %2363 = vpow2.f32 %v2303_v21 }
 0x43d   :  { %v2362_v22 = vpop.eup %2361 }
 0x43e   :  { %v2364_v3 = vpop.eup %2363  ;;  %v2103_v35 = vadd.f32 1.0, %v2362_v22 }
 0x43f   :  { %v2104_v53 = vadd.f32 1.0, %v2364_v3 }
 0x440   :  { %2365 = vrcp.f32 %v2103_v35 }
 0x441   :  { %2367 = vrcp.f32 %v2104_v53 }
 0x44a   :  { %v2366_v62 = vpop.eup %2365 }
 0x44b   :  { %v2368_v59 = vpop.eup %2367 }
 0x44c   :  { %v2111_v58 = vcombine.low %v2366_v62, %v2368_v59 }
 0x44e   :  { %v2118_v44 = vrot.slane %v2111_v58, %v2117_v50 }
 0x450   :  { %v2119_v47 = vcombine.high %v2118_v44, %v2118_v44  ;;  %v2126_v45 = vrot.slane %v2118_v44, %v2117_v50 }
 0x452   :  { %v2133_v27 = vrot.slane %v2119_v47, %v2117_v50  ;;  %v2137_v60 = vrot.slane %v2126_v45, %v5649_v36  ;;  %v2141_v24 = vrot.slane %v2126_v45, %v5650_v28 }
 0x454   :  { %v2145_v48 = vrot.slane %v2133_v27, %v5649_v36  ;;  %v2149_v56 = vrot.slane %v2133_v27, %v5650_v28  ;;  %v2154_v34 = vmul.f32 %v2137_v60, %v5651_v15  ;;  %v2155_v30 = vmul.f32 %v2141_v24, %v5652_v5 }
 0x455   :  { %v2156_v61 = vmul.f32 %v2137_v60, %v5653_v14  ;;  %v2157_v26 = vmul.f32 %v2141_v24, %v5654_v46  ;;  %v2158_v33 = vmul.f32 %v2137_v60, %v5655_v6  ;;  %v2159_v25 = vmul.f32 %v2141_v24, %v5656_v0 }
 0x456   :  { %v2160_v12 = vmul.f32 %v2137_v60, %v5657_v4  ;;  %v2161_v11 = vmul.f32 %v2141_v24, %v5658_v55  ;;  %v2162_v32 = vmul.f32 %v2145_v48, %v5659_v41  ;;  %v2163_v7 = vmul.f32 %v2149_v56, %v5660_v10  ;;  %2170 = vst [vmem:[#allocation7] sm:$0xff] %v2154_v34 }
 0x457   :  { %2171 = vst [vmem:[#allocation7 + $0x8] sm:$0xff] %v2155_v30  ;;  %v2164_v42 = vmul.f32 %v2145_v48, %v5661_v18  ;;  %v2165_v49 = vmul.f32 %v2149_v56, %v5662_v19  ;;  %v2166_v29 = vmul.f32 %v2145_v48, %v5663_v38  ;;  %v2167_v39 = vmul.f32 %v2149_v56, %v5664_v17 }
 0x458   :  { %2172 = vst [vmem:[#allocation7 + $0x10] sm:$0xff] %v2156_v61  ;;  %2173 = vst [vmem:[#allocation7 + $0x18] sm:$0xff] %v2157_v26  ;;  %v2168_v13 = vmul.f32 %v2145_v48, %v5665_v52  ;;  %v2169_v23 = vmul.f32 %v2149_v56, %v5666_v51 }
 0x459   :  { %2174 = vst [vmem:[#allocation7 + $0x20] sm:$0xff] %v2158_v33  ;;  %2175 = vst [vmem:[#allocation7 + $0x28] sm:$0xff] %v2159_v25 }
 0x45a   :  { %2176 = vst [vmem:[#allocation7 + $0x30] sm:$0xff] %v2160_v12  ;;  %2177 = vst [vmem:[#allocation7 + $0x38] sm:$0xff] %v2161_v11 }
 0x45b   :  { %2178 = vst [vmem:[#allocation7 + $0x40] sm:$0xff] %v2162_v32  ;;  %2179 = vst [vmem:[#allocation7 + $0x48] sm:$0xff] %v2163_v7 }
 0x45c   :  { %2180 = vst [vmem:[#allocation7 + $0x50] sm:$0xff] %v2164_v42  ;;  %2181 = vst [vmem:[#allocation7 + $0x58] sm:$0xff] %v2165_v49 }
 0x45d   :  { %2182 = vst [vmem:[#allocation7 + $0x60] sm:$0xff] %v2166_v29  ;;  %2183 = vst [vmem:[#allocation7 + $0x68] sm:$0xff] %v2167_v39 }
 0x45e   :  { %2184 = vst [vmem:[#allocation7 + $0x70] sm:$0xff] %v2168_v13  ;;  %2185 = vst [vmem:[#allocation7 + $0x78] sm:$0xff] %v2169_v23 }
 0x45f   :  { %2414 = shalt.err (!%p2411_p3)
}
 0x460   :  { %s2415_s17 = scalar_lea.hbm %s5182_s4, 2048 }
 0x461   :  { %p2416_p4 = scmp.ne.s32.totalorder %s5182_s4, %s2415_s17  ;;  %p2419_p5 = scmp.lt.u32.totalorder %s2415_s17, %s5182_s4 }
 0x463   :  { %p2421_p6 = pnand %p2419_p5, %p2416_p4 }
 0x465   :  { %2424 = shalt.err (!%p2421_p6)
}
 0x466   :  { %s5667_s23 = smov 256  }
 0x467   :  { %2197 = dma.vmem_to_hbm [thread:$0]  %s2192_s15, 2048, %s5182_s4, [#allocation4], %s5667_s23, %s5667_s23, %s2433_s28  }
 0x468   :  { %2429 = dma.done.wait [#allocation4], 2048  }
 0x469   :  { %2430 = vsyncadd [#allocation4], 4294965248 }
 0x46a   :  { %2201 = vsyncpa [#allocation3], 1 }
 0x46b   :  { %2202 = vsyncpa [#allocation4], 1 }
 0x46c   :  { %2203 = vsyncpa [#allocation5], 1 }

</bundles_post_ra>
